<compile_context>
chip_gen: v6e
topology: v6e:2x2x1
jax: 0.10.0
libtpu: 0.0.40
codegen_flags: <defaults>
</compile_context>

<pallas_src>
import math
from functools import partial

import jax
import jax.numpy as jnp
from jax import lax
from jax.experimental import pallas as pl
from jax.experimental.pallas import tpu as pltpu


# ----------------------------------------------------------------------------
# small tiling helpers
# ----------------------------------------------------------------------------
def _pick_tile(dim, target, align):
    """Largest tile <= target that divides `dim` and is a multiple of `align`;
    falls back to the full dim (always a legal TPU block)."""
    if dim <= target:
        return dim
    t = (target // align) * align
    while t >= align:
        if dim % t == 0:
            return t
        t -= align
    return dim


def _pick_chunk(L, target):
    """Largest chunk <= target that divides L (full L if it already fits)."""
    if L <= target:
        return L
    c = target
    while L % c != 0:
        c -= 1
    return c


# ----------------------------------------------------------------------------
# Kernel 1: tiled linear  o = a @ w.T   (a: (M, K), w: (N, K))
# ----------------------------------------------------------------------------
def _linear_kernel(a_ref, w_ref, o_ref):
    o_ref[...] = lax.dot_general(
        a_ref[...], w_ref[...],
        (((1,), (1,)), ((), ())),
        preferred_element_type=jnp.float32)


def pallas_linear(a, w, tm_target=512, tn_target=512):
    M, K = a.shape
    N = w.shape[0]
    tm = _pick_tile(M, tm_target, 8)
    tn = _pick_tile(N, tn_target, 128)
    return pl.pallas_call(
        _linear_kernel,
        grid=(M // tm, N // tn),
        out_shape=jax.ShapeDtypeStruct((M, N), jnp.float32),
        in_specs=[
            pl.BlockSpec((tm, K), lambda i, j: (i, 0)),
            pl.BlockSpec((tn, K), lambda i, j: (j, 0)),
        ],
        out_specs=pl.BlockSpec((tm, tn), lambda i, j: (i, j)),
        compiler_params=pltpu.CompilerParams(
            dimension_semantics=("parallel", "parallel")),
    )(a, w)


# ----------------------------------------------------------------------------
# Kernel 2: fused (shared depthwise 3x3 conv + bias + SiLU) on both branches
#           + cross combine  x = a*b + a + b,   per batch.
# ----------------------------------------------------------------------------
def _dwconv_combine_kernel(x1_ref, x2_ref, w_ref, b_ref, o_ref):
    H, W, C = o_ref.shape

    def conv_silu(x_ref):
        acc = jnp.zeros((H, W, C), jnp.float32)
        for dh in range(3):
            for dw in range(3):
                acc = acc + x_ref[dh:dh + H, dw:dw + W, :] * w_ref[dh:dh + 1, dw:dw + 1, :]
        acc = acc + b_ref[...]
        return acc * jax.nn.sigmoid(acc)          # SiLU

    a = conv_silu(x1_ref)
    b = conv_silu(x2_ref)
    o_ref[...] = a * b + a + b                    # cross combine, fused


def pallas_dwconv_combine(x1, x2, w, b):
    # x1, x2: (B, H, W, C), w: (3, 3, C), b: (1, 1, C)
    B, H, W, C = x1.shape
    x1p = jnp.pad(x1, ((0, 0), (1, 1), (1, 1), (0, 0)))
    x2p = jnp.pad(x2, ((0, 0), (1, 1), (1, 1), (0, 0)))
    return pl.pallas_call(
        _dwconv_combine_kernel,
        grid=(B,),
        out_shape=jax.ShapeDtypeStruct((B, H, W, C), jnp.float32),
        in_specs=[
            pl.BlockSpec((None, H + 2, W + 2, C), lambda b_: (b_, 0, 0, 0)),
            pl.BlockSpec((None, H + 2, W + 2, C), lambda b_: (b_, 0, 0, 0)),
            pl.BlockSpec((3, 3, C), lambda b_: (0, 0, 0)),
            pl.BlockSpec((1, 1, C), lambda b_: (0, 0, 0)),
        ],
        out_specs=pl.BlockSpec((None, H, W, C), lambda b_: (b_, 0, 0, 0)),
        compiler_params=pltpu.CompilerParams(dimension_semantics=("parallel",)),
    )(x1p, x2p, w, b)


# ----------------------------------------------------------------------------
# Kernel 3: fused projection + softplus + chunked selective scan, per (k, b).
#   xs_ref  : (L, D)
#   proj_ref: (D + 2N, D)   rows [0:D)      = dt_projs_weight @ x_proj_weight[:R]
#                           rows [D:D+N)    = x_proj_weight[R:R+N]      (B proj)
#                           rows [D+N:D+2N) = x_proj_weight[R+N:R+2N]   (C proj)
#   dtb_ref : (1, D)   A_ref: (N, D) (= -exp(A_log), transposed)   Dv_ref: (1, D)
#   y_ref   : (L, D)
# ----------------------------------------------------------------------------
def _ssm_scan_kernel(xs_ref, proj_ref, dtb_ref, A_ref, Dv_ref, y_ref,
                     dA_s, dBu_s, h_s, *, chunk, n_chunks, unroll):
    _, D = xs_ref.shape
    N = A_ref.shape[0]

    A = A_ref[...]                                 # (N, D)
    Dv = Dv_ref[...]                               # (1, D)
    dtb = dtb_ref[...]                             # (1, D)
    proj = proj_ref[...]                           # (D + 2N, D)

    def chunk_body(c, h):                          # h: hidden state (N, D)
        start = pl.multiple_of(c * chunk, chunk)
        u_c = xs_ref[pl.ds(start, chunk), :]                          # (chunk, D)

        # ONE fused matmul gives dt (pre-bias), B and C for the whole chunk.
        xd = lax.dot_general(u_c, proj, (((1,), (1,)), ((), ())),
                             preferred_element_type=jnp.float32)      # (chunk, D+2N)
        dt_c = jax.nn.softplus(xd[:, :D] + dtb)                       # (chunk, D)
        B_c = xd[:, D:D + N]                                          # (chunk, N)
        C_c = xd[:, D + N:D + 2 * N]                                  # (chunk, N)

        # Vectorized precompute of per-step transition / input terms.
        dA_s[...] = jnp.exp(dt_c[:, None, :] * A[None, :, :])         # (chunk, N, D)
        dBu_s[...] = B_c[:, :, None] * (dt_c * u_c)[:, None, :]       # (chunk, N, D)

        # Only the unavoidable first-order recurrence stays sequential
        # (manually unrolled by `unroll` steps).
        def step(j, hh):
            base = pl.multiple_of(j * unroll, unroll)
            for t in range(unroll):
                i = base + t
                hh = dA_s[i] * hh + dBu_s[i]
                h_s[i] = hh
            return hh

        h = lax.fori_loop(0, chunk // unroll, step, h)

        # Batched readout  y[l] = sum_n C[l,n] * h[l,n,:] + D * u[l]
        y_c = jnp.sum(C_c[:, :, None] * h_s[...], axis=1) + Dv * u_c  # (chunk, D)
        y_ref[pl.ds(start, chunk), :] = y_c                           # one dense store
        return h

    lax.fori_loop(0, n_chunks, chunk_body, jnp.zeros((N, D), jnp.float32))


def pallas_ssm_scan(xs, proj_k, dtb_k, A_neg_T, Ds_k, chunk_target=128):
    B, K, L, D = xs.shape
    N = A_neg_T.shape[1]
    C_all = proj_k.shape[1]                        # D + 2N
    chunk = _pick_chunk(L, chunk_target)
    n_chunks = L // chunk
    unroll = next(u for u in (8, 4, 2, 1) if chunk % u == 0)

    kernel = partial(_ssm_scan_kernel, chunk=chunk, n_chunks=n_chunks, unroll=unroll)
    return pl.pallas_call(
        kernel,
        # K outer, B inner: per-direction weight blocks keep the same block
        # index across all B steps -> no re-DMA of weights inside the grid.
        grid=(K, B),
        out_shape=jax.ShapeDtypeStruct((B, K, L, D), jnp.float32),
        in_specs=[
            pl.BlockSpec((None, None, L, D), lambda k, b: (b, k, 0, 0)),
            pl.BlockSpec((None, C_all, D), lambda k, b: (k, 0, 0)),
            pl.BlockSpec((None, 1, D), lambda k, b: (k, 0, 0)),
            pl.BlockSpec((None, N, D), lambda k, b: (k, 0, 0)),
            pl.BlockSpec((None, 1, D), lambda k, b: (k, 0, 0)),
        ],
        out_specs=pl.BlockSpec((None, None, L, D), lambda k, b: (b, k, 0, 0)),
        scratch_shapes=[
            pltpu.VMEM((chunk, N, D), jnp.float32),   # dA
            pltpu.VMEM((chunk, N, D), jnp.float32),   # dBu
            pltpu.VMEM((chunk, N, D), jnp.float32),   # per-step hidden states
        ],
        compiler_params=pltpu.CompilerParams(
            dimension_semantics=("parallel", "parallel")),
    )(xs, proj_k, dtb_k, A_neg_T, Ds_k)


# ----------------------------------------------------------------------------
# Kernel 4: LayerNorm + z-gating + out_proj, tiled over rows.
# Faithfully reproduces the reference gating:  z1 <- silu(z1); z2 <- silu(z1);
# y = y*z1 + y*z2  == y*(z1+z2)  (original z2 chunk is never used in the gate).
# ----------------------------------------------------------------------------
def _ln_gate_outproj_kernel(y_ref, z1_ref, g_ref, beta_ref, wout_ref, o_ref):
    y = y_ref[...]                                        # (tm, D)
    mu = jnp.mean(y, axis=1, keepdims=True)
    var = jnp.mean(jnp.square(y - mu), axis=1, keepdims=True)
    yn = (y - mu) * lax.rsqrt(var + 1e-5) * g_ref[...] + beta_ref[...]
    z1 = z1_ref[...]
    z1a = z1 * jax.nn.sigmoid(z1)          # z1 = act1(z1)
    z2a = z1a * jax.nn.sigmoid(z1a)        # z2 = act2(z1)  (post-activation z1)
    gated = yn * (z1a + z2a)               # factored gate: one multiply saved
    o_ref[...] = lax.dot_general(gated, wout_ref[...], (((1,), (1,)), ((), ())),
                                 preferred_element_type=jnp.float32)


def pallas_ln_gate_outproj(y, z1, gamma, beta, w_out, tm_target=512):
    M, D = y.shape
    dm = w_out.shape[0]
    n_pad = ((dm + 127) // 128) * 128              # lane-dense output slab
    w_pad = jnp.pad(w_out, ((0, n_pad - dm), (0, 0))) if n_pad != dm else w_out
    tm = _pick_tile(M, tm_target, 8)
    out = pl.pallas_call(
        _ln_gate_outproj_kernel,
        grid=(M // tm,),
        out_shape=jax.ShapeDtypeStruct((M, n_pad), jnp.float32),
        in_specs=[
            pl.BlockSpec((tm, D), lambda i: (i, 0)),
            pl.BlockSpec((tm, D), lambda i: (i, 0)),
            pl.BlockSpec((1, D), lambda i: (0, 0)),        # resident
            pl.BlockSpec((1, D), lambda i: (0, 0)),        # resident
            pl.BlockSpec((n_pad, D), lambda i: (0, 0)),    # resident
        ],
        out_specs=pl.BlockSpec((tm, n_pad), lambda i: (i, 0)),
        compiler_params=pltpu.CompilerParams(dimension_semantics=("parallel",)),
    )(y, z1, gamma, beta, w_pad)
    return out[:, :dm]


# ----------------------------------------------------------------------------
# Plain-JAX glue: EfficientScan / EfficientMerge (strided gather / scatter).
# ----------------------------------------------------------------------------
def efficient_scan(x, step=2):
    # x: (B, H, W, D) channels-last -> (B, 4, L, D)
    B, H, W, D = x.shape
    pad_h = (-H) % step
    pad_w = (-W) % step
    if pad_h or pad_w:
        x = jnp.pad(x, ((0, 0), (0, pad_h), (0, pad_w), (0, 0)))
    Hc, Wc = (H + pad_h) // step, (W + pad_w) // step
    xs0 = x[:, ::step, ::step, :].reshape(B, Hc * Wc, D)
    xs1 = x[:, 1::step, ::step, :].transpose(0, 2, 1, 3).reshape(B, Wc * Hc, D)
    xs2 = x[:, ::step, 1::step, :].reshape(B, Hc * Wc, D)
    xs3 = x[:, 1::step, 1::step, :].transpose(0, 2, 1, 3).reshape(B, Wc * Hc, D)
    return jnp.stack([xs0, xs1, xs2, xs3], axis=1)


def efficient_merge(ys, ori_h, ori_w, step=2):
    # ys: (B, 4, L, D) -> (B, ori_h*ori_w, D)
    B, _, L, D = ys.shape
    Hc, Wc = math.ceil(ori_h / step), math.ceil(ori_w / step)
    new_h, new_w = Hc * step, Wc * step
    y = jnp.zeros((B, new_h, new_w, D), ys.dtype)
    y = y.at[:, ::step, ::step, :].set(ys[:, 0].reshape(B, Hc, Wc, D))
    y = y.at[:, 1::step, ::step, :].set(ys[:, 1].reshape(B, Wc, Hc, D).transpose(0, 2, 1, 3))
    y = y.at[:, ::step, 1::step, :].set(ys[:, 2].reshape(B, Hc, Wc, D))
    y = y.at[:, 1::step, 1::step, :].set(ys[:, 3].reshape(B, Wc, Hc, D).transpose(0, 2, 1, 3))
    y = y[:, :ori_h, :ori_w, :]
    return y.reshape(B, ori_h * ori_w, D)


# ----------------------------------------------------------------------------
# Full forward (matches SS2D_cross_new.forward with default config, dropout=0).
# ----------------------------------------------------------------------------
def ss2d_cross_forward(params, x1, x2, step_size=2):
    B, H, W, dm = x1.shape
    d_expand = params["in_proj1_w"].shape[0] // 2
    M = B * H * W

    # in_proj (Linear, bias=False)
    xz1 = pallas_linear(x1.reshape(M, dm), params["in_proj1_w"])
    xz2 = pallas_linear(x2.reshape(M, dm), params["in_proj2_w"])
    x1c, z1 = xz1[:, :d_expand], xz1[:, d_expand:]
    x2c = xz2[:, :d_expand]       # _z2 chunk unused by the reference gating

    x1c = x1c.reshape(B, H, W, d_expand)
    x2c = x2c.reshape(B, H, W, d_expand)

    # fused: shared depthwise conv2d + SiLU on both branches + cross combine
    x = pallas_dwconv_combine(x1c, x2c, params["conv_w"], params["conv_b"])
    xs = efficient_scan(x, step_size)                                 # (B, 4, L, D)

    # Fold dt_proj into x_proj:  dt = xs @ (dt_w @ x_proj_w[:R]).T, so one
    # (D+2N, D) weight per direction feeds a single in-kernel matmul.
    R = params["dt_projs_weight"].shape[2]
    W_dt = jnp.einsum('kdr,krc->kdc', params["dt_projs_weight"],
                      params["x_proj_weight"][:, :R, :])              # (K, D, D)
    proj_k = jnp.concatenate([W_dt, params["x_proj_weight"][:, R:, :]], axis=1)

    # fused projection / softplus / chunked selective scan
    ys = pallas_ssm_scan(xs, proj_k, params["dt_projs_bias_k"],
                         params["A_neg_T"], params["Ds_k"])

    # EfficientMerge back to full resolution
    y = efficient_merge(ys, H, W, step_size)                          # (B, H*W, D)

    # LayerNorm + gating + out_proj (dropout = Identity)
    out = pallas_ln_gate_outproj(y.reshape(M, d_expand), z1,
                                 params["ln_gamma"], params["ln_beta"],
                                 params["out_proj_w"])
    return out.reshape(B, H, W, dm)


# ----------------------------------------------------------------------------
# Pure-JAX reference (sanity check of the Pallas kernels).
# ----------------------------------------------------------------------------
def reference_forward(params, x1, x2, step_size=2):
    B, H, W, dm = x1.shape
    d_expand = params["in_proj1_w"].shape[0] // 2
    xz1 = x1.reshape(-1, dm) @ params["in_proj1_w"].T
    xz2 = x2.reshape(-1, dm) @ params["in_proj2_w"].T
    x1c, z1 = xz1[:, :d_expand], xz1[:, d_expand:]
    x2c = xz2[:, :d_expand]
    x1c = x1c.reshape(B, H, W, d_expand)
    x2c = x2c.reshape(B, H, W, d_expand)

    def dwconv(x):
        xp = jnp.pad(x, ((0, 0), (1, 1), (1, 1), (0, 0)))
        acc = jnp.zeros_like(x)
        for dh in range(3):
            for dw in range(3):
                acc = acc + xp[:, dh:dh + H, dw:dw + W, :] * params["conv_w"][dh, dw, :]
        acc = acc + params["conv_b"][0]
        return acc * jax.nn.sigmoid(acc)

    x1c, x2c = dwconv(x1c), dwconv(x2c)
    x = x1c * x2c + x1c + x2c
    xs = efficient_scan(x, step_size)                                 # (B, 4, L, D)

    R = params["dt_projs_weight"].shape[2]
    N = params["A_neg_T"].shape[1]
    x_dbl = jnp.einsum('bkld,kcd->bklc', xs, params["x_proj_weight"])
    dts = jnp.einsum('bklr,kdr->bkld', x_dbl[..., :R], params["dt_projs_weight"])
    dts = jax.nn.softplus(dts + params["dt_projs_bias_k"])
    Bm = x_dbl[..., R:R + N]
    Cm = x_dbl[..., R + N:]
    A = params["A_neg_T"]                     # (K, N, D)
    Dv = params["Ds_k"][:, 0, :]              # (K, D)

    def scan_one(u, dt, Bseq, Cseq, Ak, Dk):
        Dd = u.shape[1]

        def step(h, inp):
            u_l, dt_l, b_l, c_l = inp
            dA = jnp.exp(dt_l[None, :] * Ak)
            h = dA * h + b_l[:, None] * (dt_l * u_l)[None, :]
            y_l = jnp.sum(c_l[:, None] * h, axis=0) + Dk * u_l
            return h, y_l

        _, ys_ = lax.scan(step, jnp.zeros((N, Dd), jnp.float32), (u, dt, Bseq, Cseq))
        return ys_

    ys = jax.vmap(jax.vmap(scan_one, in_axes=(0, 0, 0, 0, 0, 0)),
                  in_axes=(0, 0, 0, 0, None, None))(xs, dts, Bm, Cm, A, Dv)

    y = efficient_merge(ys, H, W, step_size)
    mu = jnp.mean(y, axis=-1, keepdims=True)
    var = jnp.mean((y - mu) ** 2, axis=-1, keepdims=True)
    yn = (y - mu) / jnp.sqrt(var + 1e-5) * params["ln_gamma"][0] + params["ln_beta"][0]
    yn = yn.reshape(B * H * W, d_expand)
    z1a = z1 * jax.nn.sigmoid(z1)
    z2a = z1a * jax.nn.sigmoid(z1a)
    out = (yn * z1a + yn * z2a) @ params["out_proj_w"].T
    return out.reshape(B, H, W, dm)


# ----------------------------------------------------------------------------
# Deterministic parameter initialization (shapes per SS2D_cross_new.__init__).
# ----------------------------------------------------------------------------
def init_params(key, d_model, d_state=16, ssm_ratio=2.0, d_conv=3,
                dt_min=0.001, dt_max=0.1, dt_init_floor=1e-4, K=4):
    d_expand = int(ssm_ratio * d_model)
    d_inner = d_expand                        # ssm_rank_ratio = ssm_ratio -> no low rank
    dt_rank = math.ceil(d_model / 16)
    ks = jax.random.split(key, 8)

    def uniform(k, shape, bound):
        return jax.random.uniform(k, shape, jnp.float32, -bound, bound)

    in1 = uniform(ks[0], (2 * d_expand, d_model), 1.0 / math.sqrt(d_model))
    in2 = uniform(ks[1], (2 * d_expand, d_model), 1.0 / math.sqrt(d_model))
    conv_w = uniform(ks[2], (d_conv, d_conv, d_expand), 1.0 / math.sqrt(d_conv * d_conv))
    conv_b = uniform(ks[3], (1, 1, d_expand), 1.0 / math.sqrt(d_conv * d_conv))
    x_proj_weight = uniform(ks[4], (K, dt_rank + 2 * d_state, d_inner),
                            1.0 / math.sqrt(d_inner))
    dt_init_std = dt_rank ** -0.5
    dt_w = uniform(ks[5], (K, d_inner, dt_rank), dt_init_std)
    dt = jnp.exp(jax.random.uniform(ks[6], (K, d_inner), jnp.float32)
                 * (math.log(dt_max) - math.log(dt_min)) + math.log(dt_min))
    dt = jnp.maximum(dt, dt_init_floor)
    dt_bias = dt + jnp.log(-jnp.expm1(-dt))                           # inv softplus
    # A_log_init: A = arange(1..N) per channel; As = -exp(A_log); store transposed per K.
    A_neg = -jnp.tile(jnp.arange(1, d_state + 1, dtype=jnp.float32)[None, :],
                      (d_inner, 1))                                   # (D, N)
    A_neg_T = jnp.tile(A_neg.T[None], (K, 1, 1))                      # (K, N, D)
    Ds_k = jnp.ones((K, 1, d_inner), jnp.float32)
    out_w = uniform(ks[7], (d_model, d_expand), 1.0 / math.sqrt(d_expand))
    return dict(
        in_proj1_w=in1, in_proj2_w=in2, conv_w=conv_w, conv_b=conv_b,
        x_proj_weight=x_proj_weight, dt_projs_weight=dt_w,
        dt_projs_bias_k=dt_bias[:, None, :], A_neg_T=A_neg_T, Ds_k=Ds_k,
        ln_gamma=jnp.ones((1, d_inner), jnp.float32),
        ln_beta=jnp.zeros((1, d_inner), jnp.float32),
        out_proj_w=out_w,
    )


if __name__ == "__main__":
    d_model = 16
    B, H, W = 2, 8, 8
    params = init_params(jax.random.PRNGKey(1), d_model)

    k1, k2 = jax.random.split(jax.random.PRNGKey(0))
    x1 = jax.random.normal(k1, (B, H, W, d_model), jnp.float32)
    x2 = jax.random.normal(k2, (B, H, W, d_model), jnp.float32)

    out = jax.jit(ss2d_cross_forward)(params, x1, x2)
    out = jax.block_until_ready(out)
    assert out.shape == (B, H, W, d_model)

    ref = reference_forward(params, x1, x2)
    err = float(jnp.max(jnp.abs(out - ref)))
    assert err < 1e-2, f"Pallas vs JAX reference mismatch: max abs err = {err}"

    print("KERNEL_OK")
</pallas_src>

<mosaic_0001>
module attributes {stable_mosaic.version = 11 : i64} {
  func.func @_linear_kernel(%arg0: i32, %arg1: i32, %arg2: memref<128x16xf32, #tpu.memory_space<vmem>>, %arg3: memref<64x16xf32, #tpu.memory_space<vmem>>, %arg4: memref<128x64xf32, #tpu.memory_space<vmem>>) attributes {dimension_semantics = [#tpu.dimension_semantics<parallel>, #tpu.dimension_semantics<parallel>], iteration_bounds = array<i64: 1, 1>, scalar_prefetch = 0 : i64, scratch_operands = 0 : i64, tpu.core_type = #tpu.core_type<tc>, window_params = [{transform_indices = @transform_0, window_bounds = array<i64: 128, 16>}, {transform_indices = @transform_1, window_bounds = array<i64: 64, 16>}, {transform_indices = @transform_2, window_bounds = array<i64: 128, 64>}]} {
    %c0 = arith.constant 0 : index
    %c0_0 = arith.constant 0 : index
    %0 = vector.load %arg2[%c0, %c0_0] : memref<128x16xf32, #tpu.memory_space<vmem>>, vector<128x16xf32>
    %c0_1 = arith.constant 0 : index
    %c0_2 = arith.constant 0 : index
    %1 = vector.load %arg3[%c0_1, %c0_2] : memref<64x16xf32, #tpu.memory_space<vmem>>, vector<64x16xf32>
    %cst = arith.constant dense<0.000000e+00> : vector<128x64xf32>
    %2 = tpu.matmul %0, %1, %cst {dimension_numbers = #tpu.dot_dimension_numbers<[1], [1], [0], [0], [0, 0, 1, 0], [], []>} : vector<128x16xf32>, vector<64x16xf32>, vector<128x64xf32> -> vector<128x64xf32>
    %c0_3 = arith.constant 0 : index
    %c0_4 = arith.constant 0 : index
    %3 = vector.load %arg4[%c0_3, %c0_4] : memref<128x64xf32, #tpu.memory_space<vmem>>, vector<128x64xf32>
    tpu.vector_store %arg4[%c0_3, %c0_4], %2 {strides = array<i32>} : memref<128x64xf32, #tpu.memory_space<vmem>>, vector<128x64xf32>,
    return
  }
  func.func @transform_0(%arg0: i32, %arg1: i32) -> (i32, i32) {
    %c0_i32 = arith.constant 0 : i32
    %c0_i32_0 = arith.constant 0 : i32
    return %arg0, %c0_i32 : i32, i32
  }
  func.func @transform_1(%arg0: i32, %arg1: i32) -> (i32, i32) {
    %c0_i32 = arith.constant 0 : i32
    %c0_i32_0 = arith.constant 0 : i32
    return %arg1, %c0_i32 : i32, i32
  }
  func.func @transform_2(%arg0: i32, %arg1: i32) -> (i32, i32) {
    %c0_i32 = arith.constant 0 : i32
    return %arg0, %arg1 : i32, i32
  }
}

module attributes {stable_mosaic.version = 11 : i64} {
  func.func @_linear_kernel(%arg0: i32, %arg1: i32, %arg2: memref<128x16xf32, #tpu.memory_space<vmem>>, %arg3: memref<64x16xf32, #tpu.memory_space<vmem>>, %arg4: memref<128x64xf32, #tpu.memory_space<vmem>>) attributes {dimension_semantics = [#tpu.dimension_semantics<parallel>, #tpu.dimension_semantics<parallel>], iteration_bounds = array<i64: 1, 1>, scalar_prefetch = 0 : i64, scratch_operands = 0 : i64, tpu.core_type = #tpu.core_type<tc>, window_params = [{transform_indices = @transform_0, window_bounds = array<i64: 128, 16>}, {transform_indices = @transform_1, window_bounds = array<i64: 64, 16>}, {transform_indices = @transform_2, window_bounds = array<i64: 128, 64>}]} {
    %c0 = arith.constant 0 : index
    %c0_0 = arith.constant 0 : index
    %0 = vector.load %arg2[%c0, %c0_0] : memref<128x16xf32, #tpu.memory_space<vmem>>, vector<128x16xf32>
    %c0_1 = arith.constant 0 : index
    %c0_2 = arith.constant 0 : index
    %1 = vector.load %arg3[%c0_1, %c0_2] : memref<64x16xf32, #tpu.memory_space<vmem>>, vector<64x16xf32>
    %cst = arith.constant dense<0.000000e+00> : vector<128x64xf32>
    %2 = tpu.matmul %0, %1, %cst {dimension_numbers = #tpu.dot_dimension_numbers<[1], [1], [0], [0], [0, 0, 1, 0], [], []>} : vector<128x16xf32>, vector<64x16xf32>, vector<128x64xf32> -> vector<128x64xf32>
    %c0_3 = arith.constant 0 : index
    %c0_4 = arith.constant 0 : index
    %3 = vector.load %arg4[%c0_3, %c0_4] : memref<128x64xf32, #tpu.memory_space<vmem>>, vector<128x64xf32>
    tpu.vector_store %arg4[%c0_3, %c0_4], %2 {strides = array<i32>} : memref<128x64xf32, #tpu.memory_space<vmem>>, vector<128x64xf32>,
    return
  }
  func.func @transform_0(%arg0: i32, %arg1: i32) -> (i32, i32) {
    %c0_i32 = arith.constant 0 : i32
    %c0_i32_0 = arith.constant 0 : i32
    return %arg0, %c0_i32 : i32, i32
  }
  func.func @transform_1(%arg0: i32, %arg1: i32) -> (i32, i32) {
    %c0_i32 = arith.constant 0 : i32
    %c0_i32_0 = arith.constant 0 : i32
    return %arg1, %c0_i32 : i32, i32
  }
  func.func @transform_2(%arg0: i32, %arg1: i32) -> (i32, i32) {
    %c0_i32 = arith.constant 0 : i32
    return %arg0, %arg1 : i32, i32
  }
}

module attributes {stable_mosaic.version = 11 : i64} {
  func.func @_dwconv_combine_kernel(%arg0: i32, %arg1: memref<1x10x10x32xf32, #tpu.memory_space<vmem>>, %arg2: memref<1x10x10x32xf32, #tpu.memory_space<vmem>>, %arg3: memref<3x3x32xf32, #tpu.memory_space<vmem>>, %arg4: memref<1x1x32xf32, #tpu.memory_space<vmem>>, %arg5: memref<1x8x8x32xf32, #tpu.memory_space<vmem>>) attributes {dimension_semantics = [#tpu.dimension_semantics<parallel>], iteration_bounds = array<i64: 2>, scalar_prefetch = 0 : i64, scratch_operands = 0 : i64, tpu.core_type = #tpu.core_type<tc>, window_params = [{transform_indices = @transform_0, window_bounds = array<i64: 1, 10, 10, 32>}, {transform_indices = @transform_1, window_bounds = array<i64: 1, 10, 10, 32>}, {pipeline_mode = #tpu.pipeline_mode<synchronous>, transform_indices = @transform_2, window_bounds = array<i64: 3, 3, 32>}, {pipeline_mode = #tpu.pipeline_mode<synchronous>, transform_indices = @transform_3, window_bounds = array<i64: 1, 1, 32>}, {transform_indices = @transform_4, window_bounds = array<i64: 1, 8, 8, 32>}]} {
    %cst = arith.constant 0.000000e+00 : f32
    %0 = vector.broadcast %cst : f32 to vector<8x8x32xf32>
    %c0 = arith.constant 0 : index
    %c0_0 = arith.constant 0 : index
    %c0_1 = arith.constant 0 : index
    %c0_2 = arith.constant 0 : index
    %1 = vector.load %arg1[%c0, %c0_0, %c0_1, %c0_2] : memref<1x10x10x32xf32, #tpu.memory_space<vmem>>, vector<1x8x8x32xf32>
    %2 = vector.shape_cast %1 : vector<1x8x8x32xf32> to vector<8x8x32xf32>
    %c0_3 = arith.constant 0 : index
    %c0_4 = arith.constant 0 : index
    %c0_5 = arith.constant 0 : index
    %3 = vector.load %arg3[%c0_3, %c0_4, %c0_5] : memref<3x3x32xf32, #tpu.memory_space<vmem>>, vector<1x1x32xf32>
    %4 = vector.broadcast %3 : vector<1x1x32xf32> to vector<8x8x32xf32>
    %5 = arith.mulf %2, %4 : vector<8x8x32xf32>
    %6 = arith.addf %0, %5 : vector<8x8x32xf32>
    %c0_6 = arith.constant 0 : index
    %c0_7 = arith.constant 0 : index
    %c1 = arith.constant 1 : index
    %c0_8 = arith.constant 0 : index
    %7 = vector.load %arg1[%c0_6, %c0_7, %c1, %c0_8] : memref<1x10x10x32xf32, #tpu.memory_space<vmem>>, vector<1x8x8x32xf32>
    %8 = vector.shape_cast %7 : vector<1x8x8x32xf32> to vector<8x8x32xf32>
    %c0_9 = arith.constant 0 : index
    %c1_10 = arith.constant 1 : index
    %c0_11 = arith.constant 0 : index
    %9 = vector.load %arg3[%c0_9, %c1_10, %c0_11] : memref<3x3x32xf32, #tpu.memory_space<vmem>>, vector<1x1x32xf32>
    %10 = vector.broadcast %9 : vector<1x1x32xf32> to vector<8x8x32xf32>
    %11 = arith.mulf %8, %10 : vector<8x8x32xf32>
    %12 = arith.addf %6, %11 : vector<8x8x32xf32>
    %c0_12 = arith.constant 0 : index
    %c0_13 = arith.constant 0 : index
    %c2 = arith.constant 2 : index
    %c0_14 = arith.constant 0 : index
    %13 = vector.load %arg1[%c0_12, %c0_13, %c2, %c0_14] : memref<1x10x10x32xf32, #tpu.memory_space<vmem>>, vector<1x8x8x32xf32>
    %14 = vector.shape_cast %13 : vector<1x8x8x32xf32> to vector<8x8x32xf32>
    %c0_15 = arith.constant 0 : index
    %c2_16 = arith.constant 2 : index
    %c0_17 = arith.constant 0 : index
    %15 = vector.load %arg3[%c0_15, %c2_16, %c0_17] : memref<3x3x32xf32, #tpu.memory_space<vmem>>, vector<1x1x32xf32>
    %16 = vector.broadcast %15 : vector<1x1x32xf32> to vector<8x8x32xf32>
    %17 = arith.mulf %14, %16 : vector<8x8x32xf32>
    %18 = arith.addf %12, %17 : vector<8x8x32xf32>
    %c0_18 = arith.constant 0 : index
    %c1_19 = arith.constant 1 : index
    %c0_20 = arith.constant 0 : index
    %c0_21 = arith.constant 0 : index
    %19 = vector.load %arg1[%c0_18, %c1_19, %c0_20, %c0_21] : memref<1x10x10x32xf32, #tpu.memory_space<vmem>>, vector<1x8x8x32xf32>
    %20 = vector.shape_cast %19 : vector<1x8x8x32xf32> to vector<8x8x32xf32>
    %c1_22 = arith.constant 1 : index
    %c0_23 = arith.constant 0 : index
    %c0_24 = arith.constant 0 : index
    %21 = vector.load %arg3[%c1_22, %c0_23, %c0_24] : memref<3x3x32xf32, #tpu.memory_space<vmem>>, vector<1x1x32xf32>
    %22 = vector.broadcast %21 : vector<1x1x32xf32> to vector<8x8x32xf32>
    %23 = arith.mulf %20, %22 : vector<8x8x32xf32>
    %24 = arith.addf %18, %23 : vector<8x8x32xf32>
    %c0_25 = arith.constant 0 : index
    %c1_26 = arith.constant 1 : index
    %c1_27 = arith.constant 1 : index
    %c0_28 = arith.constant 0 : index
    %25 = vector.load %arg1[%c0_25, %c1_26, %c1_27, %c0_28] : memref<1x10x10x32xf32, #tpu.memory_space<vmem>>, vector<1x8x8x32xf32>
    %26 = vector.shape_cast %25 : vector<1x8x8x32xf32> to vector<8x8x32xf32>
    %c1_29 = arith.constant 1 : index
    %c1_30 = arith.constant 1 : index
    %c0_31 = arith.constant 0 : index
    %27 = vector.load %arg3[%c1_29, %c1_30, %c0_31] : memref<3x3x32xf32, #tpu.memory_space<vmem>>, vector<1x1x32xf32>
    %28 = vector.broadcast %27 : vector<1x1x32xf32> to vector<8x8x32xf32>
    %29 = arith.mulf %26, %28 : vector<8x8x32xf32>
    %30 = arith.addf %24, %29 : vector<8x8x32xf32>
    %c0_32 = arith.constant 0 : index
    %c1_33 = arith.constant 1 : index
    %c2_34 = arith.constant 2 : index
    %c0_35 = arith.constant 0 : index
    %31 = vector.load %arg1[%c0_32, %c1_33, %c2_34, %c0_35] : memref<1x10x10x32xf32, #tpu.memory_space<vmem>>, vector<1x8x8x32xf32>
    %32 = vector.shape_cast %31 : vector<1x8x8x32xf32> to vector<8x8x32xf32>
    %c1_36 = arith.constant 1 : index
    %c2_37 = arith.constant 2 : index
    %c0_38 = arith.constant 0 : index
    %33 = vector.load %arg3[%c1_36, %c2_37, %c0_38] : memref<3x3x32xf32, #tpu.memory_space<vmem>>, vector<1x1x32xf32>
    %34 = vector.broadcast %33 : vector<1x1x32xf32> to vector<8x8x32xf32>
    %35 = arith.mulf %32, %34 : vector<8x8x32xf32>
    %36 = arith.addf %30, %35 : vector<8x8x32xf32>
    %c0_39 = arith.constant 0 : index
    %c2_40 = arith.constant 2 : index
    %c0_41 = arith.constant 0 : index
    %c0_42 = arith.constant 0 : index
    %37 = vector.load %arg1[%c0_39, %c2_40, %c0_41, %c0_42] : memref<1x10x10x32xf32, #tpu.memory_space<vmem>>, vector<1x8x8x32xf32>
    %38 = vector.shape_cast %37 : vector<1x8x8x32xf32> to vector<8x8x32xf32>
    %c2_43 = arith.constant 2 : index
    %c0_44 = arith.constant 0 : index
    %c0_45 = arith.constant 0 : index
    %39 = vector.load %arg3[%c2_43, %c0_44, %c0_45] : memref<3x3x32xf32, #tpu.memory_space<vmem>>, vector<1x1x32xf32>
    %40 = vector.broadcast %39 : vector<1x1x32xf32> to vector<8x8x32xf32>
    %41 = arith.mulf %38, %40 : vector<8x8x32xf32>
    %42 = arith.addf %36, %41 : vector<8x8x32xf32>
    %c0_46 = arith.constant 0 : index
    %c2_47 = arith.constant 2 : index
    %c1_48 = arith.constant 1 : index
    %c0_49 = arith.constant 0 : index
    %43 = vector.load %arg1[%c0_46, %c2_47, %c1_48, %c0_49] : memref<1x10x10x32xf32, #tpu.memory_space<vmem>>, vector<1x8x8x32xf32>
    %44 = vector.shape_cast %43 : vector<1x8x8x32xf32> to vector<8x8x32xf32>
    %c2_50 = arith.constant 2 : index
    %c1_51 = arith.constant 1 : index
    %c0_52 = arith.constant 0 : index
    %45 = vector.load %arg3[%c2_50, %c1_51, %c0_52] : memref<3x3x32xf32, #tpu.memory_space<vmem>>, vector<1x1x32xf32>
    %46 = vector.broadcast %45 : vector<1x1x32xf32> to vector<8x8x32xf32>
    %47 = arith.mulf %44, %46 : vector<8x8x32xf32>
    %48 = arith.addf %42, %47 : vector<8x8x32xf32>
    %c0_53 = arith.constant 0 : index
    %c2_54 = arith.constant 2 : index
    %c2_55 = arith.constant 2 : index
    %c0_56 = arith.constant 0 : index
    %49 = vector.load %arg1[%c0_53, %c2_54, %c2_55, %c0_56] : memref<1x10x10x32xf32, #tpu.memory_space<vmem>>, vector<1x8x8x32xf32>
    %50 = vector.shape_cast %49 : vector<1x8x8x32xf32> to vector<8x8x32xf32>
    %c2_57 = arith.constant 2 : index
    %c2_58 = arith.constant 2 : index
    %c0_59 = arith.constant 0 : index
    %51 = vector.load %arg3[%c2_57, %c2_58, %c0_59] : memref<3x3x32xf32, #tpu.memory_space<vmem>>, vector<1x1x32xf32>
    %52 = vector.broadcast %51 : vector<1x1x32xf32> to vector<8x8x32xf32>
    %53 = arith.mulf %50, %52 : vector<8x8x32xf32>
    %54 = arith.addf %48, %53 : vector<8x8x32xf32>
    %c0_60 = arith.constant 0 : index
    %c0_61 = arith.constant 0 : index
    %c0_62 = arith.constant 0 : index
    %55 = vector.load %arg4[%c0_60, %c0_61, %c0_62] : memref<1x1x32xf32, #tpu.memory_space<vmem>>, vector<1x1x32xf32>
    %56 = vector.broadcast %55 : vector<1x1x32xf32> to vector<8x8x32xf32>
    %57 = arith.addf %54, %56 : vector<8x8x32xf32>
    %58 = arith.negf %57 : vector<8x8x32xf32>
    %59 = math.exp %58 : vector<8x8x32xf32>
    %cst_63 = arith.constant 1.000000e+00 : f32
    %60 = vector.broadcast %cst_63 : f32 to vector<8x8x32xf32>
    %61 = arith.addf %60, %59 : vector<8x8x32xf32>
    %62 = arith.divf %60, %61 : vector<8x8x32xf32>
    %63 = arith.mulf %57, %62 : vector<8x8x32xf32>
    %cst_64 = arith.constant 0.000000e+00 : f32
    %64 = vector.broadcast %cst_64 : f32 to vector<8x8x32xf32>
    %c0_65 = arith.constant 0 : index
    %c0_66 = arith.constant 0 : index
    %c0_67 = arith.constant 0 : index
    %c0_68 = arith.constant 0 : index
    %65 = vector.load %arg2[%c0_65, %c0_66, %c0_67, %c0_68] : memref<1x10x10x32xf32, #tpu.memory_space<vmem>>, vector<1x8x8x32xf32>
    %66 = vector.shape_cast %65 : vector<1x8x8x32xf32> to vector<8x8x32xf32>
    %c0_69 = arith.constant 0 : index
    %c0_70 = arith.constant 0 : index
    %c0_71 = arith.constant 0 : index
    %67 = vector.load %arg3[%c0_69, %c0_70, %c0_71] : memref<3x3x32xf32, #tpu.memory_space<vmem>>, vector<1x1x32xf32>
    %68 = vector.broadcast %67 : vector<1x1x32xf32> to vector<8x8x32xf32>
    %69 = arith.mulf %66, %68 : vector<8x8x32xf32>
    %70 = arith.addf %64, %69 : vector<8x8x32xf32>
    %c0_72 = arith.constant 0 : index
    %c0_73 = arith.constant 0 : index
    %c1_74 = arith.constant 1 : index
    %c0_75 = arith.constant 0 : index
    %71 = vector.load %arg2[%c0_72, %c0_73, %c1_74, %c0_75] : memref<1x10x10x32xf32, #tpu.memory_space<vmem>>, vector<1x8x8x32xf32>
    %72 = vector.shape_cast %71 : vector<1x8x8x32xf32> to vector<8x8x32xf32>
    %c0_76 = arith.constant 0 : index
    %c1_77 = arith.constant 1 : index
    %c0_78 = arith.constant 0 : index
    %73 = vector.load %arg3[%c0_76, %c1_77, %c0_78] : memref<3x3x32xf32, #tpu.memory_space<vmem>>, vector<1x1x32xf32>
    %74 = vector.broadcast %73 : vector<1x1x32xf32> to vector<8x8x32xf32>
    %75 = arith.mulf %72, %74 : vector<8x8x32xf32>
    %76 = arith.addf %70, %75 : vector<8x8x32xf32>
    %c0_79 = arith.constant 0 : index
    %c0_80 = arith.constant 0 : index
    %c2_81 = arith.constant 2 : index
    %c0_82 = arith.constant 0 : index
    %77 = vector.load %arg2[%c0_79, %c0_80, %c2_81, %c0_82] : memref<1x10x10x32xf32, #tpu.memory_space<vmem>>, vector<1x8x8x32xf32>
    %78 = vector.shape_cast %77 : vector<1x8x8x32xf32> to vector<8x8x32xf32>
    %c0_83 = arith.constant 0 : index
    %c2_84 = arith.constant 2 : index
    %c0_85 = arith.constant 0 : index
    %79 = vector.load %arg3[%c0_83, %c2_84, %c0_85] : memref<3x3x32xf32, #tpu.memory_space<vmem>>, vector<1x1x32xf32>
    %80 = vector.broadcast %79 : vector<1x1x32xf32> to vector<8x8x32xf32>
    %81 = arith.mulf %78, %80 : vector<8x8x32xf32>
    %82 = arith.addf %76, %81 : vector<8x8x32xf32>
    %c0_86 = arith.constant 0 : index
    %c1_87 = arith.constant 1 : index
    %c0_88 = arith.constant 0 : index
    %c0_89 = arith.constant 0 : index
    %83 = vector.load %arg2[%c0_86, %c1_87, %c0_88, %c0_89] : memref<1x10x10x32xf32, #tpu.memory_space<vmem>>, vector<1x8x8x32xf32>
    %84 = vector.shape_cast %83 : vector<1x8x8x32xf32> to vector<8x8x32xf32>
    %c1_90 = arith.constant 1 : index
    %c0_91 = arith.constant 0 : index
    %c0_92 = arith.constant 0 : index
    %85 = vector.load %arg3[%c1_90, %c0_91, %c0_92] : memref<3x3x32xf32, #tpu.memory_space<vmem>>, vector<1x1x32xf32>
    %86 = vector.broadcast %85 : vector<1x1x32xf32> to vector<8x8x32xf32>
    %87 = arith.mulf %84, %86 : vector<8x8x32xf32>
    %88 = arith.addf %82, %87 : vector<8x8x32xf32>
    %c0_93 = arith.constant 0 : index
    %c1_94 = arith.constant 1 : index
    %c1_95 = arith.constant 1 : index
    %c0_96 = arith.constant 0 : index
    %89 = vector.load %arg2[%c0_93, %c1_94, %c1_95, %c0_96] : memref<1x10x10x32xf32, #tpu.memory_space<vmem>>, vector<1x8x8x32xf32>
    %90 = vector.shape_cast %89 : vector<1x8x8x32xf32> to vector<8x8x32xf32>
    %c1_97 = arith.constant 1 : index
    %c1_98 = arith.constant 1 : index
    %c0_99 = arith.constant 0 : index
    %91 = vector.load %arg3[%c1_97, %c1_98, %c0_99] : memref<3x3x32xf32, #tpu.memory_space<vmem>>, vector<1x1x32xf32>
    %92 = vector.broadcast %91 : vector<1x1x32xf32> to vector<8x8x32xf32>
    %93 = arith.mulf %90, %92 : vector<8x8x32xf32>
    %94 = arith.addf %88, %93 : vector<8x8x32xf32>
    %c0_100 = arith.constant 0 : index
    %c1_101 = arith.constant 1 : index
    %c2_102 = arith.constant 2 : index
    %c0_103 = arith.constant 0 : index
    %95 = vector.load %arg2[%c0_100, %c1_101, %c2_102, %c0_103] : memref<1x10x10x32xf32, #tpu.memory_space<vmem>>, vector<1x8x8x32xf32>
    %96 = vector.shape_cast %95 : vector<1x8x8x32xf32> to vector<8x8x32xf32>
    %c1_104 = arith.constant 1 : index
    %c2_105 = arith.constant 2 : index
    %c0_106 = arith.constant 0 : index
    %97 = vector.load %arg3[%c1_104, %c2_105, %c0_106] : memref<3x3x32xf32, #tpu.memory_space<vmem>>, vector<1x1x32xf32>
    %98 = vector.broadcast %97 : vector<1x1x32xf32> to vector<8x8x32xf32>
    %99 = arith.mulf %96, %98 : vector<8x8x32xf32>
    %100 = arith.addf %94, %99 : vector<8x8x32xf32>
    %c0_107 = arith.constant 0 : index
    %c2_108 = arith.constant 2 : index
    %c0_109 = arith.constant 0 : index
    %c0_110 = arith.constant 0 : index
    %101 = vector.load %arg2[%c0_107, %c2_108, %c0_109, %c0_110] : memref<1x10x10x32xf32, #tpu.memory_space<vmem>>, vector<1x8x8x32xf32>
    %102 = vector.shape_cast %101 : vector<1x8x8x32xf32> to vector<8x8x32xf32>
    %c2_111 = arith.constant 2 : index
    %c0_112 = arith.constant 0 : index
    %c0_113 = arith.constant 0 : index
    %103 = vector.load %arg3[%c2_111, %c0_112, %c0_113] : memref<3x3x32xf32, #tpu.memory_space<vmem>>, vector<1x1x32xf32>
    %104 = vector.broadcast %103 : vector<1x1x32xf32> to vector<8x8x32xf32>
    %105 = arith.mulf %102, %104 : vector<8x8x32xf32>
    %106 = arith.addf %100, %105 : vector<8x8x32xf32>
    %c0_114 = arith.constant 0 : index
    %c2_115 = arith.constant 2 : index
    %c1_116 = arith.constant 1 : index
    %c0_117 = arith.constant 0 : index
    %107 = vector.load %arg2[%c0_114, %c2_115, %c1_116, %c0_117] : memref<1x10x10x32xf32, #tpu.memory_space<vmem>>, vector<1x8x8x32xf32>
    %108 = vector.shape_cast %107 : vector<1x8x8x32xf32> to vector<8x8x32xf32>
    %c2_118 = arith.constant 2 : index
    %c1_119 = arith.constant 1 : index
    %c0_120 = arith.constant 0 : index
    %109 = vector.load %arg3[%c2_118, %c1_119, %c0_120] : memref<3x3x32xf32, #tpu.memory_space<vmem>>, vector<1x1x32xf32>
    %110 = vector.broadcast %109 : vector<1x1x32xf32> to vector<8x8x32xf32>
    %111 = arith.mulf %108, %110 : vector<8x8x32xf32>
    %112 = arith.addf %106, %111 : vector<8x8x32xf32>
    %c0_121 = arith.constant 0 : index
    %c2_122 = arith.constant 2 : index
    %c2_123 = arith.constant 2 : index
    %c0_124 = arith.constant 0 : index
    %113 = vector.load %arg2[%c0_121, %c2_122, %c2_123, %c0_124] : memref<1x10x10x32xf32, #tpu.memory_space<vmem>>, vector<1x8x8x32xf32>
    %114 = vector.shape_cast %113 : vector<1x8x8x32xf32> to vector<8x8x32xf32>
    %c2_125 = arith.constant 2 : index
    %c2_126 = arith.constant 2 : index
    %c0_127 = arith.constant 0 : index
    %115 = vector.load %arg3[%c2_125, %c2_126, %c0_127] : memref<3x3x32xf32, #tpu.memory_space<vmem>>, vector<1x1x32xf32>
    %116 = vector.broadcast %115 : vector<1x1x32xf32> to vector<8x8x32xf32>
    %117 = arith.mulf %114, %116 : vector<8x8x32xf32>
    %118 = arith.addf %112, %117 : vector<8x8x32xf32>
    %c0_128 = arith.constant 0 : index
    %c0_129 = arith.constant 0 : index
    %c0_130 = arith.constant 0 : index
    %119 = vector.load %arg4[%c0_128, %c0_129, %c0_130] : memref<1x1x32xf32, #tpu.memory_space<vmem>>, vector<1x1x32xf32>
    %120 = vector.broadcast %119 : vector<1x1x32xf32> to vector<8x8x32xf32>
    %121 = arith.addf %118, %120 : vector<8x8x32xf32>
    %122 = arith.negf %121 : vector<8x8x32xf32>
    %123 = math.exp %122 : vector<8x8x32xf32>
    %cst_131 = arith.constant 1.000000e+00 : f32
    %124 = vector.broadcast %cst_131 : f32 to vector<8x8x32xf32>
    %125 = arith.addf %124, %123 : vector<8x8x32xf32>
    %126 = arith.divf %124, %125 : vector<8x8x32xf32>
    %127 = arith.mulf %121, %126 : vector<8x8x32xf32>
    %128 = arith.mulf %63, %127 : vector<8x8x32xf32>
    %129 = arith.addf %128, %63 : vector<8x8x32xf32>
    %130 = arith.addf %129, %127 : vector<8x8x32xf32>
    %c0_132 = arith.constant 0 : index
    %c0_133 = arith.constant 0 : index
    %c0_134 = arith.constant 0 : index
    %c0_135 = arith.constant 0 : index
    %131 = vector.load %arg5[%c0_132, %c0_133, %c0_134, %c0_135] : memref<1x8x8x32xf32, #tpu.memory_space<vmem>>, vector<1x8x8x32xf32>
    %132 = vector.shape_cast %131 : vector<1x8x8x32xf32> to vector<8x8x32xf32>
    %133 = vector.shape_cast %130 : vector<8x8x32xf32> to vector<1x8x8x32xf32>
    tpu.vector_store %arg5[%c0_132, %c0_133, %c0_134, %c0_135], %133 {strides = array<i32>} : memref<1x8x8x32xf32, #tpu.memory_space<vmem>>, vector<1x8x8x32xf32>,
    return
  }
  func.func @transform_0(%arg0: i32) -> (i32, i32, i32, i32) {
    %c0_i32 = arith.constant 0 : i32
    %c0_i32_0 = arith.constant 0 : i32
    %c0_i32_1 = arith.constant 0 : i32
    %c0_i32_2 = arith.constant 0 : i32
    return %arg0, %c0_i32, %c0_i32_0, %c0_i32_1 : i32, i32, i32, i32
  }
  func.func @transform_1(%arg0: i32) -> (i32, i32, i32, i32) {
    %c0_i32 = arith.constant 0 : i32
    %c0_i32_0 = arith.constant 0 : i32
    %c0_i32_1 = arith.constant 0 : i32
    %c0_i32_2 = arith.constant 0 : i32
    return %arg0, %c0_i32, %c0_i32_0, %c0_i32_1 : i32, i32, i32, i32
  }
  func.func @transform_2(%arg0: i32) -> (i32, i32, i32) {
    %c0_i32 = arith.constant 0 : i32
    %c0_i32_0 = arith.constant 0 : i32
    %c0_i32_1 = arith.constant 0 : i32
    %c0_i32_2 = arith.constant 0 : i32
    return %c0_i32, %c0_i32_0, %c0_i32_1 : i32, i32, i32
  }
  func.func @transform_3(%arg0: i32) -> (i32, i32, i32) {
    %c0_i32 = arith.constant 0 : i32
    %c0_i32_0 = arith.constant 0 : i32
    %c0_i32_1 = arith.constant 0 : i32
    %c0_i32_2 = arith.constant 0 : i32
    return %c0_i32, %c0_i32_0, %c0_i32_1 : i32, i32, i32
  }
  func.func @transform_4(%arg0: i32) -> (i32, i32, i32, i32) {
    %c0_i32 = arith.constant 0 : i32
    %c0_i32_0 = arith.constant 0 : i32
    %c0_i32_1 = arith.constant 0 : i32
    %c0_i32_2 = arith.constant 0 : i32
    return %arg0, %c0_i32, %c0_i32_0, %c0_i32_1 : i32, i32, i32, i32
  }
}

module attributes {stable_mosaic.version = 11 : i64} {
  func.func @_ssm_scan_kernel(%arg0: i32, %arg1: i32, %arg2: memref<1x1x16x32xf32, #tpu.memory_space<vmem>>, %arg3: memref<1x64x32xf32, #tpu.memory_space<vmem>>, %arg4: memref<1x1x32xf32, #tpu.memory_space<vmem>>, %arg5: memref<1x16x32xf32, #tpu.memory_space<vmem>>, %arg6: memref<1x1x32xf32, #tpu.memory_space<vmem>>, %arg7: memref<1x1x16x32xf32, #tpu.memory_space<vmem>>, %arg8: memref<16x16x32xf32, #tpu.memory_space<vmem>>, %arg9: memref<16x16x32xf32, #tpu.memory_space<vmem>>, %arg10: memref<16x16x32xf32, #tpu.memory_space<vmem>>) attributes {dimension_semantics = [#tpu.dimension_semantics<parallel>, #tpu.dimension_semantics<parallel>], iteration_bounds = array<i64: 4, 2>, scalar_prefetch = 0 : i64, scratch_operands = 3 : i64, tpu.core_type = #tpu.core_type<tc>, window_params = [{transform_indices = @transform_0, window_bounds = array<i64: 1, 1, 16, 32>}, {transform_indices = @transform_1, window_bounds = array<i64: 1, 64, 32>}, {transform_indices = @transform_2, window_bounds = array<i64: 1, 1, 32>}, {transform_indices = @transform_3, window_bounds = array<i64: 1, 16, 32>}, {transform_indices = @transform_4, window_bounds = array<i64: 1, 1, 32>}, {transform_indices = @transform_5, window_bounds = array<i64: 1, 1, 16, 32>}]} {
    %c0 = arith.constant 0 : index
    %c0_0 = arith.constant 0 : index
    %c0_1 = arith.constant 0 : index
    %0 = vector.load %arg5[%c0, %c0_0, %c0_1] : memref<1x16x32xf32, #tpu.memory_space<vmem>>, vector<1x16x32xf32>
    %1 = vector.shape_cast %0 : vector<1x16x32xf32> to vector<16x32xf32>
    %c0_2 = arith.constant 0 : index
    %c0_3 = arith.constant 0 : index
    %c0_4 = arith.constant 0 : index
    %2 = vector.load %arg6[%c0_2, %c0_3, %c0_4] : memref<1x1x32xf32, #tpu.memory_space<vmem>>, vector<1x1x32xf32>
    %3 = vector.shape_cast %2 : vector<1x1x32xf32> to vector<1x32xf32>
    %c0_5 = arith.constant 0 : index
    %c0_6 = arith.constant 0 : index
    %c0_7 = arith.constant 0 : index
    %4 = vector.load %arg4[%c0_5, %c0_6, %c0_7] : memref<1x1x32xf32, #tpu.memory_space<vmem>>, vector<1x1x32xf32>
    %5 = vector.shape_cast %4 : vector<1x1x32xf32> to vector<1x32xf32>
    %c0_8 = arith.constant 0 : index
    %c0_9 = arith.constant 0 : index
    %c0_10 = arith.constant 0 : index
    %6 = vector.load %arg3[%c0_8, %c0_9, %c0_10] : memref<1x64x32xf32, #tpu.memory_space<vmem>>, vector<1x64x32xf32>
    %7 = vector.shape_cast %6 : vector<1x64x32xf32> to vector<64x32xf32>
    %cst = arith.constant 0.000000e+00 : f32
    %8 = vector.broadcast %cst : f32 to vector<16x32xf32>
    %c0_i32 = arith.constant 0 : i32
    %c16_i32 = arith.constant 16 : i32
    %9 = arith.muli %c0_i32, %c16_i32 : i32
    %10 = tpu.assume_multiple %9, 16 : i32
    %c0_11 = arith.constant 0 : index
    %c0_12 = arith.constant 0 : index
    %11 = arith.index_cast %10 : i32 to index
    %c0_13 = arith.constant 0 : index
    %12 = vector.load %arg2[%c0_11, %c0_12, %11, %c0_13] : memref<1x1x16x32xf32, #tpu.memory_space<vmem>>, vector<1x1x16x32xf32>
    %13 = vector.shape_cast %12 : vector<1x1x16x32xf32> to vector<16x32xf32>
    %cst_14 = arith.constant dense<0.000000e+00> : vector<16x64xf32>
    %14 = tpu.matmul %13, %7, %cst_14 {dimension_numbers = #tpu.dot_dimension_numbers<[1], [1], [0], [0], [0, 0, 1, 0], [], []>} : vector<16x32xf32>, vector<64x32xf32>, vector<16x64xf32> -> vector<16x64xf32>
    %15 = vector.extract_strided_slice %14 {offsets = [0, 0], sizes = [16, 32], strides = [1, 1]} : vector<16x64xf32> to vector<16x32xf32>
    %16 = vector.broadcast %5 : vector<1x32xf32> to vector<16x32xf32>
    %17 = arith.addf %15, %16 : vector<16x32xf32>
    %cst_15 = arith.constant 0.000000e+00 : f32
    %18 = vector.broadcast %cst_15 : f32 to vector<16x32xf32>
    %19 = arith.maximumf %17, %18 : vector<16x32xf32>
    %20 = vector.broadcast %cst_15 : f32 to vector<16x32xf32>
    %21 = arith.subf %17, %20 : vector<16x32xf32>
    %22 = arith.cmpf one, %21, %21 : vector<16x32xf32>
    %23 = vector.broadcast %cst_15 : f32 to vector<16x32xf32>
    %24 = arith.addf %17, %23 : vector<16x32xf32>
    %25 = math.absf %21 : vector<16x32xf32>
    %cst_16 = arith.constant 0.000000e+00 : f32
    %26 = vector.broadcast %cst_16 : f32 to vector<16x32xf32>
    %27 = arith.subf %26, %25 : vector<16x32xf32>
    %28 = math.exp %27 : vector<16x32xf32>
    %29 = math.log1p %28 : vector<16x32xf32>
    %30 = arith.addf %19, %29 : vector<16x32xf32>
    %31 = arith.select %22, %24, %30 : vector<16x32xi1>, vector<16x32xf32>
    %32 = vector.extract_strided_slice %14 {offsets = [0, 32], sizes = [16, 16], strides = [1, 1]} : vector<16x64xf32> to vector<16x16xf32>
    %33 = vector.extract_strided_slice %14 {offsets = [0, 48], sizes = [16, 16], strides = [1, 1]} : vector<16x64xf32> to vector<16x16xf32>
    %34 = vector.shape_cast %31 : vector<16x32xf32> to vector<16x1x32xf32>
    %35 = vector.shape_cast %1 : vector<16x32xf32> to vector<1x16x32xf32>
    %36 = vector.broadcast %34 : vector<16x1x32xf32> to vector<16x16x32xf32>
    %37 = vector.broadcast %35 : vector<1x16x32xf32> to vector<16x16x32xf32>
    %38 = arith.mulf %36, %37 : vector<16x16x32xf32>
    %39 = math.exp %38 : vector<16x16x32xf32>
    %c0_17 = arith.constant 0 : index
    %c0_18 = arith.constant 0 : index
    %c0_19 = arith.constant 0 : index
    %40 = vector.load %arg8[%c0_17, %c0_18, %c0_19] : memref<16x16x32xf32, #tpu.memory_space<vmem>>, vector<16x16x32xf32>
    tpu.vector_store %arg8[%c0_17, %c0_18, %c0_19], %39 {strides = array<i32>} : memref<16x16x32xf32, #tpu.memory_space<vmem>>, vector<16x16x32xf32>,
    %41 = vector.shape_cast %32 : vector<16x16xf32> to vector<16x16x1xf32>
    %42 = arith.mulf %31, %13 : vector<16x32xf32>
    %43 = vector.shape_cast %42 : vector<16x32xf32> to vector<16x1x32xf32>
    %44 = vector.broadcast %41 : vector<16x16x1xf32> to vector<16x16x32xf32>
    %45 = vector.broadcast %43 : vector<16x1x32xf32> to vector<16x16x32xf32>
    %46 = arith.mulf %44, %45 : vector<16x16x32xf32>
    %c0_20 = arith.constant 0 : index
    %c0_21 = arith.constant 0 : index
    %c0_22 = arith.constant 0 : index
    %47 = vector.load %arg9[%c0_20, %c0_21, %c0_22] : memref<16x16x32xf32, #tpu.memory_space<vmem>>, vector<16x16x32xf32>
    tpu.vector_store %arg9[%c0_20, %c0_21, %c0_22], %46 {strides = array<i32>} : memref<16x16x32xf32, #tpu.memory_space<vmem>>, vector<16x16x32xf32>,
    %c0_i32_23 = arith.constant 0 : i32
    %c2_i32 = arith.constant 2 : i32
    %48 = arith.addi %c0_i32_23, %c2_i32 : i32
    %c1_i32 = arith.constant 1 : i32
    %49 = scf.for %arg11 = %c0_i32_23 to %48 step %c1_i32 iter_args(%arg12 = %8) -> (vector<16x32xf32>)  : i32 {
      %c8_i32 = arith.constant 8 : i32
      %62 = arith.muli %arg11, %c8_i32 : i32
      %63 = tpu.assume_multiple %62, 8 : i32
      %c0_i32_33 = arith.constant 0 : i32
      %64 = arith.addi %63, %c0_i32_33 : i32
      %65 = arith.index_cast %64 : i32 to index
      %c0_34 = arith.constant 0 : index
      %c0_35 = arith.constant 0 : index
      %66 = vector.load %arg8[%65, %c0_34, %c0_35] : memref<16x16x32xf32, #tpu.memory_space<vmem>>, vector<1x16x32xf32>
      %67 = vector.shape_cast %66 : vector<1x16x32xf32> to vector<16x32xf32>
      %68 = arith.mulf %67, %arg12 : vector<16x32xf32>
      %69 = arith.index_cast %64 : i32 to index
      %c0_36 = arith.constant 0 : index
      %c0_37 = arith.constant 0 : index
      %70 = vector.load %arg9[%69, %c0_36, %c0_37] : memref<16x16x32xf32, #tpu.memory_space<vmem>>, vector<1x16x32xf32>
      %71 = vector.shape_cast %70 : vector<1x16x32xf32> to vector<16x32xf32>
      %72 = arith.addf %68, %71 : vector<16x32xf32>
      %73 = arith.index_cast %64 : i32 to index
      %c0_38 = arith.constant 0 : index
      %c0_39 = arith.constant 0 : index
      %74 = vector.load %arg10[%73, %c0_38, %c0_39] : memref<16x16x32xf32, #tpu.memory_space<vmem>>, vector<1x16x32xf32>
      %75 = vector.shape_cast %74 : vector<1x16x32xf32> to vector<16x32xf32>
      %76 = vector.shape_cast %72 : vector<16x32xf32> to vector<1x16x32xf32>
      tpu.vector_store %arg10[%73, %c0_38, %c0_39], %76 {strides = array<i32>} : memref<16x16x32xf32, #tpu.memory_space<vmem>>, vector<1x16x32xf32>,
      %c1_i32_40 = arith.constant 1 : i32
      %77 = arith.addi %63, %c1_i32_40 : i32
      %78 = arith.index_cast %77 : i32 to index
      %c0_41 = arith.constant 0 : index
      %c0_42 = arith.constant 0 : index
      %79 = vector.load %arg8[%78, %c0_41, %c0_42] : memref<16x16x32xf32, #tpu.memory_space<vmem>>, vector<1x16x32xf32>
      %80 = vector.shape_cast %79 : vector<1x16x32xf32> to vector<16x32xf32>
      %81 = arith.mulf %80, %72 : vector<16x32xf32>
      %82 = arith.index_cast %77 : i32 to index
      %c0_43 = arith.constant 0 : index
      %c0_44 = arith.constant 0 : index
      %83 = vector.load %arg9[%82, %c0_43, %c0_44] : memref<16x16x32xf32, #tpu.memory_space<vmem>>, vector<1x16x32xf32>
      %84 = vector.shape_cast %83 : vector<1x16x32xf32> to vector<16x32xf32>
      %85 = arith.addf %81, %84 : vector<16x32xf32>
      %86 = arith.index_cast %77 : i32 to index
      %c0_45 = arith.constant 0 : index
      %c0_46 = arith.constant 0 : index
      %87 = vector.load %arg10[%86, %c0_45, %c0_46] : memref<16x16x32xf32, #tpu.memory_space<vmem>>, vector<1x16x32xf32>
      %88 = vector.shape_cast %87 : vector<1x16x32xf32> to vector<16x32xf32>
      %89 = vector.shape_cast %85 : vector<16x32xf32> to vector<1x16x32xf32>
      tpu.vector_store %arg10[%86, %c0_45, %c0_46], %89 {strides = array<i32>} : memref<16x16x32xf32, #tpu.memory_space<vmem>>, vector<1x16x32xf32>,
      %c2_i32_47 = arith.constant 2 : i32
      %90 = arith.addi %63, %c2_i32_47 : i32
      %91 = arith.index_cast %90 : i32 to index
      %c0_48 = arith.constant 0 : index
      %c0_49 = arith.constant 0 : index
      %92 = vector.load %arg8[%91, %c0_48, %c0_49] : memref<16x16x32xf32, #tpu.memory_space<vmem>>, vector<1x16x32xf32>
      %93 = vector.shape_cast %92 : vector<1x16x32xf32> to vector<16x32xf32>
      %94 = arith.mulf %93, %85 : vector<16x32xf32>
      %95 = arith.index_cast %90 : i32 to index
      %c0_50 = arith.constant 0 : index
      %c0_51 = arith.constant 0 : index
      %96 = vector.load %arg9[%95, %c0_50, %c0_51] : memref<16x16x32xf32, #tpu.memory_space<vmem>>, vector<1x16x32xf32>
      %97 = vector.shape_cast %96 : vector<1x16x32xf32> to vector<16x32xf32>
      %98 = arith.addf %94, %97 : vector<16x32xf32>
      %99 = arith.index_cast %90 : i32 to index
      %c0_52 = arith.constant 0 : index
      %c0_53 = arith.constant 0 : index
      %100 = vector.load %arg10[%99, %c0_52, %c0_53] : memref<16x16x32xf32, #tpu.memory_space<vmem>>, vector<1x16x32xf32>
      %101 = vector.shape_cast %100 : vector<1x16x32xf32> to vector<16x32xf32>
      %102 = vector.shape_cast %98 : vector<16x32xf32> to vector<1x16x32xf32>
      tpu.vector_store %arg10[%99, %c0_52, %c0_53], %102 {strides = array<i32>} : memref<16x16x32xf32, #tpu.memory_space<vmem>>, vector<1x16x32xf32>,
      %c3_i32 = arith.constant 3 : i32
      %103 = arith.addi %63, %c3_i32 : i32
      %104 = arith.index_cast %103 : i32 to index
      %c0_54 = arith.constant 0 : index
      %c0_55 = arith.constant 0 : index
      %105 = vector.load %arg8[%104, %c0_54, %c0_55] : memref<16x16x32xf32, #tpu.memory_space<vmem>>, vector<1x16x32xf32>
      %106 = vector.shape_cast %105 : vector<1x16x32xf32> to vector<16x32xf32>
      %107 = arith.mulf %106, %98 : vector<16x32xf32>
      %108 = arith.index_cast %103 : i32 to index
      %c0_56 = arith.constant 0 : index
      %c0_57 = arith.constant 0 : index
      %109 = vector.load %arg9[%108, %c0_56, %c0_57] : memref<16x16x32xf32, #tpu.memory_space<vmem>>, vector<1x16x32xf32>
      %110 = vector.shape_cast %109 : vector<1x16x32xf32> to vector<16x32xf32>
      %111 = arith.addf %107, %110 : vector<16x32xf32>
      %112 = arith.index_cast %103 : i32 to index
      %c0_58 = arith.constant 0 : index
      %c0_59 = arith.constant 0 : index
      %113 = vector.load %arg10[%112, %c0_58, %c0_59] : memref<16x16x32xf32, #tpu.memory_space<vmem>>, vector<1x16x32xf32>
      %114 = vector.shape_cast %113 : vector<1x16x32xf32> to vector<16x32xf32>
      %115 = vector.shape_cast %111 : vector<16x32xf32> to vector<1x16x32xf32>
      tpu.vector_store %arg10[%112, %c0_58, %c0_59], %115 {strides = array<i32>} : memref<16x16x32xf32, #tpu.memory_space<vmem>>, vector<1x16x32xf32>,
      %c4_i32 = arith.constant 4 : i32
      %116 = arith.addi %63, %c4_i32 : i32
      %117 = arith.index_cast %116 : i32 to index
      %c0_60 = arith.constant 0 : index
      %c0_61 = arith.constant 0 : index
      %118 = vector.load %arg8[%117, %c0_60, %c0_61] : memref<16x16x32xf32, #tpu.memory_space<vmem>>, vector<1x16x32xf32>
      %119 = vector.shape_cast %118 : vector<1x16x32xf32> to vector<16x32xf32>
      %120 = arith.mulf %119, %111 : vector<16x32xf32>
      %121 = arith.index_cast %116 : i32 to index
      %c0_62 = arith.constant 0 : index
      %c0_63 = arith.constant 0 : index
      %122 = vector.load %arg9[%121, %c0_62, %c0_63] : memref<16x16x32xf32, #tpu.memory_space<vmem>>, vector<1x16x32xf32>
      %123 = vector.shape_cast %122 : vector<1x16x32xf32> to vector<16x32xf32>
      %124 = arith.addf %120, %123 : vector<16x32xf32>
      %125 = arith.index_cast %116 : i32 to index
      %c0_64 = arith.constant 0 : index
      %c0_65 = arith.constant 0 : index
      %126 = vector.load %arg10[%125, %c0_64, %c0_65] : memref<16x16x32xf32, #tpu.memory_space<vmem>>, vector<1x16x32xf32>
      %127 = vector.shape_cast %126 : vector<1x16x32xf32> to vector<16x32xf32>
      %128 = vector.shape_cast %124 : vector<16x32xf32> to vector<1x16x32xf32>
      tpu.vector_store %arg10[%125, %c0_64, %c0_65], %128 {strides = array<i32>} : memref<16x16x32xf32, #tpu.memory_space<vmem>>, vector<1x16x32xf32>,
      %c5_i32 = arith.constant 5 : i32
      %129 = arith.addi %63, %c5_i32 : i32
      %130 = arith.index_cast %129 : i32 to index
      %c0_66 = arith.constant 0 : index
      %c0_67 = arith.constant 0 : index
      %131 = vector.load %arg8[%130, %c0_66, %c0_67] : memref<16x16x32xf32, #tpu.memory_space<vmem>>, vector<1x16x32xf32>
      %132 = vector.shape_cast %131 : vector<1x16x32xf32> to vector<16x32xf32>
      %133 = arith.mulf %132, %124 : vector<16x32xf32>
      %134 = arith.index_cast %129 : i32 to index
      %c0_68 = arith.constant 0 : index
      %c0_69 = arith.constant 0 : index
      %135 = vector.load %arg9[%134, %c0_68, %c0_69] : memref<16x16x32xf32, #tpu.memory_space<vmem>>, vector<1x16x32xf32>
      %136 = vector.shape_cast %135 : vector<1x16x32xf32> to vector<16x32xf32>
      %137 = arith.addf %133, %136 : vector<16x32xf32>
      %138 = arith.index_cast %129 : i32 to index
      %c0_70 = arith.constant 0 : index
      %c0_71 = arith.constant 0 : index
      %139 = vector.load %arg10[%138, %c0_70, %c0_71] : memref<16x16x32xf32, #tpu.memory_space<vmem>>, vector<1x16x32xf32>
      %140 = vector.shape_cast %139 : vector<1x16x32xf32> to vector<16x32xf32>
      %141 = vector.shape_cast %137 : vector<16x32xf32> to vector<1x16x32xf32>
      tpu.vector_store %arg10[%138, %c0_70, %c0_71], %141 {strides = array<i32>} : memref<16x16x32xf32, #tpu.memory_space<vmem>>, vector<1x16x32xf32>,
      %c6_i32 = arith.constant 6 : i32
      %142 = arith.addi %63, %c6_i32 : i32
      %143 = arith.index_cast %142 : i32 to index
      %c0_72 = arith.constant 0 : index
      %c0_73 = arith.constant 0 : index
      %144 = vector.load %arg8[%143, %c0_72, %c0_73] : memref<16x16x32xf32, #tpu.memory_space<vmem>>, vector<1x16x32xf32>
      %145 = vector.shape_cast %144 : vector<1x16x32xf32> to vector<16x32xf32>
      %146 = arith.mulf %145, %137 : vector<16x32xf32>
      %147 = arith.index_cast %142 : i32 to index
      %c0_74 = arith.constant 0 : index
      %c0_75 = arith.constant 0 : index
      %148 = vector.load %arg9[%147, %c0_74, %c0_75] : memref<16x16x32xf32, #tpu.memory_space<vmem>>, vector<1x16x32xf32>
      %149 = vector.shape_cast %148 : vector<1x16x32xf32> to vector<16x32xf32>
      %150 = arith.addf %146, %149 : vector<16x32xf32>
      %151 = arith.index_cast %142 : i32 to index
      %c0_76 = arith.constant 0 : index
      %c0_77 = arith.constant 0 : index
      %152 = vector.load %arg10[%151, %c0_76, %c0_77] : memref<16x16x32xf32, #tpu.memory_space<vmem>>, vector<1x16x32xf32>
      %153 = vector.shape_cast %152 : vector<1x16x32xf32> to vector<16x32xf32>
      %154 = vector.shape_cast %150 : vector<16x32xf32> to vector<1x16x32xf32>
      tpu.vector_store %arg10[%151, %c0_76, %c0_77], %154 {strides = array<i32>} : memref<16x16x32xf32, #tpu.memory_space<vmem>>, vector<1x16x32xf32>,
      %c7_i32 = arith.constant 7 : i32
      %155 = arith.addi %63, %c7_i32 : i32
      %156 = arith.index_cast %155 : i32 to index
      %c0_78 = arith.constant 0 : index
      %c0_79 = arith.constant 0 : index
      %157 = vector.load %arg8[%156, %c0_78, %c0_79] : memref<16x16x32xf32, #tpu.memory_space<vmem>>, vector<1x16x32xf32>
      %158 = vector.shape_cast %157 : vector<1x16x32xf32> to vector<16x32xf32>
      %159 = arith.mulf %158, %150 : vector<16x32xf32>
      %160 = arith.index_cast %155 : i32 to index
      %c0_80 = arith.constant 0 : index
      %c0_81 = arith.constant 0 : index
      %161 = vector.load %arg9[%160, %c0_80, %c0_81] : memref<16x16x32xf32, #tpu.memory_space<vmem>>, vector<1x16x32xf32>
      %162 = vector.shape_cast %161 : vector<1x16x32xf32> to vector<16x32xf32>
      %163 = arith.addf %159, %162 : vector<16x32xf32>
      %164 = arith.index_cast %155 : i32 to index
      %c0_82 = arith.constant 0 : index
      %c0_83 = arith.constant 0 : index
      %165 = vector.load %arg10[%164, %c0_82, %c0_83] : memref<16x16x32xf32, #tpu.memory_space<vmem>>, vector<1x16x32xf32>
      %166 = vector.shape_cast %165 : vector<1x16x32xf32> to vector<16x32xf32>
      %167 = vector.shape_cast %163 : vector<16x32xf32> to vector<1x16x32xf32>
      tpu.vector_store %arg10[%164, %c0_82, %c0_83], %167 {strides = array<i32>} : memref<16x16x32xf32, #tpu.memory_space<vmem>>, vector<1x16x32xf32>,
      scf.yield %163 : vector<16x32xf32>
    }
    %c2_i32_24 = arith.constant 2 : i32
    %50 = vector.shape_cast %33 : vector<16x16xf32> to vector<16x16x1xf32>
    %c0_25 = arith.constant 0 : index
    %c0_26 = arith.constant 0 : index
    %c0_27 = arith.constant 0 : index
    %51 = vector.load %arg10[%c0_25, %c0_26, %c0_27] : memref<16x16x32xf32, #tpu.memory_space<vmem>>, vector<16x16x32xf32>
    %52 = vector.broadcast %50 : vector<16x16x1xf32> to vector<16x16x32xf32>
    %53 = arith.mulf %52, %51 : vector<16x16x32xf32>
    %cst_28 = arith.constant dense<0.000000e+00> : vector<16x32xf32>
    %54 = vector.multi_reduction <add>, %53, %cst_28 [1] : vector<16x16x32xf32> to vector<16x32xf32>
    %55 = vector.broadcast %3 : vector<1x32xf32> to vector<16x32xf32>
    %56 = arith.mulf %55, %13 : vector<16x32xf32>
    %57 = arith.addf %54, %56 : vector<16x32xf32>
    %c0_29 = arith.constant 0 : index
    %c0_30 = arith.constant 0 : index
    %58 = arith.index_cast %10 : i32 to index
    %c0_31 = arith.constant 0 : index
    %59 = vector.load %arg7[%c0_29, %c0_30, %58, %c0_31] : memref<1x1x16x32xf32, #tpu.memory_space<vmem>>, vector<1x1x16x32xf32>
    %60 = vector.shape_cast %59 : vector<1x1x16x32xf32> to vector<16x32xf32>
    %61 = vector.shape_cast %57 : vector<16x32xf32> to vector<1x1x16x32xf32>
    tpu.vector_store %arg7[%c0_29, %c0_30, %58, %c0_31], %61 {strides = array<i32>} : memref<1x1x16x32xf32, #tpu.memory_space<vmem>>, vector<1x1x16x32xf32>,
    %c1_i32_32 = arith.constant 1 : i32
    return
  }
  func.func @transform_0(%arg0: i32, %arg1: i32) -> (i32, i32, i32, i32) {
    %c0_i32 = arith.constant 0 : i32
    %c0_i32_0 = arith.constant 0 : i32
    %c0_i32_1 = arith.constant 0 : i32
    return %arg1, %arg0, %c0_i32, %c0_i32_0 : i32, i32, i32, i32
  }
  func.func @transform_1(%arg0: i32, %arg1: i32) -> (i32, i32, i32) {
    %c0_i32 = arith.constant 0 : i32
    %c0_i32_0 = arith.constant 0 : i32
    %c0_i32_1 = arith.constant 0 : i32
    return %arg0, %c0_i32, %c0_i32_0 : i32, i32, i32
  }
  func.func @transform_2(%arg0: i32, %arg1: i32) -> (i32, i32, i32) {
    %c0_i32 = arith.constant 0 : i32
    %c0_i32_0 = arith.constant 0 : i32
    %c0_i32_1 = arith.constant 0 : i32
    return %arg0, %c0_i32, %c0_i32_0 : i32, i32, i32
  }
  func.func @transform_3(%arg0: i32, %arg1: i32) -> (i32, i32, i32) {
    %c0_i32 = arith.constant 0 : i32
    %c0_i32_0 = arith.constant 0 : i32
    %c0_i32_1 = arith.constant 0 : i32
    return %arg0, %c0_i32, %c0_i32_0 : i32, i32, i32
  }
  func.func @transform_4(%arg0: i32, %arg1: i32) -> (i32, i32, i32) {
    %c0_i32 = arith.constant 0 : i32
    %c0_i32_0 = arith.constant 0 : i32
    %c0_i32_1 = arith.constant 0 : i32
    return %arg0, %c0_i32, %c0_i32_0 : i32, i32, i32
  }
  func.func @transform_5(%arg0: i32, %arg1: i32) -> (i32, i32, i32, i32) {
    %c0_i32 = arith.constant 0 : i32
    %c0_i32_0 = arith.constant 0 : i32
    %c0_i32_1 = arith.constant 0 : i32
    return %arg1, %arg0, %c0_i32, %c0_i32_0 : i32, i32, i32, i32
  }
}

module attributes {stable_mosaic.version = 11 : i64} {
  func.func @_ln_gate_outproj_kernel(%arg0: i32, %arg1: memref<128x32xf32, #tpu.memory_space<vmem>>, %arg2: memref<128x32xf32, #tpu.memory_space<vmem>>, %arg3: memref<1x32xf32, #tpu.memory_space<vmem>>, %arg4: memref<1x32xf32, #tpu.memory_space<vmem>>, %arg5: memref<128x32xf32, #tpu.memory_space<vmem>>, %arg6: memref<128x128xf32, #tpu.memory_space<vmem>>) attributes {dimension_semantics = [#tpu.dimension_semantics<parallel>], iteration_bounds = array<i64: 1>, scalar_prefetch = 0 : i64, scratch_operands = 0 : i64, tpu.core_type = #tpu.core_type<tc>, window_params = [{transform_indices = @transform_0, window_bounds = array<i64: 128, 32>}, {transform_indices = @transform_1, window_bounds = array<i64: 128, 32>}, {pipeline_mode = #tpu.pipeline_mode<synchronous>, transform_indices = @transform_2, window_bounds = array<i64: 1, 32>}, {pipeline_mode = #tpu.pipeline_mode<synchronous>, transform_indices = @transform_3, window_bounds = array<i64: 1, 32>}, {pipeline_mode = #tpu.pipeline_mode<synchronous>, transform_indices = @transform_4, window_bounds = array<i64: 128, 32>}, {transform_indices = @transform_5, window_bounds = array<i64: 128, 128>}]} {
    %c0 = arith.constant 0 : index
    %c0_0 = arith.constant 0 : index
    %0 = vector.load %arg1[%c0, %c0_0] : memref<128x32xf32, #tpu.memory_space<vmem>>, vector<128x32xf32>
    %cst = arith.constant dense<0.000000e+00> : vector<128xf32>
    %1 = vector.multi_reduction <add>, %0, %cst [1] : vector<128x32xf32> to vector<128xf32>
    %2 = vector.shape_cast %1 : vector<128xf32> to vector<128x1xf32>
    %cst_1 = arith.constant 3.200000e+01 : f32
    %3 = vector.broadcast %cst_1 : f32 to vector<128x1xf32>
    %4 = arith.divf %2, %3 : vector<128x1xf32>
    %5 = vector.broadcast %4 : vector<128x1xf32> to vector<128x32xf32>
    %6 = arith.subf %0, %5 : vector<128x32xf32>
    %7 = arith.mulf %6, %6 : vector<128x32xf32>
    %cst_2 = arith.constant dense<0.000000e+00> : vector<128xf32>
    %8 = vector.multi_reduction <add>, %7, %cst_2 [1] : vector<128x32xf32> to vector<128xf32>
    %9 = vector.shape_cast %8 : vector<128xf32> to vector<128x1xf32>
    %cst_3 = arith.constant 3.200000e+01 : f32
    %10 = vector.broadcast %cst_3 : f32 to vector<128x1xf32>
    %11 = arith.divf %9, %10 : vector<128x1xf32>
    %12 = vector.broadcast %4 : vector<128x1xf32> to vector<128x32xf32>
    %13 = arith.subf %0, %12 : vector<128x32xf32>
    %cst_4 = arith.constant 9.99999974E-6 : f32
    %14 = vector.broadcast %cst_4 : f32 to vector<128x1xf32>
    %15 = arith.addf %11, %14 : vector<128x1xf32>
    %16 = math.rsqrt %15 : vector<128x1xf32>
    %17 = vector.broadcast %16 : vector<128x1xf32> to vector<128x32xf32>
    %18 = arith.mulf %13, %17 : vector<128x32xf32>
    %c0_5 = arith.constant 0 : index
    %c0_6 = arith.constant 0 : index
    %19 = vector.load %arg3[%c0_5, %c0_6] : memref<1x32xf32, #tpu.memory_space<vmem>>, vector<1x32xf32>
    %20 = vector.broadcast %19 : vector<1x32xf32> to vector<128x32xf32>
    %21 = arith.mulf %18, %20 : vector<128x32xf32>
    %c0_7 = arith.constant 0 : index
    %c0_8 = arith.constant 0 : index
    %22 = vector.load %arg4[%c0_7, %c0_8] : memref<1x32xf32, #tpu.memory_space<vmem>>, vector<1x32xf32>
    %23 = vector.broadcast %22 : vector<1x32xf32> to vector<128x32xf32>
    %24 = arith.addf %21, %23 : vector<128x32xf32>
    %c0_9 = arith.constant 0 : index
    %c0_10 = arith.constant 0 : index
    %25 = vector.load %arg2[%c0_9, %c0_10] : memref<128x32xf32, #tpu.memory_space<vmem>>, vector<128x32xf32>
    %26 = arith.negf %25 : vector<128x32xf32>
    %27 = math.exp %26 : vector<128x32xf32>
    %cst_11 = arith.constant 1.000000e+00 : f32
    %28 = vector.broadcast %cst_11 : f32 to vector<128x32xf32>
    %29 = arith.addf %28, %27 : vector<128x32xf32>
    %30 = arith.divf %28, %29 : vector<128x32xf32>
    %31 = arith.mulf %25, %30 : vector<128x32xf32>
    %32 = arith.negf %31 : vector<128x32xf32>
    %33 = math.exp %32 : vector<128x32xf32>
    %cst_12 = arith.constant 1.000000e+00 : f32
    %34 = vector.broadcast %cst_12 : f32 to vector<128x32xf32>
    %35 = arith.addf %34, %33 : vector<128x32xf32>
    %36 = arith.divf %34, %35 : vector<128x32xf32>
    %37 = arith.mulf %31, %36 : vector<128x32xf32>
    %38 = arith.addf %31, %37 : vector<128x32xf32>
    %39 = arith.mulf %24, %38 : vector<128x32xf32>
    %c0_13 = arith.constant 0 : index
    %c0_14 = arith.constant 0 : index
    %40 = vector.load %arg5[%c0_13, %c0_14] : memref<128x32xf32, #tpu.memory_space<vmem>>, vector<128x32xf32>
    %cst_15 = arith.constant dense<0.000000e+00> : vector<128x128xf32>
    %41 = tpu.matmul %39, %40, %cst_15 {dimension_numbers = #tpu.dot_dimension_numbers<[1], [1], [0], [0], [0, 0, 1, 0], [], []>} : vector<128x32xf32>, vector<128x32xf32>, vector<128x128xf32> -> vector<128x128xf32>
    %c0_16 = arith.constant 0 : index
    %c0_17 = arith.constant 0 : index
    %42 = vector.load %arg6[%c0_16, %c0_17] : memref<128x128xf32, #tpu.memory_space<vmem>>, vector<128x128xf32>
    tpu.vector_store %arg6[%c0_16, %c0_17], %41 {strides = array<i32>} : memref<128x128xf32, #tpu.memory_space<vmem>>, vector<128x128xf32>,
    return
  }
  func.func @transform_0(%arg0: i32) -> (i32, i32) {
    %c0_i32 = arith.constant 0 : i32
    %c0_i32_0 = arith.constant 0 : i32
    return %arg0, %c0_i32 : i32, i32
  }
  func.func @transform_1(%arg0: i32) -> (i32, i32) {
    %c0_i32 = arith.constant 0 : i32
    %c0_i32_0 = arith.constant 0 : i32
    return %arg0, %c0_i32 : i32, i32
  }
  func.func @transform_2(%arg0: i32) -> (i32, i32) {
    %c0_i32 = arith.constant 0 : i32
    %c0_i32_0 = arith.constant 0 : i32
    %c0_i32_1 = arith.constant 0 : i32
    return %c0_i32, %c0_i32_0 : i32, i32
  }
  func.func @transform_3(%arg0: i32) -> (i32, i32) {
    %c0_i32 = arith.constant 0 : i32
    %c0_i32_0 = arith.constant 0 : i32
    %c0_i32_1 = arith.constant 0 : i32
    return %c0_i32, %c0_i32_0 : i32, i32
  }
  func.func @transform_4(%arg0: i32) -> (i32, i32) {
    %c0_i32 = arith.constant 0 : i32
    %c0_i32_0 = arith.constant 0 : i32
    %c0_i32_1 = arith.constant 0 : i32
    return %c0_i32, %c0_i32_0 : i32, i32
  }
  func.func @transform_5(%arg0: i32) -> (i32, i32) {
    %c0_i32 = arith.constant 0 : i32
    %c0_i32_0 = arith.constant 0 : i32
    return %arg0, %c0_i32 : i32, i32
  }
}

</mosaic_0001>

<bundles_post_ra>
// kernel: ss2d_cross_forward.6
= control target key start
LH: loop header
LB: loop body
LE: loop exit
PB: predicated region body
PF: predicated region fallthrough
CT: control target
= control target key end

     0   :  { %vm35_vm0 = vcmask 130048   ;;  %vm253_vm1 = vcmask 523264   ;;  %s577_s1 = inlined_call_operand.vmem [shape: f32[64,16], index: 1, kind: input, shape index: {}]   ;;  %s578_s0 = inlined_call_operand.vmem [shape: f32[128,16], index: 0, kind: input, shape index: {}]   ;;  %s579_s2 = inlined_call_operand.vmem [shape: f32[128,64], index: 2, kind: output, shape index: {}]  }
   0x1   :  { %v34_v0 = vld [vmem:[%s577_s1 + $0x38] sm:$0xff]  ;;  %v33_v1 = vld [vmem:[%s577_s1 + $0x30] sm:$0xff]  ;;  %v11_v2 = vld [vmem:[%s578_s0] sm:$0xff] }
   0x2   :  { %322 = vmatprep.subr.msk.mxu0 %vm35_vm0, %v34_v0  ;;  %362 = vmatprep.subr.msk.mxu1 %vm35_vm0, %v34_v0  ;;  %v19_v3 = vld [vmem:[%s578_s0 + $0x40] sm:$0xff]  ;;  %v32_v4 = vld [vmem:[%s577_s1 + $0x28] sm:$0xff]  ;;  %v30_v6 = vld [vmem:[%s577_s1 + $0x18] sm:$0xff] }
   0x3   :  { %323 = vmatpush3.xpose.msk.msra.mxu0 %vm35_vm0, %v34_v0  ;;  %370 = vmatpush3.xpose.msk.msra.mxu1 %vm35_vm0, %v34_v0  ;;  %v31_v5 = vld [vmem:[%s577_s1 + $0x20] sm:$0xff]  ;;  %v29_v7 = vld [vmem:[%s577_s1 + $0x10] sm:$0xff]  ;;  %v28_v8 = vld [vmem:[%s577_s1 + $0x8] sm:$0xff] }
   0x4   :  { %324 = vmatprep.subr.msk.mxu0 %vm35_vm0, %v33_v1  ;;  %363 = vmatprep.subr.msk.mxu1 %vm35_vm0, %v33_v1  ;;  %v27_v9 = vld [vmem:[%s577_s1] sm:$0xff]  ;;  %v12_v10 = vld [vmem:[%s578_s0 + $0x8] sm:$0xff]  ;;  %v13_v12 = vld [vmem:[%s578_s0 + $0x10] sm:$0xff] }
   0x5   :  { %338 = vmatprep.mubr.msk.f32.mxu0 %vm35_vm0, %v11_v2  ;;  %350 = vmatprep.mubr.msk.f32.mxu1 %vm35_vm0, %v19_v3  ;;  %v20_v11 = vld [vmem:[%s578_s0 + $0x48] sm:$0xff]  ;;  %v21_v13 = vld [vmem:[%s578_s0 + $0x50] sm:$0xff]  ;;  %v14_v14 = vld [vmem:[%s578_s0 + $0x18] sm:$0xff] }
   0x6   :  { %v22_v15 = vld [vmem:[%s578_s0 + $0x58] sm:$0xff]  ;;  %v15_v16 = vld [vmem:[%s578_s0 + $0x20] sm:$0xff]  ;;  %v16_v18 = vld [vmem:[%s578_s0 + $0x28] sm:$0xff] }
   0x7   :  { %325 = vmatpush3.xpose.msk.msra.mxu0 %vm35_vm0, %v33_v1  ;;  %371 = vmatpush3.xpose.msk.msra.mxu1 %vm35_vm0, %v33_v1  ;;  %v23_v17 = vld [vmem:[%s578_s0 + $0x60] sm:$0xff]  ;;  %v24_v19 = vld [vmem:[%s578_s0 + $0x68] sm:$0xff]  ;;  %v17_v20 = vld [vmem:[%s578_s0 + $0x30] sm:$0xff] }
   0x8   :  { %326 = vmatprep.subr.msk.mxu0 %vm35_vm0, %v32_v4  ;;  %364 = vmatprep.subr.msk.mxu1 %vm35_vm0, %v32_v4  ;;  %v25_v21 = vld [vmem:[%s578_s0 + $0x70] sm:$0xff]  ;;  %v18_v22 = vld [vmem:[%s578_s0 + $0x38] sm:$0xff] }
   0x9   :  { %v26_v23 = vld [vmem:[%s578_s0 + $0x78] sm:$0xff] }
   0xb   :  { %327 = vmatpush3.xpose.msk.msra.mxu0 %vm35_vm0, %v32_v4  ;;  %372 = vmatpush3.xpose.msk.msra.mxu1 %vm35_vm0, %v32_v4 }
   0xc   :  { %328 = vmatprep.subr.msk.mxu0 %vm35_vm0, %v31_v5  ;;  %365 = vmatprep.subr.msk.mxu1 %vm35_vm0, %v31_v5 }
   0xf   :  { %329 = vmatpush3.xpose.msk.msra.mxu0 %vm35_vm0, %v31_v5  ;;  %373 = vmatpush3.xpose.msk.msra.mxu1 %vm35_vm0, %v31_v5 }
  0x10   :  { %330 = vmatprep.subr.msk.mxu0 %vm35_vm0, %v30_v6  ;;  %366 = vmatprep.subr.msk.mxu1 %vm35_vm0, %v30_v6 }
  0x13   :  { %331 = vmatpush3.xpose.msk.msra.mxu0 %vm35_vm0, %v30_v6  ;;  %374 = vmatpush3.xpose.msk.msra.mxu1 %vm35_vm0, %v30_v6 }
  0x14   :  { %332 = vmatprep.subr.msk.mxu0 %vm35_vm0, %v29_v7  ;;  %367 = vmatprep.subr.msk.mxu1 %vm35_vm0, %v29_v7 }
  0x17   :  { %333 = vmatpush3.xpose.msk.msra.mxu0 %vm35_vm0, %v29_v7  ;;  %375 = vmatpush3.xpose.msk.msra.mxu1 %vm35_vm0, %v29_v7 }
  0x18   :  { %334 = vmatprep.subr.msk.mxu0 %vm35_vm0, %v28_v8  ;;  %368 = vmatprep.subr.msk.mxu1 %vm35_vm0, %v28_v8 }
  0x1b   :  { %335 = vmatpush3.xpose.msk.msra.mxu0 %vm35_vm0, %v28_v8  ;;  %376 = vmatpush3.xpose.msk.msra.mxu1 %vm35_vm0, %v28_v8 }
  0x1c   :  { %336 = vmatprep.subr.msk.mxu0 %vm35_vm0, %v27_v9  ;;  %369 = vmatprep.subr.msk.mxu1 %vm35_vm0, %v27_v9 }
  0x1f   :  { %337 = vmatpush3.xpose.msk.msra.mxu0 %vm35_vm0, %v27_v9  ;;  %377 = vmatpush3.xpose.msk.msra.mxu1 %vm35_vm0, %v27_v9 }
  0x22   :  { %339 = vmatmul.mubr.msk.f32.vlgmr.msra.gmra.mxu0 %vm35_vm0, %v12_v10  ;;  %351 = vmatmul.mubr.msk.f32.vlgmr.msra.gmra.mxu1 %vm35_vm0, %v20_v11 }
  0x23   :  { %341 = vmatprep.mubr.msk.f32.mxu0 %vm35_vm0, %v13_v12  ;;  %353 = vmatprep.mubr.msk.f32.mxu1 %vm35_vm0, %v21_v13 }
  0x26   :  { %342 = vmatmul.mubr.msk.f32.gmra.mxu0 %vm35_vm0, %v14_v14  ;;  %354 = vmatmul.mubr.msk.f32.gmra.mxu1 %vm35_vm0, %v22_v15 }
  0x27   :  { %344 = vmatprep.mubr.msk.f32.mxu0 %vm35_vm0, %v15_v16  ;;  %356 = vmatprep.mubr.msk.f32.mxu1 %vm35_vm0, %v23_v17 }
  0x2a   :  { %345 = vmatmul.mubr.msk.f32.gmra.mxu0 %vm35_vm0, %v16_v18  ;;  %357 = vmatmul.mubr.msk.f32.gmra.mxu1 %vm35_vm0, %v24_v19 }
  0x2b   :  { %347 = vmatprep.mubr.msk.f32.mxu0 %vm35_vm0, %v17_v20  ;;  %359 = vmatprep.mubr.msk.f32.mxu1 %vm35_vm0, %v25_v21 }
  0x2e   :  { %348 = vmatmul.mubr.msk.f32.gmra.mxu0 %vm35_vm0, %v18_v22  ;;  %360 = vmatmul.mubr.msk.f32.gmra.mxu1 %vm35_vm0, %v26_v23 }
  0xe2   :  { %v340_v24 = vpop.f32.mrf.mxu0  ;;  %v352_v25 = vpop.f32.mrf.mxu1 }
  0xe3   :  { %255 = vst.msk [vmem:[%s579_s2 + $0x8] sm:$0xff] %vm253_vm1, %v340_v24  ;;  %263 = vst.msk [vmem:[%s579_s2 + $0x48] sm:$0xff] %vm253_vm1, %v352_v25 }
  0xe4   :  { %v174_v26 = vpop.f32.mrf.mxu0  ;;  %v214_v27 = vpop.f32.mrf.mxu1 }
  0xe5   :  { %254 = vst.msk [vmem:[%s579_s2] sm:$0xff] %vm253_vm1, %v174_v26  ;;  %262 = vst.msk [vmem:[%s579_s2 + $0x40] sm:$0xff] %vm253_vm1, %v214_v27 }
  0xe6   :  { %v343_v28 = vpop.f32.mrf.mxu0  ;;  %v355_v29 = vpop.f32.mrf.mxu1 }
  0xe7   :  { %257 = vst.msk [vmem:[%s579_s2 + $0x18] sm:$0xff] %vm253_vm1, %v343_v28  ;;  %265 = vst.msk [vmem:[%s579_s2 + $0x58] sm:$0xff] %vm253_vm1, %v355_v29 }
  0xe8   :  { %v184_v30 = vpop.f32.mrf.mxu0  ;;  %v224_v31 = vpop.f32.mrf.mxu1 }
  0xe9   :  { %256 = vst.msk [vmem:[%s579_s2 + $0x10] sm:$0xff] %vm253_vm1, %v184_v30  ;;  %264 = vst.msk [vmem:[%s579_s2 + $0x50] sm:$0xff] %vm253_vm1, %v224_v31 }
  0xea   :  { %v346_v32 = vpop.f32.mrf.mxu0  ;;  %v358_v33 = vpop.f32.mrf.mxu1 }
  0xeb   :  { %259 = vst.msk [vmem:[%s579_s2 + $0x28] sm:$0xff] %vm253_vm1, %v346_v32  ;;  %267 = vst.msk [vmem:[%s579_s2 + $0x68] sm:$0xff] %vm253_vm1, %v358_v33 }
  0xec   :  { %v194_v34 = vpop.f32.mrf.mxu0  ;;  %v234_v35 = vpop.f32.mrf.mxu1 }
  0xed   :  { %258 = vst.msk [vmem:[%s579_s2 + $0x20] sm:$0xff] %vm253_vm1, %v194_v34  ;;  %266 = vst.msk [vmem:[%s579_s2 + $0x60] sm:$0xff] %vm253_vm1, %v234_v35 }
  0xee   :  { %v349_v36 = vpop.f32.mrf.mxu0  ;;  %v361_v37 = vpop.f32.mrf.mxu1 }
  0xef   :  { %261 = vst.msk [vmem:[%s579_s2 + $0x38] sm:$0xff] %vm253_vm1, %v349_v36  ;;  %269 = vst.msk [vmem:[%s579_s2 + $0x78] sm:$0xff] %vm253_vm1, %v361_v37 }
  0xf0   :  { %v204_v38 = vpop.f32.mrf.mxu0  ;;  %v244_v39 = vpop.f32.mrf.mxu1 }
  0xf1   :  { %260 = vst.msk [vmem:[%s579_s2 + $0x30] sm:$0xff] %vm253_vm1, %v204_v38  ;;  %268 = vst.msk [vmem:[%s579_s2 + $0x70] sm:$0xff] %vm253_vm1, %v244_v39 }

// kernel: ss2d_cross_forward.5
= control target key start
LH: loop header
LB: loop body
LE: loop exit
PB: predicated region body
PF: predicated region fallthrough
CT: control target
= control target key end

     0   :  { %7 = vsyncpa [#allocation3], 0  ;;  %s418_s9 = smov [#allocation2]   ;;  %s575_s0 = inlined_call_operand.hbm [shape: f32[128,16], index: 0, kind: input, shape index: {}]   ;;  %s576_s1 = inlined_call_operand.vmem [shape: f32[64,16], index: 1, kind: input, shape index: {}]   ;;  %s577_s2 = inlined_call_operand.vmem [shape: f32[128,64], index: 2, kind: output, shape index: {}]  }
   0x1   :  { %s13_s10 = sshll.u32 %s418_s9, 4  ;;  %s14_s10 = int_to_ptr.vmem [resolvable:$true] %s13_s10 }
   0x2   :  { %s404_s11 = scalar_lea.vmem %s14_s10, 2048  ;;  %p409_p1 = scmp.lt.s32.totalorder %s14_s10, %s14_s10 }
   0x3   :  { %p405_p0 = scmp.ne.s32.totalorder %s14_s10, %s404_s11  ;;  %p410_p2 = scmp.lt.s32.totalorder %s404_s11, %s404_s11 }
   0x5   :  { %p411_p3 = por %p410_p2, %p409_p1 }
   0x7   :  { %p412_p4 = pnand %p411_p3, %p405_p0 }
   0x9   :  { %415 = shalt.err (!%p412_p4)
}
   0xa   :  { %s419_s12 = smov 128   ;;  %s420_s13 = smov 8  }
   0xb   :  { %19 = dma.hbm_to_vmem [thread:$0]  %s575_s0, 2048, %s14_s10, [#allocation3], %s419_s12, %s419_s12, %s420_s13  }
   0xc   :  { %416 = dma.done.wait [#allocation3], 2048  }
   0xd   :  { %417 = vsyncadd [#allocation3], 4294965248  ;;  %vm49_vm0 = vcmask 130048   ;;  %v48_v0 = vld [vmem:[%s576_s1 + $0x38] sm:$0xff]  ;;  %v47_v1 = vld [vmem:[%s576_s1 + $0x30] sm:$0xff]  ;;  %vm267_vm1 = vcmask 523264  }
   0xe   :  { %337 = vmatprep.subr.msk.mxu0 %vm49_vm0, %v48_v0  ;;  %377 = vmatprep.subr.msk.mxu1 %vm49_vm0, %v48_v0  ;;  %v25_v2 = vld [vmem:[#allocation2] sm:$0xff]  ;;  %v46_v4 = vld [vmem:[%s576_s1 + $0x28] sm:$0xff]  ;;  %v44_v6 = vld [vmem:[%s576_s1 + $0x18] sm:$0xff] }
   0xf   :  { %338 = vmatpush3.xpose.msk.msra.mxu0 %vm49_vm0, %v48_v0  ;;  %385 = vmatpush3.xpose.msk.msra.mxu1 %vm49_vm0, %v48_v0  ;;  %v33_v3 = vld [vmem:[#allocation2 + $0x40] sm:$0xff]  ;;  %v43_v7 = vld [vmem:[%s576_s1 + $0x10] sm:$0xff]  ;;  %v42_v8 = vld [vmem:[%s576_s1 + $0x8] sm:$0xff] }
  0x10   :  { %339 = vmatprep.subr.msk.mxu0 %vm49_vm0, %v47_v1  ;;  %378 = vmatprep.subr.msk.mxu1 %vm49_vm0, %v47_v1  ;;  %v45_v5 = vld [vmem:[%s576_s1 + $0x20] sm:$0xff]  ;;  %v26_v10 = vld [vmem:[#allocation2 + $0x8] sm:$0xff]  ;;  %v27_v12 = vld [vmem:[#allocation2 + $0x10] sm:$0xff] }
  0x11   :  { %353 = vmatprep.mubr.msk.f32.mxu0 %vm49_vm0, %v25_v2  ;;  %365 = vmatprep.mubr.msk.f32.mxu1 %vm49_vm0, %v33_v3  ;;  %v41_v9 = vld [vmem:[%s576_s1] sm:$0xff]  ;;  %v34_v11 = vld [vmem:[#allocation2 + $0x48] sm:$0xff]  ;;  %v35_v13 = vld [vmem:[#allocation2 + $0x50] sm:$0xff] }
  0x12   :  { %v28_v14 = vld [vmem:[#allocation2 + $0x18] sm:$0xff]  ;;  %v29_v16 = vld [vmem:[#allocation2 + $0x20] sm:$0xff]  ;;  %v30_v18 = vld [vmem:[#allocation2 + $0x28] sm:$0xff] }
  0x13   :  { %340 = vmatpush3.xpose.msk.msra.mxu0 %vm49_vm0, %v47_v1  ;;  %386 = vmatpush3.xpose.msk.msra.mxu1 %vm49_vm0, %v47_v1  ;;  %v36_v15 = vld [vmem:[#allocation2 + $0x58] sm:$0xff]  ;;  %v37_v17 = vld [vmem:[#allocation2 + $0x60] sm:$0xff]  ;;  %v38_v19 = vld [vmem:[#allocation2 + $0x68] sm:$0xff] }
  0x14   :  { %341 = vmatprep.subr.msk.mxu0 %vm49_vm0, %v46_v4  ;;  %379 = vmatprep.subr.msk.mxu1 %vm49_vm0, %v46_v4  ;;  %v31_v20 = vld [vmem:[#allocation2 + $0x30] sm:$0xff]  ;;  %v32_v22 = vld [vmem:[#allocation2 + $0x38] sm:$0xff] }
  0x15   :  { %v39_v21 = vld [vmem:[#allocation2 + $0x70] sm:$0xff]  ;;  %v40_v23 = vld [vmem:[#allocation2 + $0x78] sm:$0xff] }
  0x17   :  { %342 = vmatpush3.xpose.msk.msra.mxu0 %vm49_vm0, %v46_v4  ;;  %387 = vmatpush3.xpose.msk.msra.mxu1 %vm49_vm0, %v46_v4 }
  0x18   :  { %343 = vmatprep.subr.msk.mxu0 %vm49_vm0, %v45_v5  ;;  %380 = vmatprep.subr.msk.mxu1 %vm49_vm0, %v45_v5 }
  0x1b   :  { %344 = vmatpush3.xpose.msk.msra.mxu0 %vm49_vm0, %v45_v5  ;;  %388 = vmatpush3.xpose.msk.msra.mxu1 %vm49_vm0, %v45_v5 }
  0x1c   :  { %345 = vmatprep.subr.msk.mxu0 %vm49_vm0, %v44_v6  ;;  %381 = vmatprep.subr.msk.mxu1 %vm49_vm0, %v44_v6 }
  0x1f   :  { %346 = vmatpush3.xpose.msk.msra.mxu0 %vm49_vm0, %v44_v6  ;;  %389 = vmatpush3.xpose.msk.msra.mxu1 %vm49_vm0, %v44_v6 }
  0x20   :  { %347 = vmatprep.subr.msk.mxu0 %vm49_vm0, %v43_v7  ;;  %382 = vmatprep.subr.msk.mxu1 %vm49_vm0, %v43_v7 }
  0x23   :  { %348 = vmatpush3.xpose.msk.msra.mxu0 %vm49_vm0, %v43_v7  ;;  %390 = vmatpush3.xpose.msk.msra.mxu1 %vm49_vm0, %v43_v7 }
  0x24   :  { %349 = vmatprep.subr.msk.mxu0 %vm49_vm0, %v42_v8  ;;  %383 = vmatprep.subr.msk.mxu1 %vm49_vm0, %v42_v8 }
  0x27   :  { %350 = vmatpush3.xpose.msk.msra.mxu0 %vm49_vm0, %v42_v8  ;;  %391 = vmatpush3.xpose.msk.msra.mxu1 %vm49_vm0, %v42_v8 }
  0x28   :  { %351 = vmatprep.subr.msk.mxu0 %vm49_vm0, %v41_v9  ;;  %384 = vmatprep.subr.msk.mxu1 %vm49_vm0, %v41_v9 }
  0x2b   :  { %352 = vmatpush3.xpose.msk.msra.mxu0 %vm49_vm0, %v41_v9  ;;  %392 = vmatpush3.xpose.msk.msra.mxu1 %vm49_vm0, %v41_v9 }
  0x2e   :  { %354 = vmatmul.mubr.msk.f32.vlgmr.msra.gmra.mxu0 %vm49_vm0, %v26_v10  ;;  %366 = vmatmul.mubr.msk.f32.vlgmr.msra.gmra.mxu1 %vm49_vm0, %v34_v11 }
  0x2f   :  { %356 = vmatprep.mubr.msk.f32.mxu0 %vm49_vm0, %v27_v12  ;;  %368 = vmatprep.mubr.msk.f32.mxu1 %vm49_vm0, %v35_v13 }
  0x32   :  { %357 = vmatmul.mubr.msk.f32.gmra.mxu0 %vm49_vm0, %v28_v14  ;;  %369 = vmatmul.mubr.msk.f32.gmra.mxu1 %vm49_vm0, %v36_v15 }
  0x33   :  { %359 = vmatprep.mubr.msk.f32.mxu0 %vm49_vm0, %v29_v16  ;;  %371 = vmatprep.mubr.msk.f32.mxu1 %vm49_vm0, %v37_v17 }
  0x36   :  { %360 = vmatmul.mubr.msk.f32.gmra.mxu0 %vm49_vm0, %v30_v18  ;;  %372 = vmatmul.mubr.msk.f32.gmra.mxu1 %vm49_vm0, %v38_v19 }
  0x37   :  { %362 = vmatprep.mubr.msk.f32.mxu0 %vm49_vm0, %v31_v20  ;;  %374 = vmatprep.mubr.msk.f32.mxu1 %vm49_vm0, %v39_v21 }
  0x3a   :  { %363 = vmatmul.mubr.msk.f32.gmra.mxu0 %vm49_vm0, %v32_v22  ;;  %375 = vmatmul.mubr.msk.f32.gmra.mxu1 %vm49_vm0, %v40_v23 }
  0xee   :  { %v355_v24 = vpop.f32.mrf.mxu0  ;;  %v367_v25 = vpop.f32.mrf.mxu1 }
  0xef   :  { %269 = vst.msk [vmem:[%s577_s2 + $0x8] sm:$0xff] %vm267_vm1, %v355_v24  ;;  %277 = vst.msk [vmem:[%s577_s2 + $0x48] sm:$0xff] %vm267_vm1, %v367_v25 }
  0xf0   :  { %v188_v26 = vpop.f32.mrf.mxu0  ;;  %v228_v27 = vpop.f32.mrf.mxu1 }
  0xf1   :  { %268 = vst.msk [vmem:[%s577_s2] sm:$0xff] %vm267_vm1, %v188_v26  ;;  %276 = vst.msk [vmem:[%s577_s2 + $0x40] sm:$0xff] %vm267_vm1, %v228_v27 }
  0xf2   :  { %v358_v28 = vpop.f32.mrf.mxu0  ;;  %v370_v29 = vpop.f32.mrf.mxu1 }
  0xf3   :  { %271 = vst.msk [vmem:[%s577_s2 + $0x18] sm:$0xff] %vm267_vm1, %v358_v28  ;;  %279 = vst.msk [vmem:[%s577_s2 + $0x58] sm:$0xff] %vm267_vm1, %v370_v29 }
  0xf4   :  { %v198_v30 = vpop.f32.mrf.mxu0  ;;  %v238_v31 = vpop.f32.mrf.mxu1 }
  0xf5   :  { %270 = vst.msk [vmem:[%s577_s2 + $0x10] sm:$0xff] %vm267_vm1, %v198_v30  ;;  %278 = vst.msk [vmem:[%s577_s2 + $0x50] sm:$0xff] %vm267_vm1, %v238_v31 }
  0xf6   :  { %v361_v32 = vpop.f32.mrf.mxu0  ;;  %v373_v33 = vpop.f32.mrf.mxu1 }
  0xf7   :  { %273 = vst.msk [vmem:[%s577_s2 + $0x28] sm:$0xff] %vm267_vm1, %v361_v32  ;;  %281 = vst.msk [vmem:[%s577_s2 + $0x68] sm:$0xff] %vm267_vm1, %v373_v33 }
  0xf8   :  { %v208_v34 = vpop.f32.mrf.mxu0  ;;  %v248_v35 = vpop.f32.mrf.mxu1 }
  0xf9   :  { %272 = vst.msk [vmem:[%s577_s2 + $0x20] sm:$0xff] %vm267_vm1, %v208_v34  ;;  %280 = vst.msk [vmem:[%s577_s2 + $0x60] sm:$0xff] %vm267_vm1, %v248_v35 }
  0xfa   :  { %v364_v36 = vpop.f32.mrf.mxu0  ;;  %v376_v37 = vpop.f32.mrf.mxu1 }
  0xfb   :  { %275 = vst.msk [vmem:[%s577_s2 + $0x38] sm:$0xff] %vm267_vm1, %v364_v36  ;;  %283 = vst.msk [vmem:[%s577_s2 + $0x78] sm:$0xff] %vm267_vm1, %v376_v37 }
  0xfc   :  { %v218_v38 = vpop.f32.mrf.mxu0  ;;  %v258_v39 = vpop.f32.mrf.mxu1 }
  0xfd   :  { %274 = vst.msk [vmem:[%s577_s2 + $0x30] sm:$0xff] %vm267_vm1, %v218_v38  ;;  %282 = vst.msk [vmem:[%s577_s2 + $0x70] sm:$0xff] %vm267_vm1, %v258_v39 }
  0xfe   :  { %288 = vsyncpa [#allocation3], 1 }

// kernel: ss2d_cross_forward.7
= control target key start
LH: loop header
LB: loop body
LE: loop exit
PB: predicated region body
PF: predicated region fallthrough
CT: control target
= control target key end

     0   :  { %s1182_s15 = smov 0   ;;  %s1814_s0 = inlined_call_operand.vmem [shape: f32[2,10,10,32], index: 0, kind: input, shape index: {}]   ;;  %s1815_s1 = inlined_call_operand.vmem [shape: f32[2,10,10,32], index: 1, kind: input, shape index: {}]   ;;  %s1816_s2 = inlined_call_operand.vmem [shape: f32[3,3,32], index: 2, kind: input, shape index: {}]   ;;  %s1817_s3 = inlined_call_operand.vmem [shape: f32[1,1,32], index: 3, kind: input, shape index: {}]   ;;  %s1818_s4 = inlined_call_operand.vmem [shape: f32[2,8,8,32], index: 4, kind: output, shape index: {}]  }
   0x1 LB: > { %s936_s16 = sadd.s32 4294967295, %s1155_s15   ;;  %p940_p0 = scmp.ge.s32.totalorder %s1155_s15, 1  ;;  %s1155_s15 = sphi %s1182_s15, %s14_s15  }
   0x2   : > { %p172_p1 = scmp.lt.s32.totalorder %s1155_s15, 3 }
   0x4   : > { %p173_p2 = pnand %p940_p0, %p172_p1 }
   0x6   : > { %176 = sbr.rel (%p173_p2) target bundleno = 144 (0x90), region = 36 }
   0xb   : > { %p203_p3 = scmp.lt.s32.totalorder %s936_s16, 1  ;;  %v1196_v0 = vld [vmem:[%s1816_s2] ss:$0 sm:$0xff]  ;;  %v1208_v1 = vld [vmem:[%s1816_s2 + $0x1] ss:$0 sm:$0xff]  ;;  %vm860_vm0 = vcmask 261120  }
   0xc   : > { %v1240_v15 = vld [vmem:[%s1816_s2 + $0x2] ss:$0 sm:$0xff]  ;;  %v1291_v37 = vld [vmem:[%s1816_s2 + $0x4] ss:$0 sm:$0xff] }
   0xd   : > { %s1833_s16 = smov (!%p203_p3, %s936_s16), 1 }
   0xe   : > { %s1076_s17 = smul.u32 160, %s1833_s16  ;;  %s1075_s20 = sshll.u32 %s1833_s16, 6 }
  0x10   : > { %s1203_s22 = scalar_lea.vmem %s1814_s0, %s1076_s17  ;;  %s1451_s18 = scalar_lea.vmem %s1815_s1, %s1076_s17 }
  0x11   : > { %v218_v2 = vld [vmem:[%s1203_s22] sm:$0xff]  ;;  %v219_v3 = vld [vmem:[%s1203_s22 + $0x10] sm:$0xff] }
  0x12   : > { %v1213_v4 = vld [vmem:[%s1203_s22 + $0x20] sm:$0xff]  ;;  %v1216_v5 = vld [vmem:[%s1203_s22 + $0x30] sm:$0xff]  ;;  %v231_v8 = vmul.f32 %v1196_v0, %v218_v2  ;;  %v232_v11 = vmul.f32 %v1196_v0, %v219_v3  ;;  %v320_v63 = vmul.f32 %v1291_v37, %v219_v3 }
  0x13   : > { %v1219_v6 = vld [vmem:[%s1203_s22 + $0x40] sm:$0xff]  ;;  %v1222_v7 = vld [vmem:[%s1203_s22 + $0x50] sm:$0xff]  ;;  %v233_v12 = vmul.f32 %v1196_v0, %v1213_v4  ;;  %v234_v13 = vmul.f32 %v1196_v0, %v1216_v5  ;;  %v321_v2 = vmul.f32 %v1291_v37, %v1213_v4 }
  0x14   : > { %v1226_v9 = vld [vmem:[%s1203_s22 + $0x60] sm:$0xff]  ;;  %v1229_v10 = vld [vmem:[%s1203_s22 + $0x70] sm:$0xff]  ;;  %v235_v16 = vmul.f32 %v1196_v0, %v1219_v6  ;;  %v236_v17 = vmul.f32 %v1196_v0, %v1222_v7 }
  0x15   : > { %v247_v14 = vld [vmem:[%s1203_s22 + $0x1] sm:$0xff]  ;;  %v237_v18 = vmul.f32 %v1196_v0, %v1226_v9  ;;  %v1249_v19 = vld [vmem:[%s1203_s22 + $0x11] sm:$0xff]  ;;  %v238_v23 = vmul.f32 %v1196_v0, %v1229_v10 }
  0x16   : > { %v1252_v20 = vld [vmem:[%s1203_s22 + $0x21] sm:$0xff]  ;;  %v1255_v21 = vld [vmem:[%s1203_s22 + $0x31] sm:$0xff]  ;;  %v260_v22 = vmul.f32 %v1208_v1, %v247_v14  ;;  %v261_v27 = vmul.f32 %v1208_v1, %v1249_v19 }
  0x17   : > { %v1261_v24 = vld [vmem:[%s1203_s22 + $0x41] sm:$0xff]  ;;  %v1264_v25 = vld [vmem:[%s1203_s22 + $0x51] sm:$0xff]  ;;  %v262_v28 = vmul.f32 %v1208_v1, %v1252_v20  ;;  %v263_v29 = vmul.f32 %v1208_v1, %v1255_v21 }
  0x18   : > { %v1267_v26 = vld [vmem:[%s1203_s22 + $0x61] sm:$0xff]  ;;  %v1276_v30 = vld [vmem:[%s1203_s22 + $0x71] sm:$0xff]  ;;  %v264_v31 = vmul.f32 %v1208_v1, %v1261_v24  ;;  %v265_v32 = vmul.f32 %v1208_v1, %v1264_v25  ;;  %v268_v34 = vadd.f32 %v260_v22, %v231_v8  ;;  %v269_v39 = vadd.f32 %v261_v27, %v232_v11 }
  0x19   : > { %v266_v33 = vmul.f32 %v1208_v1, %v1267_v26  ;;  %v276_v35 = vld [vmem:[%s1203_s22 + $0x2] sm:$0xff]  ;;  %v1286_v36 = vld [vmem:[%s1203_s22 + $0x12] sm:$0xff]  ;;  %v267_v38 = vmul.f32 %v1208_v1, %v1276_v30  ;;  %v270_v40 = vadd.f32 %v262_v28, %v233_v12  ;;  %v271_v41 = vadd.f32 %v263_v29, %v234_v13 }
  0x1a   : > { %v1296_v42 = vld [vmem:[%s1203_s22 + $0x22] sm:$0xff]  ;;  %v1299_v43 = vld [vmem:[%s1203_s22 + $0x32] sm:$0xff]  ;;  %v272_v45 = vadd.f32 %v264_v31, %v235_v16  ;;  %v273_v46 = vadd.f32 %v265_v32, %v236_v17  ;;  %v289_v51 = vmul.f32 %v1240_v15, %v276_v35  ;;  %v290_v53 = vmul.f32 %v1240_v15, %v1286_v36 }
  0x1b   : > { %v1302_v44 = vld [vmem:[%s1203_s22 + $0x42] sm:$0xff]  ;;  %v274_v47 = vadd.f32 %v266_v33, %v237_v18  ;;  %v1305_v48 = vld [vmem:[%s1203_s22 + $0x52] sm:$0xff]  ;;  %v275_v52 = vadd.f32 %v267_v38, %v238_v23  ;;  %v291_v54 = vmul.f32 %v1240_v15, %v1296_v42  ;;  %v292_v55 = vmul.f32 %v1240_v15, %v1299_v43 }
  0x1c   : > { %v1308_v49 = vld [vmem:[%s1203_s22 + $0x62] sm:$0xff]  ;;  %v1311_v50 = vld [vmem:[%s1203_s22 + $0x72] sm:$0xff]  ;;  %v293_v56 = vmul.f32 %v1240_v15, %v1302_v44  ;;  %v294_v57 = vmul.f32 %v1240_v15, %v1305_v48  ;;  %v297_v60 = vadd.f32 %v289_v51, %v268_v34  ;;  %v298_v61 = vadd.f32 %v290_v53, %v269_v39 }
  0x1d   : > { %v295_v58 = vmul.f32 %v1240_v15, %v1308_v49  ;;  %v296_v59 = vmul.f32 %v1240_v15, %v1311_v50  ;;  %v1329_v62 = vld [vmem:[%s1203_s22 + $0x80] sm:$0xff]  ;;  %v299_v8 = vadd.f32 %v291_v54, %v270_v40  ;;  %v300_v11 = vadd.f32 %v292_v55, %v271_v41 }
  0x1e   : > { %v322_v12 = vmul.f32 %v1291_v37, %v1216_v5  ;;  %v323_v13 = vmul.f32 %v1291_v37, %v1219_v6  ;;  %v301_v14 = vadd.f32 %v293_v56, %v272_v45  ;;  %v302_v16 = vadd.f32 %v294_v57, %v273_v46  ;;  %v1343_v3 = vld [vmem:[%s1816_s2 + $0x5] ss:$0 sm:$0xff]  ;;  %v1367_v46 = vld [vmem:[%s1816_s2 + $0x6] ss:$0 sm:$0xff] }
  0x1f   : > { %v303_v17 = vadd.f32 %v295_v58, %v274_v47  ;;  %v324_v18 = vmul.f32 %v1291_v37, %v1222_v7  ;;  %v304_v22 = vadd.f32 %v296_v59, %v275_v52  ;;  %v325_v23 = vmul.f32 %v1291_v37, %v1226_v9  ;;  %v1352_v33 = vld [vmem:[%s1203_s22 + $0x81] sm:$0xff] }
  0x20   : > { %v326_v27 = vmul.f32 %v1291_v37, %v1229_v10  ;;  %v327_v28 = vmul.f32 %v1291_v37, %v1329_v62  ;;  %v328_v29 = vadd.f32 %v320_v63, %v297_v60  ;;  %v329_v31 = vadd.f32 %v321_v2, %v298_v61  ;;  %v1376_v58 = vld [vmem:[%s1203_s22 + $0x82] sm:$0xff] }
  0x21   : > { %v330_v32 = vadd.f32 %v322_v12, %v299_v8  ;;  %v349_v34 = vmul.f32 %v1343_v3, %v1249_v19  ;;  %v350_v35 = vmul.f32 %v1343_v3, %v1252_v20  ;;  %v351_v38 = vmul.f32 %v1343_v3, %v1255_v21  ;;  %v1391_v12 = vld [vmem:[%s1816_s2 + $0x8] ss:$0 sm:$0xff] }
  0x22   : > { %v331_v39 = vadd.f32 %v323_v13, %v300_v11  ;;  %v332_v40 = vadd.f32 %v324_v18, %v301_v14  ;;  %v352_v41 = vmul.f32 %v1343_v3, %v1261_v24  ;;  %v353_v45 = vmul.f32 %v1343_v3, %v1264_v25 }
  0x23   : > { %v333_v19 = vadd.f32 %v325_v23, %v302_v16  ;;  %v334_v47 = vadd.f32 %v326_v27, %v303_v17  ;;  %v335_v51 = vadd.f32 %v327_v28, %v304_v22  ;;  %v354_v52 = vmul.f32 %v1343_v3, %v1267_v26 }
  0x24   : > { %v355_v53 = vmul.f32 %v1343_v3, %v1276_v30  ;;  %v356_v54 = vmul.f32 %v1343_v3, %v1352_v33  ;;  %v357_v55 = vadd.f32 %v349_v34, %v328_v29  ;;  %v358_v56 = vadd.f32 %v350_v35, %v329_v31 }
  0x25   : > { %v359_v57 = vadd.f32 %v351_v38, %v330_v32  ;;  %v378_v59 = vmul.f32 %v1367_v46, %v1286_v36  ;;  %v379_v60 = vmul.f32 %v1367_v46, %v1296_v42  ;;  %v380_v61 = vmul.f32 %v1367_v46, %v1299_v43  ;;  %v985_v32 = vld [vmem:[%s1203_s22 + $0x90] sm:$0xff]  ;;  %v1409_v38 = vld [vmem:[%s1816_s2 + $0x9] ss:$0 sm:$0xff] }
  0x26   : > { %v360_v63 = vadd.f32 %v352_v41, %v331_v39  ;;  %v361_v2 = vadd.f32 %v353_v45, %v332_v40  ;;  %v381_v8 = vmul.f32 %v1367_v46, %v1302_v44  ;;  %v382_v11 = vmul.f32 %v1367_v46, %v1305_v48 }
  0x27   : > { %v362_v36 = vadd.f32 %v354_v52, %v333_v19  ;;  %v383_v13 = vmul.f32 %v1367_v46, %v1308_v49  ;;  %v363_v14 = vadd.f32 %v355_v53, %v334_v47  ;;  %v364_v16 = vadd.f32 %v356_v54, %v335_v51  ;;  %v1429_v53 = vld [vmem:[%s1816_s2 + $0xa] ss:$0 sm:$0xff] }
  0x28   : > { %v384_v17 = vmul.f32 %v1367_v46, %v1311_v50  ;;  %v385_v18 = vmul.f32 %v1367_v46, %v1376_v58  ;;  %v386_v22 = vadd.f32 %v378_v59, %v357_v55  ;;  %v387_v23 = vadd.f32 %v379_v60, %v358_v56  ;;  %1824 = vst [vmem:[#allocation2_spill] sm:$0xff] %v1429_v53 }
  0x29   : > { %v388_v27 = vadd.f32 %v380_v61, %v359_v57  ;;  %v409_v28 = vmul.f32 %v1391_v12, %v1213_v4  ;;  %v389_v29 = vadd.f32 %v381_v8, %v360_v63  ;;  %v390_v31 = vadd.f32 %v382_v11, %v361_v2  ;;  %v995_v57 = vld [vmem:[%s1203_s22 + $0x91] sm:$0xff] }
  0x2a   : > { %v410_v34 = vmul.f32 %v1391_v12, %v1216_v5  ;;  %v411_v35 = vmul.f32 %v1391_v12, %v1219_v6  ;;  %v391_v39 = vadd.f32 %v383_v13, %v362_v36  ;;  %v412_v40 = vmul.f32 %v1391_v12, %v1222_v7  ;;  %v1005_v36 = vld [vmem:[%s1203_s22 + $0x92] sm:$0xff]  ;;  %s1789_s22 = scalar_lea.vmem %s1818_s4, %s1075_s20 }
  0x2b   : > { %v413_v4 = vmul.f32 %v1391_v12, %v1226_v9  ;;  %v414_v41 = vmul.f32 %v1391_v12, %v1229_v10  ;;  %v392_v45 = vadd.f32 %v384_v17, %v363_v14  ;;  %v415_v5 = vmul.f32 %v1391_v12, %v1329_v62 }
  0x2c   : > { %v393_v6 = vadd.f32 %v385_v18, %v364_v16  ;;  %v416_v19 = vmul.f32 %v1391_v12, %v985_v32  ;;  %v417_v47 = vadd.f32 %v409_v28, %v386_v22  ;;  %v438_v51 = vmul.f32 %v1409_v38, %v1252_v20  ;;  %v1487_v32 = vld [vmem:[%s1451_s18 + $0x50] sm:$0xff] }
  0x2d   : > { %v418_v52 = vadd.f32 %v410_v34, %v387_v23  ;;  %v419_v7 = vadd.f32 %v411_v35, %v388_v27  ;;  %v439_v9 = vmul.f32 %v1409_v38, %v1255_v21  ;;  %v440_v10 = vmul.f32 %v1409_v38, %v1261_v24  ;;  %v554_v23 = vld [vmem:[%s1451_s18] sm:$0xff] }
  0x2e   : > { %v420_v62 = vadd.f32 %v412_v40, %v389_v29  ;;  %v421_v54 = vadd.f32 %v413_v4, %v390_v31  ;;  %v422_v55 = vadd.f32 %v414_v41, %v391_v39  ;;  %v441_v20 = vmul.f32 %v1409_v38, %v1264_v25  ;;  %v1473_v27 = vld [vmem:[%s1451_s18 + $0x20] sm:$0xff]  ;;  %v1498_v41 = vld [vmem:[%s1451_s18 + $0x11] sm:$0xff] }
  0x2f   : > { %v423_v56 = vadd.f32 %v415_v5, %v392_v45  ;;  %v442_v21 = vmul.f32 %v1409_v38, %v1267_v26  ;;  %v443_v24 = vmul.f32 %v1409_v38, %v1276_v30  ;;  %v444_v59 = vmul.f32 %v1409_v38, %v1352_v33  ;;  %v1484_v31 = vld [vmem:[%s1451_s18 + $0x40] sm:$0xff]  ;;  %v1504_v5 = vld [vmem:[%s1451_s18 + $0x31] sm:$0xff] }
  0x30   : > { %v446_v60 = vadd.f32 %v438_v51, %v417_v47  ;;  %v467_v61 = vmul.f32 %v1429_v53, %v1296_v42  ;;  %v447_v63 = vadd.f32 %v439_v9, %v418_v52  ;;  %v448_v2 = vadd.f32 %v440_v10, %v419_v7  ;;  %v578_v34 = vld [vmem:[%s1451_s18 + $0x1] sm:$0xff]  ;;  %v1519_v7 = vld [vmem:[%s1451_s18 + $0x51] sm:$0xff] }
  0x31   : > { %v468_v25 = vmul.f32 %v1429_v53, %v1299_v43  ;;  %v469_v8 = vmul.f32 %v1429_v53, %v1302_v44  ;;  %v424_v26 = vadd.f32 %v416_v19, %v393_v6  ;;  %v445_v30 = vmul.f32 %v1409_v38, %v995_v57  ;;  %v1501_v45 = vld [vmem:[%s1451_s18 + $0x21] sm:$0xff]  ;;  %v1525_v10 = vld [vmem:[%s1451_s18 + $0x70] sm:$0xff] }
  0x32   : > { %v449_v42 = vadd.f32 %v441_v20, %v420_v62  ;;  %v450_v33 = vadd.f32 %v442_v21, %v421_v54  ;;  %v451_v11 = vadd.f32 %v443_v24, %v422_v55  ;;  %v452_v43 = vadd.f32 %v444_v59, %v423_v56  ;;  %v1516_v52 = vld [vmem:[%s1451_s18 + $0x41] sm:$0xff]  ;;  %v1540_v21 = vld [vmem:[%s1451_s18 + $0x71] sm:$0xff] }
  0x33   : > { %v470_v44 = vmul.f32 %v1429_v53, %v1305_v48  ;;  %v471_v13 = vmul.f32 %v1429_v53, %v1308_v49  ;;  %v472_v14 = vmul.f32 %v1429_v53, %v1311_v50  ;;  %v473_v16 = vmul.f32 %v1429_v53, %v1376_v58  ;;  %v1466_v48 = vld [vmem:[%s1817_s3] ss:$0 sm:$0xff]  ;;  %v1470_v49 = vld [vmem:[%s1451_s18 + $0x10] sm:$0xff]  ;;  %v1537_v57 = vld [vmem:[%s1451_s18 + $0x61] sm:$0xff] }
  0x34   : > { %v475_v17 = vadd.f32 %v467_v61, %v446_v60  ;;  %v476_v18 = vadd.f32 %v468_v25, %v447_v63  ;;  %v477_v22 = vadd.f32 %v469_v8, %v448_v2  ;;  %v1476_v50 = vld [vmem:[%s1451_s18 + $0x30] sm:$0xff]  ;;  %v1478_v28 = vadd.f32 %v445_v30, %v424_v26  ;;  %v1522_v9 = vld [vmem:[%s1451_s18 + $0x60] sm:$0xff] }
  0x35   : > { %v1481_v58 = vmul.f32 %v1429_v53, %v1005_v36  ;;  %v478_v29 = vadd.f32 %v470_v44, %v449_v42  ;;  %v479_v35 = vadd.f32 %v471_v13, %v450_v33  ;;  %v1490_v39 = vadd.f32 %v472_v14, %v451_v11  ;;  %v602_v8 = vld [vmem:[%s1451_s18 + $0x2] sm:$0xff]  ;;  %v1560_v26 = vld [vmem:[%s1451_s18 + $0x12] sm:$0xff] }
  0x36   : > { %v1492_v40 = vadd.f32 %v473_v16, %v452_v43  ;;  %v1495_v4 = vadd.f32 %v1466_v48, %v475_v17  ;;  %v1507_v6 = vadd.f32 %v1466_v48, %v476_v18  ;;  %v1510_v19 = vadd.f32 %v1466_v48, %v477_v22  ;;  %v1569_v43 = vld [vmem:[%s1451_s18 + $0x22] sm:$0xff]  ;;  %v1572_v44 = vld [vmem:[%s1451_s18 + $0x32] sm:$0xff] }
  0x37   : > { %v562_v47 = vmul.f32 %v1196_v0, %v554_v23  ;;  %v563_v51 = vmul.f32 %v1196_v0, %v1470_v49  ;;  %v564_v62 = vmul.f32 %v1196_v0, %v1473_v27  ;;  %v565_v54 = vmul.f32 %v1196_v0, %v1476_v50  ;;  %v1579_v17 = vld [vmem:[%s1451_s18 + $0x42] sm:$0xff]  ;;  %v1582_v18 = vld [vmem:[%s1451_s18 + $0x52] sm:$0xff] }
  0x38   : > { %1825 = vst [vmem:[#allocation3_spill] sm:$0xff] %v1495_v4  ;;  %1826 = vst [vmem:[#allocation4_spill] sm:$0xff] %v1507_v6  ;;  %v566_v55 = vmul.f32 %v1196_v0, %v1484_v31  ;;  %v586_v20 = vmul.f32 %v1208_v1, %v578_v34  ;;  %v567_v56 = vmul.f32 %v1196_v0, %v1487_v32  ;;  %v1009_v30 = vmul.f32 -1.442695, %v1495_v4  ;;  %v1585_v34 = vld [vmem:[%s1451_s18 + $0x62] sm:$0xff] }
  0x39   : > { %1827 = vst [vmem:[#allocation5_spill] sm:$0xff] %v1510_v19  ;;  %v587_v24 = vmul.f32 %v1208_v1, %v1498_v41  ;;  %v588_v59 = vmul.f32 %v1208_v1, %v1501_v45  ;;  %v589_v60 = vmul.f32 %v1208_v1, %v1504_v5  ;;  %v1549_v61 = vadd.f32 %v1466_v48, %v478_v29 }
  0x3a   : > { %v1552_v63 = vadd.f32 %v1466_v48, %v479_v35  ;;  %v590_v2 = vmul.f32 %v1208_v1, %v1516_v52  ;;  %v591_v25 = vmul.f32 %v1208_v1, %v1519_v7  ;;  %v1010_v42 = vmul.f32 -1.442695, %v1507_v6  ;;  %v1588_v35 = vld [vmem:[%s1451_s18 + $0x72] sm:$0xff] }
  0x3b   : > { %v568_v33 = vmul.f32 %v1196_v0, %v1522_v9  ;;  %v569_v11 = vmul.f32 %v1196_v0, %v1525_v10  ;;  %v592_v36 = vmul.f32 %v1208_v1, %v1537_v57  ;;  %v593_v13 = vmul.f32 %v1208_v1, %v1540_v21 }
  0x3c   : > { %v594_v14 = vadd.f32 %v586_v20, %v562_v47  ;;  %v595_v16 = vadd.f32 %v587_v24, %v563_v51  ;;  %v596_v22 = vadd.f32 %v588_v59, %v564_v62  ;;  %v597_v23 = vadd.f32 %v589_v60, %v565_v54 }
  0x3d   : > { %v598_v29 = vadd.f32 %v590_v2, %v566_v55  ;;  %v599_v0 = vadd.f32 %v591_v25, %v567_v56  ;;  %v610_v6 = vmul.f32 %v1240_v15, %v602_v8  ;;  %v611_v4 = vmul.f32 %v1240_v15, %v1560_v26 }
  0x3e   : > { %v612_v1 = vmul.f32 %v1240_v15, %v1569_v43  ;;  %v613_v47 = vmul.f32 %v1240_v15, %v1572_v44  ;;  %1085 = vpow2.f32 %v1009_v30  ;;  %v1011_v51 = vmul.f32 -1.442695, %v1510_v19  ;;  %v1607_v19 = vld [vmem:[%s1451_s18 + $0x80] sm:$0xff] }
  0x3f   : > { %v614_v62 = vmul.f32 %v1240_v15, %v1579_v17  ;;  %v615_v54 = vmul.f32 %v1240_v15, %v1582_v18  ;;  %v600_v55 = vadd.f32 %v592_v36, %v568_v33  ;;  %v601_v20 = vadd.f32 %v593_v13, %v569_v11 }
  0x40   : > { %v616_v56 = vmul.f32 %v1240_v15, %v1585_v34  ;;  %v617_v24 = vmul.f32 %v1240_v15, %v1588_v35  ;;  %v618_v59 = vadd.f32 %v610_v6, %v594_v14  ;;  %v619_v60 = vadd.f32 %v611_v4, %v595_v16 }
  0x41   : > { %v620_v2 = vadd.f32 %v612_v1, %v596_v22  ;;  %v621_v25 = vadd.f32 %v613_v47, %v597_v23  ;;  %v622_v8 = vadd.f32 %v614_v62, %v598_v29  ;;  %v623_v30 = vadd.f32 %v615_v54, %v599_v0 }
  0x42   : > { %v635_v53 = vmul.f32 %v1291_v37, %v1470_v49  ;;  %v636_v33 = vmul.f32 %v1291_v37, %v1473_v27  ;;  %v637_v11 = vmul.f32 %v1291_v37, %v1476_v50  ;;  %v638_v15 = vmul.f32 %v1291_v37, %v1484_v31 }
  0x43   : > { %v639_v4 = vmul.f32 %v1291_v37, %v1487_v32  ;;  %v640_v6 = vmul.f32 %v1291_v37, %v1522_v9  ;;  %v482_v36 = vadd.f32 %v1481_v58, %v1478_v28  ;;  %v1625_v49 = vadd.f32 %v1466_v48, %v1490_v39 }
  0x44   : > { %1087 = vpow2.f32 %v1010_v42  ;;  %v1012_v13 = vmul.f32 -1.442695, %v1549_v61  ;;  %v624_v14 = vadd.f32 %v616_v56, %v600_v55  ;;  %v625_v16 = vadd.f32 %v617_v24, %v601_v20  ;;  %v1634_v42 = vld [vmem:[%s1451_s18 + $0x81] sm:$0xff] }
  0x45   : > { %v641_v22 = vmul.f32 %v1291_v37, %v1525_v10  ;;  %v642_v23 = vmul.f32 %v1607_v19, %v1291_v37  ;;  %1089 = vpow2.f32 %v1011_v51  ;;  %v1013_v29 = vmul.f32 -1.442695, %v1552_v63 }
  0x46   : > { %v643_v28 = vadd.f32 %v635_v53, %v618_v59  ;;  %v644_v58 = vadd.f32 %v636_v33, %v619_v60  ;;  %v645_v0 = vadd.f32 %v637_v11, %v620_v2  ;;  %v646_v1 = vadd.f32 %v638_v15, %v621_v25  ;;  %v1663_v15 = vld [vmem:[%s1451_s18 + $0x82] sm:$0xff] }
  0x47   : > { %v647_v39 = vadd.f32 %v639_v4, %v622_v8  ;;  %v648_v47 = vadd.f32 %v640_v6, %v623_v30  ;;  %v659_v62 = vmul.f32 %v1343_v3, %v1498_v41  ;;  %v660_v54 = vmul.f32 %v1343_v3, %v1501_v45 }
  0x48   : > { %v661_v37 = vmul.f32 %v1343_v3, %v1504_v5  ;;  %v662_v51 = vmul.f32 %v1343_v3, %v1516_v52  ;;  %v649_v53 = vadd.f32 %v641_v22, %v624_v14  ;;  %v650_v55 = vadd.f32 %v642_v23, %v625_v16 }
  0x49   : > { %v663_v20 = vmul.f32 %v1343_v3, %v1519_v7  ;;  %v664_v56 = vmul.f32 %v1343_v3, %v1537_v57  ;;  %1091 = vpow2.f32 %v1012_v13  ;;  %v665_v41 = vmul.f32 %v1343_v3, %v1540_v21 }
  0x4a   : > { %v666_v24 = vmul.f32 %v1634_v42, %v1343_v3  ;;  %v1654_v59 = vadd.f32 %v1466_v48, %v1492_v40  ;;  %v1657_v60 = vadd.f32 %v1466_v48, %v482_v36  ;;  %1093 = vpow2.f32 %v1013_v29 }
  0x4b   : > { %v1014_v2 = vmul.f32 -1.442695, %v1625_v49  ;;  %v1660_v25 = vpop.eup %1085  ;;  %v667_v8 = vadd.f32 %v659_v62, %v643_v28  ;;  %v668_v30 = vadd.f32 %v660_v54, %v644_v58  ;;  %v669_v33 = vadd.f32 %v661_v37, %v645_v0 }
  0x4c   : > { %v670_v11 = vadd.f32 %v662_v51, %v646_v1  ;;  %v671_v4 = vadd.f32 %v663_v20, %v647_v39  ;;  %v672_v3 = vadd.f32 %v664_v56, %v648_v47  ;;  %v673_v6 = vadd.f32 %v665_v41, %v649_v53  ;;  %v1048_v39 = vld [vmem:[%s1451_s18 + $0x90] sm:$0xff] }
  0x4d   : > { %v674_v40 = vadd.f32 %v666_v24, %v650_v55  ;;  %v683_v36 = vmul.f32 %v1367_v46, %v1560_v26  ;;  %v684_v13 = vmul.f32 %v1367_v46, %v1569_v43  ;;  %v685_v14 = vmul.f32 %v1367_v46, %v1572_v44 }
  0x4e   : > { %v686_v16 = vmul.f32 %v1367_v46, %v1579_v17  ;;  %v687_v22 = vmul.f32 %v1367_v46, %v1582_v18  ;;  %v688_v23 = vmul.f32 %v1367_v46, %v1585_v34  ;;  %v689_v29 = vmul.f32 %v1367_v46, %v1588_v35 }
  0x4f   : > { %v690_v26 = vmul.f32 %v1663_v15, %v1367_v46  ;;  %v691_v28 = vadd.f32 %v683_v36, %v667_v8  ;;  %v692_v58 = vadd.f32 %v684_v13, %v668_v30  ;;  %v693_v0 = vadd.f32 %v685_v14, %v669_v33 }
  0x50   : > { %v694_v1 = vadd.f32 %v686_v16, %v670_v11  ;;  %v695_v62 = vadd.f32 %v687_v22, %v671_v4  ;;  %v696_v54 = vadd.f32 %v688_v23, %v672_v3  ;;  %v697_v37 = vadd.f32 %v689_v29, %v673_v6  ;;  %v1056_v6 = vld [vmem:[%s1451_s18 + $0x91] sm:$0xff] }
  0x51   : > { %v1682_v47 = vpop.eup %1087  ;;  %v698_v51 = vadd.f32 %v690_v26, %v674_v40  ;;  %v708_v53 = vmul.f32 %v1391_v12, %v1473_v27  ;;  %v709_v55 = vmul.f32 %v1391_v12, %v1476_v50  ;;  %v710_v46 = vmul.f32 %v1391_v12, %v1484_v31  ;;  %v1064_v26 = vld [vmem:[%s1451_s18 + $0x92] sm:$0xff] }
  0x52   : > { %v711_v20 = vmul.f32 %v1391_v12, %v1487_v32  ;;  %v1692_v56 = vpop.eup %1089  ;;  %v712_v41 = vmul.f32 %v1391_v12, %v1522_v9  ;;  %v713_v24 = vmul.f32 %v1391_v12, %v1525_v10  ;;  %v714_v27 = vmul.f32 %v1607_v19, %v1391_v12 }
  0x53   : > { %v715_v50 = vmul.f32 %v1048_v39, %v1391_v12  ;;  %1095 = vpow2.f32 %v1014_v2  ;;  %v1015_v31 = vmul.f32 -1.442695, %v1654_v59  ;;  %v1016_v8 = vmul.f32 -1.442695, %v1657_v60 }
  0x54   : > { %v716_v32 = vadd.f32 %v708_v53, %v691_v28  ;;  %v717_v30 = vadd.f32 %v709_v55, %v692_v58  ;;  %v718_v33 = vadd.f32 %v710_v46, %v693_v0  ;;  %v719_v11 = vadd.f32 %v711_v20, %v694_v1 }
  0x55   : > { %v720_v4 = vadd.f32 %v712_v41, %v695_v62  ;;  %v721_v3 = vadd.f32 %v713_v24, %v696_v54  ;;  %v722_v9 = vadd.f32 %v714_v27, %v697_v37  ;;  %v732_v10 = vmul.f32 %v1409_v38, %v1501_v45 }
  0x56   : > { %v1706_v40 = vpop.eup %1091  ;;  %v723_v12 = vadd.f32 %v715_v50, %v698_v51  ;;  %v733_v19 = vmul.f32 %v1409_v38, %v1504_v5  ;;  %v734_v2 = vmul.f32 %v1409_v38, %v1516_v52  ;;  %v735_v36 = vmul.f32 %v1409_v38, %v1519_v7 }
  0x57   : > { %v1094_v13 = vpop.eup %1093  ;;  %1097 = vpow2.f32 %v1015_v31  ;;  %v736_v14 = vmul.f32 %v1409_v38, %v1537_v57  ;;  %v737_v45 = vmul.f32 %v1409_v38, %v1540_v21  ;;  %v738_v16 = vmul.f32 %v1634_v42, %v1409_v38  ;;  %v1828_v57 = vld [vmem:[#allocation2_spill] sm:$0xff] }
  0x58   : > { %1099 = vpow2.f32 %v1016_v8  ;;  %v739_v5 = vmul.f32 %v1056_v6, %v1409_v38  ;;  %v740_v22 = vadd.f32 %v732_v10, %v716_v32  ;;  %v741_v23 = vadd.f32 %v733_v19, %v717_v30 }
  0x59   : > { %v742_v52 = vadd.f32 %v734_v2, %v718_v33  ;;  %v743_v29 = vadd.f32 %v735_v36, %v719_v11  ;;  %v744_v7 = vadd.f32 %v736_v14, %v720_v4  ;;  %v745_v28 = vadd.f32 %v737_v45, %v721_v3 }
  0x5a   : > { %v746_v58 = vadd.f32 %v738_v16, %v722_v9  ;;  %v747_v0 = vadd.f32 %v739_v5, %v723_v12  ;;  %v756_v1 = vmul.f32 %v1828_v57, %v1569_v43  ;;  %v757_v21 = vmul.f32 %v1828_v57, %v1572_v44 }
  0x5b   : > { %v758_v42 = vmul.f32 %v1828_v57, %v1579_v17  ;;  %v759_v38 = vmul.f32 %v1828_v57, %v1582_v18  ;;  %v760_v39 = vmul.f32 %v1828_v57, %v1585_v34  ;;  %v761_v62 = vmul.f32 %v1828_v57, %v1588_v35 }
  0x5c   : > { %v762_v54 = vmul.f32 %v1663_v15, %v1828_v57  ;;  %v763_v43 = vmul.f32 %v1064_v26, %v1828_v57  ;;  %v764_v37 = vadd.f32 %v756_v1, %v740_v22  ;;  %v765_v51 = vadd.f32 %v757_v21, %v741_v23 }
  0x5d   : > { %v766_v44 = vadd.f32 %v758_v42, %v742_v52  ;;  %v767_v53 = vadd.f32 %v759_v38, %v743_v29  ;;  %v768_v55 = vadd.f32 %v760_v39, %v744_v7  ;;  %v769_v17 = vadd.f32 %v761_v62, %v745_v28 }
  0x5e   : > { %v770_v46 = vadd.f32 %v762_v54, %v746_v58  ;;  %v771_v20 = vadd.f32 %v763_v43, %v747_v0  ;;  %v1738_v18 = vadd.f32 %v1466_v48, %v764_v37  ;;  %v1741_v34 = vadd.f32 %v1466_v48, %v765_v51  ;;  %v1829_v37 = vld [vmem:[#allocation3_spill] sm:$0xff] }
  0x5f   : > { %v1744_v35 = vadd.f32 %v1466_v48, %v766_v44  ;;  %v1747_v15 = vadd.f32 %v1466_v48, %v767_v53  ;;  %v1750_v24 = vadd.f32 %v1466_v48, %v768_v55  ;;  %v1753_v27 = vadd.f32 %v1466_v48, %v769_v17  ;;  %v1830_v53 = vld [vmem:[#allocation4_spill] sm:$0xff] }
  0x60   : > { %v1096_v41 = vpop.eup %1095  ;;  %v1756_v50 = vadd.f32 %v1466_v48, %v770_v46  ;;  %v1065_v31 = vmul.f32 -1.442695, %v1738_v18  ;;  %v1066_v8 = vmul.f32 -1.442695, %v1741_v34  ;;  %v1762_v30 = vadd.f32 %v1466_v48, %v771_v20  ;;  %v1831_v46 = vld [vmem:[#allocation5_spill] sm:$0xff] }
  0x61   : > { %v1067_v32 = vmul.f32 -1.442695, %v1744_v35  ;;  %v1068_v33 = vmul.f32 -1.442695, %v1747_v15  ;;  %v1069_v11 = vmul.f32 -1.442695, %v1750_v24 }
  0x62   : > { %1101 = vpow2.f32 %v1065_v31  ;;  %v1070_v3 = vmul.f32 -1.442695, %v1753_v27  ;;  %v1071_v6 = vmul.f32 -1.442695, %v1756_v50  ;;  %v1072_v10 = vmul.f32 -1.442695, %v1762_v30 }
  0x63   : > { %1103 = vpow2.f32 %v1066_v8  ;;  %v522_v12 = vadd.f32 1.0, %v1660_v25  ;;  %v523_v48 = vadd.f32 1.0, %v1682_v47  ;;  %v524_v19 = vadd.f32 1.0, %v1692_v56 }
  0x64   : > { %v1098_v4 = vpop.eup %1097  ;;  %1105 = vpow2.f32 %v1067_v32  ;;  %v525_v2 = vadd.f32 1.0, %v1706_v40  ;;  %v526_v36 = vadd.f32 1.0, %v1094_v13  ;;  %v527_v14 = vadd.f32 1.0, %v1096_v41 }
  0x65   : > { %v1100_v9 = vpop.eup %1099  ;;  %1107 = vpow2.f32 %v1068_v33  ;;  %v528_v45 = vadd.f32 1.0, %v1098_v4 }
  0x66   : > { %1109 = vpow2.f32 %v1069_v11  ;;  %v529_v16 = vadd.f32 1.0, %v1100_v9 }
  0x67   : > { %1111 = vpow2.f32 %v1070_v3 }
  0x68   : > { %1113 = vpow2.f32 %v1071_v6 }
  0x69   : > { %1115 = vpow2.f32 %v1072_v10 }
  0x6a   : > { %1117 = vrcp.f32 %v522_v12 }
  0x6b   : > { %1119 = vrcp.f32 %v523_v48 }
  0x6c   : > { %1121 = vrcp.f32 %v524_v19 }
  0x6d   : > { %1123 = vrcp.f32 %v525_v2 }
  0x6e   : > { %1125 = vrcp.f32 %v526_v36 }
  0x6f   : > { %v1102_v25 = vpop.eup %1101  ;;  %1127 = vrcp.f32 %v527_v14 }
  0x70   : > { %v1104_v5 = vpop.eup %1103  ;;  %1129 = vrcp.f32 %v528_v45  ;;  %v804_v47 = vadd.f32 1.0, %v1102_v25 }
  0x71   : > { %v1106_v22 = vpop.eup %1105  ;;  %1131 = vrcp.f32 %v529_v16  ;;  %v805_v56 = vadd.f32 1.0, %v1104_v5 }
  0x72   : > { %v1108_v23 = vpop.eup %1107  ;;  %v806_v40 = vadd.f32 1.0, %v1106_v22  ;;  %1133 = vrcp.f32 %v804_v47 }
  0x73   : > { %v1110_v13 = vpop.eup %1109  ;;  %v807_v52 = vadd.f32 1.0, %v1108_v23  ;;  %1135 = vrcp.f32 %v805_v56 }
  0x74   : > { %v1112_v29 = vpop.eup %1111  ;;  %v808_v26 = vadd.f32 1.0, %v1110_v13  ;;  %1137 = vrcp.f32 %v806_v40 }
  0x75   : > { %v1114_v7 = vpop.eup %1113  ;;  %v809_v28 = vadd.f32 1.0, %v1112_v29  ;;  %1139 = vrcp.f32 %v807_v52 }
  0x76   : > { %v1116_v58 = vpop.eup %1115  ;;  %v810_v0 = vadd.f32 1.0, %v1114_v7  ;;  %1141 = vrcp.f32 %v808_v26 }
  0x77   : > { %v1118_v57 = vpop.eup %1117  ;;  %v811_v1 = vadd.f32 1.0, %v1116_v58  ;;  %1143 = vrcp.f32 %v809_v28 }
  0x78   : > { %v1120_v21 = vpop.eup %1119  ;;  %1145 = vrcp.f32 %v810_v0  ;;  %v546_v51 = vmul.f32 %v1118_v57, %v1829_v37 }
  0x79   : > { %v1122_v42 = vpop.eup %1121  ;;  %1147 = vrcp.f32 %v811_v1  ;;  %v547_v55 = vmul.f32 %v1120_v21, %v1830_v53 }
  0x7a   : > { %v1124_v38 = vpop.eup %1123  ;;  %v548_v20 = vmul.f32 %v1122_v42, %v1831_v46 }
  0x7b   : > { %v1126_v39 = vpop.eup %1125  ;;  %v549_v8 = vmul.f32 %v1124_v38, %v1549_v61 }
  0x7c   : > { %v1128_v62 = vpop.eup %1127  ;;  %v550_v11 = vmul.f32 %v1126_v39, %v1552_v63 }
  0x7d   : > { %v1130_v54 = vpop.eup %1129  ;;  %v551_v6 = vmul.f32 %v1128_v62, %v1625_v49 }
  0x7e   : > { %v1132_v43 = vpop.eup %1131  ;;  %v552_v48 = vmul.f32 %v1130_v54, %v1654_v59 }
  0x7f   : > { %v1134_v44 = vpop.eup %1133  ;;  %v553_v63 = vmul.f32 %v1132_v43, %v1657_v60 }
  0x80   : > { %v1136_v17 = vpop.eup %1135  ;;  %v828_v41 = vmul.f32 %v1134_v44, %v1738_v18 }
  0x81   : > { %v1138_v31 = vpop.eup %1137  ;;  %v829_v32 = vmul.f32 %v1136_v17, %v1741_v34 }
  0x82   : > { %v1140_v33 = vpop.eup %1139  ;;  %v830_v4 = vmul.f32 %v1138_v31, %v1744_v35  ;;  %v836_v3 = vmul.f32 %v828_v41, %v546_v51 }
  0x83   : > { %v1142_v9 = vpop.eup %1141  ;;  %v831_v10 = vmul.f32 %v1140_v33, %v1747_v15  ;;  %v837_v12 = vmul.f32 %v829_v32, %v547_v55 }
  0x84   : > { %v1144_v18 = vpop.eup %1143  ;;  %v832_v61 = vmul.f32 %v1142_v9, %v1750_v24  ;;  %v838_v34 = vmul.f32 %v830_v4, %v548_v20  ;;  %v844_v19 = vadd.f32 %v836_v3, %v546_v51 }
  0x85   : > { %v1146_v2 = vpop.eup %1145  ;;  %v833_v49 = vmul.f32 %v1144_v18, %v1753_v27  ;;  %v839_v35 = vmul.f32 %v831_v10, %v549_v8  ;;  %v845_v15 = vadd.f32 %v837_v12, %v547_v55 }
  0x86   : > { %v1148_v36 = vpop.eup %1147  ;;  %v834_v59 = vmul.f32 %v1146_v2, %v1756_v50  ;;  %v840_v24 = vmul.f32 %v832_v61, %v550_v11  ;;  %v846_v14 = vadd.f32 %v838_v34, %v548_v20  ;;  %v852_v45 = vadd.f32 %v844_v19, %v828_v41 }
  0x87   : > { %v835_v16 = vmul.f32 %v1148_v36, %v1762_v30  ;;  %v841_v25 = vmul.f32 %v833_v49, %v551_v6  ;;  %v847_v5 = vadd.f32 %v839_v35, %v549_v8  ;;  %v853_v47 = vadd.f32 %v845_v15, %v829_v32 }
  0x88   : > { %v842_v60 = vmul.f32 %v834_v59, %v552_v48  ;;  %v848_v22 = vadd.f32 %v840_v24, %v550_v11  ;;  %v854_v27 = vadd.f32 %v846_v14, %v830_v4  ;;  %861 = vst.msk [vmem:[%s1789_s22] sm:$0xff] %vm860_vm0, %v852_v45 }
  0x89   : > { %v843_v50 = vmul.f32 %v835_v16, %v553_v63  ;;  %v849_v56 = vadd.f32 %v841_v25, %v551_v6  ;;  %v855_v23 = vadd.f32 %v847_v5, %v831_v10  ;;  %862 = vst.msk [vmem:[%s1789_s22 + $0x8] sm:$0xff] %vm860_vm0, %v853_v47 }
  0x8a   : > { %v850_v40 = vadd.f32 %v842_v60, %v552_v48  ;;  %v856_v30 = vadd.f32 %v848_v22, %v832_v61  ;;  %863 = vst.msk [vmem:[%s1789_s22 + $0x10] sm:$0xff] %vm860_vm0, %v854_v27 }
  0x8b   : > { %v851_v13 = vadd.f32 %v843_v50, %v553_v63  ;;  %v857_v52 = vadd.f32 %v849_v56, %v833_v49  ;;  %864 = vst.msk [vmem:[%s1789_s22 + $0x18] sm:$0xff] %vm860_vm0, %v855_v23 }
  0x8c   : > { %v858_v29 = vadd.f32 %v850_v40, %v834_v59  ;;  %865 = vst.msk [vmem:[%s1789_s22 + $0x20] sm:$0xff] %vm860_vm0, %v856_v30 }
  0x8d   : > { %v859_v26 = vadd.f32 %v851_v13, %v835_v16  ;;  %866 = vst.msk [vmem:[%s1789_s22 + $0x28] sm:$0xff] %vm860_vm0, %v857_v52 }
  0x8e   : > { %867 = vst.msk [vmem:[%s1789_s22 + $0x30] sm:$0xff] %vm860_vm0, %v858_v29 }
  0x8f   : > { %868 = vst.msk [vmem:[%s1789_s22 + $0x38] sm:$0xff] %vm860_vm0, %v859_v26 }
  0x90 PF: > { %s14_s15 = sadd.s32 1, %s1155_s15  }
  0x91   : > { %p11_p4 = scmp.ge.s32.totalorder %s14_s15, 4  }
  0x93   :  { %13 = sbr.rel (!%p11_p4) target bundleno = 1 (0x1), region = 75 }

// kernel: ss2d_cross_forward.8
= control target key start
LH: loop header
LB: loop body
LE: loop exit
PB: predicated region body
PF: predicated region fallthrough
CT: control target
= control target key end

     0   :  { %s2452_s18 = smov 0   ;;  %s2454_s19 = smov 0   ;;  %s3136_s0 = inlined_call_operand.vmem [shape: f32[2,4,16,32], index: 0, kind: input, shape index: {}]   ;;  %s3137_s1 = inlined_call_operand.vmem [shape: f32[4,64,32], index: 1, kind: input, shape index: {}]   ;;  %s3138_s2 = inlined_call_operand.vmem [shape: f32[4,1,32], index: 2, kind: input, shape index: {}]   ;;  %s3139_s3 = inlined_call_operand.vmem [shape: f32[4,16,32], index: 3, kind: input, shape index: {}]   ;;  %s3140_s4 = inlined_call_operand.vmem [shape: f32[4,1,32], index: 4, kind: input, shape index: {}]   ;;  %s3141_s5 = inlined_call_operand.vmem [shape: f32[2,4,16,32], index: 5, kind: output, shape index: {}]  }
   0x1   :  { %s2456_s20 = smov 0   ;;  %s2458_s21 = smov 0  }
   0x2   :  { %s2460_s22 = smov 0  }
   0x3 LB: > { %s24_s23 = sadd.s32 1, %s2399_s20  ;;  %s27_s24 = sadd.s32 1, %s2403_s21  ;;  %s2407_s22 = sphi %s2460_s22, %s15_s22   ;;  %s2403_s21 = sphi %s2458_s21, %s3147_s21   ;;  %s2399_s20 = sphi %s2456_s20, %s3146_s20   ;;  %s2395_s19 = sphi %s2454_s19, %s3145_s19   ;;  %s2391_s18 = sphi %s2452_s18, %s3144_s18  }
   0x4   : > { %p25_p0 = scmp.ge.s32.totalorder %s24_s23, 2  ;;  %p2056_p1 = scmp.ge.s32.totalorder %s2407_s22, 1 }
   0x5   : > { %p243_p2 = scmp.lt.s32.totalorder %s2407_s22, 9 }
   0x6   : > { %s3149_s23 = smov (%p25_p0, %s24_s23), 0  ;;  %s3151_s24 = smov (!%p25_p0, %s27_s24), %s2403_s21 }
   0x7   : > { %p244_p3 = pnand %p2056_p1, %p243_p2  ;;  %p29_p4 = scmp.ge.s32.totalorder %s3151_s24, 4 }
   0x8   : > { %p297_p5 = scmp.lt.s32.totalorder (!%p244_p3), %s2395_s19, 3  ;;  %p295_p6 = scmp.lt.s32.totalorder (!%p244_p3), %s2391_s18, 1 }
   0x9   : > { %s3153_s24 = smov (%p29_p4, %s3151_s24), 0  ;;  %247 = sbr.rel (%p244_p3) target bundleno = 624 (0x270), region = 40 }
   0xa   : > { %s2885_s29 = smov (!%p244_p3), 0  }
   0xe   : > { %s3155_s19 = smov (!%p297_p5, %s2395_s19), 3  ;;  %s3157_s18 = smov (!%p295_p6, %s2391_s18), 1  ;;  %vm343_vm0 = vcmask 261120   ;;  %v499_v11 = vlaneseq  ;;  %v2421_v45 = vmov 1966171168  }
   0xf   : > { %s2167_s25 = sshll.u32 %s3155_s19, 6  ;;  %s319_s6 = scalar_lea.vmem %s3140_s4, %s3155_s19  ;;  %v497_v46 = vunpack.c.l.s4 %v2421_v45 }
  0x10   : > { %s2488_s28 = scalar_lea.vmem %s3137_s1, %s2167_s25  ;;  %s2057_s7 = sshll.u32 %s3155_s19, 1  ;;  %v2496_v1 = vld [vmem:[%s319_s6] ss:$0 sm:$0xff]  ;;  %v2537_v12 = vshrl.u32 %v499_v11, 7 }
  0x11   : > { %v340_v0 = vld [vmem:[%s2488_s28 + $0x38] sm:$0xff]  ;;  %v339_v2 = vld [vmem:[%s2488_s28 + $0x30] sm:$0xff]  ;;  %s2058_s8 = sshll.u32 %s3157_s18, 3  ;;  %v338_v3 = vld [vmem:[%s2488_s28 + $0x28] sm:$0xff]  ;;  %s311_s25 = scalar_lea.vmem %s3138_s2, %s3155_s19  ;;  %v498_v50 = vunpack.c.0.s8 %v497_v46 }
  0x12   : > { %2201 = vmatprep.subr.msk.mxu0 %vm343_vm0, %v340_v0  ;;  %s301_s9 = sadd.s32 %s2058_s8, %s2057_s7  ;;  %v337_v5 = vld [vmem:[%s2488_s28 + $0x20] sm:$0xff]  ;;  %v336_v6 = vld [vmem:[%s2488_s28 + $0x18] sm:$0xff]  ;;  %v335_v7 = vld [vmem:[%s2488_s28 + $0x10] sm:$0xff]  ;;  %v2544_v13 = vsub.s32 0, %v2537_v12  ;;  %v815_v18 = vsub.s32 1, %v2537_v12  ;;  %v827_v25 = vsub.s32 2, %v2537_v12 }
  0x13   : > { %2202 = vmatpush3.xpose.msk.msra.mxu0 %vm343_vm0, %v340_v0  ;;  %s2059_s10 = sshll.u32 %s301_s9, 3  ;;  %v334_v8 = vld [vmem:[%s2488_s28 + $0x8] sm:$0xff]  ;;  %v333_v9 = vld [vmem:[%s2488_s28] sm:$0xff]  ;;  %v839_v30 = vsub.s32 3, %v2537_v12  ;;  %v851_v32 = vsub.s32 4, %v2537_v12  ;;  %v863_v34 = vsub.s32 5, %v2537_v12  ;;  %v2623_v57 = vsub.s32 %v498_v50, %v2537_v12 }
  0x14   : > { %2203 = vmatprep.subr.msk.mxu0 %vm343_vm0, %v339_v2  ;;  %s303_s13 = scalar_lea.vmem %s3136_s0, %s2059_s10  ;;  %s2509_s16 = scalar_lea.vmem %s3141_s5, %s2059_s10  ;;  %v2077_v14 = vld [vmem:[%s311_s25] ss:$0 sm:$0xff]  ;;  %v875_v36 = vsub.s32 6, %v2537_v12 }
  0x15   : > { %v2511_v4 = vld [vmem:[%s303_s13] sm:$0xff]  ;;  %v2533_v10 = vld [vmem:[%s303_s13 + $0x8] sm:$0xff]  ;;  %s2168_s26 = sshll.u32 %s3155_s19, 4 }
  0x16   : > { %2217 = vmatprep.mubr.msk.f32.mxu0 %vm343_vm0, %v2511_v4  ;;  %s316_s28 = scalar_lea.vmem %s3139_s3, %s2168_s26 }
  0x17   : > { %2204 = vmatpush3.xpose.msk.msra.mxu0 %vm343_vm0, %v339_v2 }
  0x18   : > { %2205 = vmatprep.subr.msk.mxu0 %vm343_vm0, %v338_v3 }
  0x1b   : > { %2206 = vmatpush3.xpose.msk.msra.mxu0 %vm343_vm0, %v338_v3 }
  0x1c   : > { %2207 = vmatprep.subr.msk.mxu0 %vm343_vm0, %v337_v5 }
  0x1f   : > { %2208 = vmatpush3.xpose.msk.msra.mxu0 %vm343_vm0, %v337_v5 }
  0x20   : > { %2209 = vmatprep.subr.msk.mxu0 %vm343_vm0, %v336_v6 }
  0x23   : > { %2210 = vmatpush3.xpose.msk.msra.mxu0 %vm343_vm0, %v336_v6 }
  0x24   : > { %2211 = vmatprep.subr.msk.mxu0 %vm343_vm0, %v335_v7 }
  0x27   : > { %2212 = vmatpush3.xpose.msk.msra.mxu0 %vm343_vm0, %v335_v7 }
  0x28   : > { %2213 = vmatprep.subr.msk.mxu0 %vm343_vm0, %v334_v8 }
  0x2b   : > { %2214 = vmatpush3.xpose.msk.msra.mxu0 %vm343_vm0, %v334_v8 }
  0x2c   : > { %2215 = vmatprep.subr.msk.mxu0 %vm343_vm0, %v333_v9 }
  0x2f   : > { %2216 = vmatpush3.xpose.msk.msra.mxu0 %vm343_vm0, %v333_v9 }
  0x32   : > { %2218 = vmatmul.mubr.msk.f32.vlgmr.msra.gmra.mxu0 %vm343_vm0, %v2533_v10 }
  0xf2   : > { %v2546_v15 = vpop.f32.mrf.mxu0 }
  0xf3   : > { %v2549_v16 = vadd.f32 %v2546_v15, %v2077_v14  ;;  %v2553_v17 = vrot.slane %v2546_v15, %v2544_v13  ;;  %v2566_v24 = vrot.slane %v2546_v15, %v815_v18  ;;  %v2572_v29 = vrot.slane %v2546_v15, %v827_v25 }
  0xf4   : > { %v2556_v19 = vpop.f32.mrf.mxu0  ;;  %v2578_v31 = vrot.slane %v2546_v15, %v839_v30  ;;  %v2584_v33 = vrot.slane %v2546_v15, %v851_v32  ;;  %v2590_v35 = vrot.slane %v2546_v15, %v863_v34  ;;  %v2598_v40 = vrot.slane %v2546_v15, %v875_v36 }
  0xf5   : > { %v464_v20 = vand.u32 2147483647, %v2549_v16  ;;  %v2560_v21 = vadd.f32 %v2077_v14, %v2556_v19  ;;  %907 = vbcast.lane.b32.xlu1 %v2553_v17, 296  ;;  %903 = vbcast.lane.b32.xlu0 %v2553_v17, 288  ;;  %v2603_v42 = vrot.slane %v2556_v19, %v815_v18  ;;  %v2607_v43 = vrot.slane %v2556_v19, %v2544_v13 }
  0xf6   : > { %v2614_v49 = vrot.slane %v2556_v19, %v827_v25  ;;  %v458_v54 = vmax.f32 %v2549_v16, 0.0  ;;  %v2620_v56 = vrot.slane %v2556_v19, %v839_v30  ;;  %vm460_vm2 = vcmp.ne.f32.partialorder %v2549_v16, %v2549_v16 }
  0xf7   : > { %v466_v22 = vsub.f32 0.0, %v464_v20  ;;  %v463_v23 = vand.u32 2147483647, %v2560_v21  ;;  %v2632_v0 = vrot.slane %v2556_v19, %v851_v32  ;;  %v2640_v6 = vrot.slane %v2556_v19, %v863_v34 }
  0xf8   : > { %v2674_v45 = vrot.slane %v2556_v19, %v875_v36  ;;  %vm459_vm4 = vcmp.ne.f32.partialorder %v2560_v21, %v2560_v21 }
  0xf9   : > { %v469_v26 = vmul.f32 1.442695, %v466_v22  ;;  %v465_v27 = vsub.f32 0.0, %v463_v23  ;;  %919 = vbcast.lane.b32.xlu1 %v2566_v24, 296  ;;  %915 = vbcast.lane.b32.xlu0 %v2566_v24, 288  ;;  %v2651_v22 = vld [vmem:[%s316_s28] sm:$0xff] }
  0xfb   : > { %2285 = vpow2.f32 %v469_v26  ;;  %v467_v28 = vmul.f32 1.442695, %v465_v27 }
  0xfd   : > { %2287 = vpow2.f32 %v467_v28  ;;  %931 = vbcast.lane.b32.xlu1 %v2572_v29, 296  ;;  %927 = vbcast.lane.b32.xlu0 %v2572_v29, 288 }
 0x101   : > { %943 = vbcast.lane.b32.xlu1 %v2578_v31, 296  ;;  %939 = vbcast.lane.b32.xlu0 %v2578_v31, 288 }
 0x105   : > { %955 = vbcast.lane.b32.xlu1 %v2584_v33, 296  ;;  %951 = vbcast.lane.b32.xlu0 %v2584_v33, 288 }
 0x108   : > { %v2286_v37 = vpop.eup %2285 }
 0x109   : > { %967 = vbcast.lane.b32.xlu1 %v2590_v35, 296  ;;  %963 = vbcast.lane.b32.xlu0 %v2590_v35, 288  ;;  %v480_v38 = vadd.f32 1.0, %v2286_v37  ;;  %v483_v44 = vmul.f32 -0.5, %v2286_v37  ;;  %v486_v48 = vand.u32 2147483647, %v2286_v37 }
 0x10a   : > { %v2288_v39 = vpop.eup %2287 }
 0x10b   : > { %2289 = vlog2.f32 %v480_v38  ;;  %v471_v41 = vadd.f32 1.0, %v2288_v39  ;;  %v484_v47 = vadd.f32 1.0, %v483_v44  ;;  %vm487_vm1 = vcmp.lt.f32.partialorder %v486_v48, 0.0004427343 }
 0x10c   : > { %v474_v55 = vmul.f32 -0.5, %v2288_v39  ;;  %v477_v63 = vand.u32 2147483647, %v2288_v39  ;;  %v887_v38 = vsub.s32 7, %v2537_v12  ;;  %v457_v44 = vmax.f32 %v2560_v21, 0.0 }
 0x10d   : > { %979 = vbcast.lane.b32.xlu1 %v2598_v40, 296  ;;  %975 = vbcast.lane.b32.xlu0 %v2598_v40, 288  ;;  %2291 = vlog2.f32 %v471_v41  ;;  %v485_v53 = vmul.f32 %v2286_v37, %v484_v47  ;;  %v2664_v37 = vld [vmem:[%s316_s28 + $0x8] sm:$0xff] }
 0x10e   : > { %v475_v62 = vadd.f32 1.0, %v474_v55  ;;  %vm2647_vm3 = vcmp.lt.f32.partialorder %v477_v63, 0.0004427343 }
 0x110   : > { %v476_v18 = vmul.f32 %v2288_v39, %v475_v62  ;;  %v2691_v62 = vrot.slane %v2546_v15, %v887_v38 }
 0x111   : > { %819 = vbcast.lane.b32.xlu1 %v2603_v42, 288  ;;  %807 = vbcast.lane.b32.xlu0 %v2607_v43, 288 }
 0x115   : > { %823 = vbcast.lane.b32.xlu1 %v2603_v42, 296  ;;  %811 = vbcast.lane.b32.xlu0 %v2607_v43, 296 }
 0x118   : > { %v2290_v51 = vpop.eup %2289 }
 0x119   : > { %835 = vbcast.lane.b32.xlu1 %v2614_v49, 296  ;;  %831 = vbcast.lane.b32.xlu0 %v2614_v49, 288  ;;  %v482_v52 = vmul.f32 0.6931472, %v2290_v51 }
 0x11a   : > { %v2292_v60 = vpop.eup %2291 }
 0x11b   : > { %v488_v58 = vsel %vm487_vm1, %v485_v53, %v482_v52  ;;  %v473_v7 = vmul.f32 0.6931472, %v2292_v60 }
 0x11c   : > { %v490_v59 = vadd.f32 %v488_v58, %v458_v54  ;;  %v2681_v54 = vrot.slane %v2556_v19, %v887_v38 }
 0x11d   : > { %847 = vbcast.lane.b32.xlu1 %v2620_v56, 296  ;;  %843 = vbcast.lane.b32.xlu0 %v2620_v56, 288  ;;  %v479_v34 = vsel %vm2647_vm3, %v476_v18, %v473_v7 }
 0x11e   : > { %v492_v61 = vsel %vm460_vm2, %v2549_v16, %v490_v59  ;;  %v489_v53 = vadd.f32 %v479_v34, %v457_v44 }
 0x11f   : > { %v544_v2 = vcombine.high %v492_v61, %v492_v61  ;;  %v551_v3 = vrot.slane %v492_v61, %v2623_v57  ;;  %v994_v5 = vmul.f32 %v492_v61, %v2533_v10 }
 0x120   : > { %v2701_v7 = vsel %vm459_vm4, %v2560_v21, %v489_v53 }
 0x121   : > { %859 = vbcast.lane.b32.xlu1 %v2632_v0, 296  ;;  %855 = vbcast.lane.b32.xlu0 %v2632_v0, 288  ;;  %v558_v8 = vrot.slane %v544_v2, %v2623_v57  ;;  %v559_v9 = vcombine.high %v551_v3, %v551_v3  ;;  %v567_v11 = vrot.slane %v551_v3, %v2623_v57 }
 0x122   : > { %v1053_v14 = vrot.slane %v994_v5, %v2623_v57  ;;  %v1046_v16 = vcombine.high %v994_v5, %v994_v5 }
 0x123   : > { %v560_v23 = vcombine.high %v558_v8, %v558_v8  ;;  %v574_v25 = vrot.slane %v558_v8, %v2623_v57  ;;  %v581_v26 = vrot.slane %v559_v9, %v2623_v57  ;;  %v589_v27 = vcombine.high %v567_v11, %v567_v11 }
 0x124   : > { %v628_v28 = vrot.slane %v567_v11, %v2544_v13  ;;  %v2657_v30 = vrot.slane %v1053_v14, %v2623_v57  ;;  %v2660_v32 = vrot.slane %v1046_v16, %v2623_v57  ;;  %v1061_v36 = vcombine.high %v1053_v14, %v1053_v14 }
 0x125   : > { %871 = vbcast.lane.b32.xlu1 %v2640_v6, 296  ;;  %867 = vbcast.lane.b32.xlu0 %v2640_v6, 288  ;;  %v588_v39 = vrot.slane %v560_v23, %v2623_v57  ;;  %v591_v41 = vcombine.high %v581_v26, %v581_v26  ;;  %v632_v46 = vrot.slane %v581_v26, %v2544_v13 }
 0x126   : > { %v636_v47 = vrot.slane %v589_v27, %v2544_v13  ;;  %v689_v48 = vmul.f32 %v628_v28, %v2651_v22  ;;  %v590_v50 = vcombine.high %v574_v25, %v574_v25  ;;  %v690_v55 = vmul.f32 %v628_v28, %v2664_v37 }
 0x127   : > { %v592_v51 = vcombine.high %v588_v39, %v588_v39  ;;  %v640_v52 = vrot.slane %v591_v41, %v2544_v13  ;;  %v691_v12 = vmul.f32 %v632_v46, %v2651_v22  ;;  %v644_v58 = vrot.slane %v574_v25, %v2544_v13 }
 0x128   : > { %v692_v59 = vmul.f32 %v632_v46, %v2664_v37  ;;  %v693_v60 = vmul.f32 %v636_v47, %v2651_v22  ;;  %v737_v61 = vmul.f32 1.442695, %v689_v48  ;;  %v648_v19 = vrot.slane %v588_v39, %v2544_v13 }
 0x129   : > { %883 = vbcast.lane.b32.xlu1 %v2674_v45, 296  ;;  %879 = vbcast.lane.b32.xlu0 %v2674_v45, 288  ;;  %v694_v63 = vmul.f32 %v636_v47, %v2664_v37  ;;  %v652_v2 = vrot.slane %v590_v50, %v2544_v13  ;;  %v656_v3 = vrot.slane %v592_v51, %v2544_v13  ;;  %v739_v15 = vmul.f32 1.442695, %v690_v55 }
 0x12a   : > { %v695_v5 = vmul.f32 %v640_v52, %v2651_v22  ;;  %v696_v8 = vmul.f32 %v640_v52, %v2664_v37  ;;  %2293 = vpow2.f32 %v737_v61  ;;  %v741_v9 = vmul.f32 1.442695, %v691_v12 }
 0x12b   : > { %v697_v11 = vmul.f32 %v644_v58, %v2651_v22  ;;  %v743_v14 = vmul.f32 1.442695, %v692_v59  ;;  %v745_v16 = vmul.f32 1.442695, %v693_v60  ;;  %v2708_v18 = vrot.slane %v1061_v36, %v2623_v57 }
 0x12c   : > { %v698_v20 = vmul.f32 %v644_v58, %v2664_v37  ;;  %v699_v21 = vmul.f32 %v648_v19, %v2651_v22  ;;  %2295 = vpow2.f32 %v739_v15  ;;  %v747_v23 = vmul.f32 1.442695, %v694_v63 }
 0x12d   : > { %895 = vbcast.lane.b32.xlu1 %v2681_v54, 296  ;;  %891 = vbcast.lane.b32.xlu0 %v2681_v54, 288  ;;  %2297 = vpow2.f32 %v741_v9  ;;  %v749_v25 = vmul.f32 1.442695, %v695_v5  ;;  %v495_v26 = vcombine.high %v2701_v7, %v2701_v7  ;;  %v502_v27 = vrot.slane %v2701_v7, %v2623_v57 }
 0x12e   : > { %v700_v28 = vmul.f32 %v648_v19, %v2664_v37  ;;  %v701_v34 = vmul.f32 %v652_v2, %v2651_v22  ;;  %2299 = vpow2.f32 %v743_v14  ;;  %v751_v38 = vmul.f32 1.442695, %v696_v8 }
 0x12f   : > { %v702_v39 = vmul.f32 %v652_v2, %v2664_v37  ;;  %v703_v41 = vmul.f32 %v656_v3, %v2651_v22  ;;  %2301 = vpow2.f32 %v745_v16  ;;  %v753_v44 = vmul.f32 1.442695, %v697_v11 }
 0x130   : > { %2303 = vpow2.f32 %v747_v23  ;;  %v755_v46 = vmul.f32 1.442695, %v698_v20  ;;  %v757_v47 = vmul.f32 1.442695, %v699_v21  ;;  %v2724_v48 = vrot.slane %v2660_v32, %v2623_v57 }
 0x131   : > { %991 = vbcast.lane.b32.xlu1 %v2691_v62, 296  ;;  %987 = vbcast.lane.b32.xlu0 %v2691_v62, 288  ;;  %2305 = vpow2.f32 %v749_v25  ;;  %v1062_v50 = vcombine.high %v2660_v32, %v2660_v32  ;;  %v509_v51 = vrot.slane %v495_v26, %v2623_v57  ;;  %v510_v52 = vcombine.high %v502_v27, %v502_v27 }
 0x132   : > { %v704_v53 = vmul.f32 %v656_v3, %v2664_v37  ;;  %2307 = vpow2.f32 %v751_v38  ;;  %v759_v55 = vmul.f32 1.442695, %v700_v28  ;;  %v761_v12 = vmul.f32 1.442695, %v701_v34 }
 0x133   : > { %2309 = vpow2.f32 %v753_v44  ;;  %v2731_v36 = vrot.slane %v1062_v50, %v2623_v57  ;;  %v763_v58 = vmul.f32 1.442695, %v702_v39  ;;  %v518_v59 = vrot.slane %v502_v27, %v2623_v57 }
 0x134   : > { %2311 = vpow2.f32 %v755_v46  ;;  %v532_v60 = vrot.slane %v510_v52, %v2623_v57  ;;  %v765_v32 = vmul.f32 1.442695, %v703_v41  ;;  %v511_v61 = vcombine.high %v509_v51, %v509_v51 }
 0x135   : > { %2313 = vpow2.f32 %v757_v47  ;;  %v525_v19 = vrot.slane %v509_v51, %v2623_v57  ;;  %v767_v63 = vmul.f32 1.442695, %v704_v53  ;;  %v540_v2 = vcombine.high %v518_v59, %v518_v59 }
 0x136   : > { %2315 = vpow2.f32 %v759_v55  ;;  %v542_v3 = vcombine.high %v532_v60, %v532_v60  ;;  %v596_v8 = vrot.slane %v518_v59, %v2544_v13  ;;  %v600_v15 = vrot.slane %v532_v60, %v2544_v13 }
 0x137   : > { %v2294_v5 = vpop.eup %2293  ;;  %2317 = vpow2.f32 %v761_v12  ;;  %v604_v9 = vrot.slane %v540_v2, %v2544_v13  ;;  %v539_v14 = vrot.slane %v511_v61, %v2623_v57  ;;  %v541_v16 = vcombine.high %v525_v19, %v525_v19 }
 0x138   : > { %2319 = vpow2.f32 %v763_v58  ;;  %785 = vst.msk [vmem:[#allocation2 + $0x80] sm:$0xff] %vm343_vm0, %v2294_v5  ;;  %v608_v20 = vrot.slane %v542_v3, %v2544_v13  ;;  %v673_v23 = vmul.f32 %v596_v8, %v2651_v22  ;;  %v674_v25 = vmul.f32 %v596_v8, %v2664_v37 }
 0x139   : > { %v2296_v11 = vpop.eup %2295  ;;  %2321 = vpow2.f32 %v765_v32  ;;  %v675_v26 = vmul.f32 %v600_v15, %v2651_v22  ;;  %v676_v28 = vmul.f32 %v600_v15, %v2664_v37  ;;  %v612_v38 = vrot.slane %v525_v19, %v2544_v13 }
 0x13a   : > { %v2298_v21 = vpop.eup %2297  ;;  %2323 = vpow2.f32 %v767_v63  ;;  %786 = vst.msk [vmem:[#allocation2 + $0x88] sm:$0xff] %vm343_vm0, %v2296_v11  ;;  %v677_v39 = vmul.f32 %v604_v9, %v2651_v22  ;;  %v543_v44 = vcombine.high %v539_v14, %v539_v14  ;;  %v616_v46 = vrot.slane %v539_v14, %v2544_v13 }
 0x13b   : > { %v2300_v27 = vpop.eup %2299  ;;  %787 = vst.msk [vmem:[#allocation2 + $0x90] sm:$0xff] %vm343_vm0, %v2298_v21  ;;  %v620_v47 = vrot.slane %v541_v16, %v2544_v13  ;;  %v678_v50 = vmul.f32 %v604_v9, %v2664_v37  ;;  %v679_v52 = vmul.f32 %v608_v20, %v2651_v22  ;;  %v705_v53 = vmul.f32 1.442695, %v673_v23 }
 0x13c   : > { %v2302_v34 = vpop.eup %2301  ;;  %788 = vst.msk [vmem:[#allocation2 + $0x98] sm:$0xff] %vm343_vm0, %v2300_v27  ;;  %v707_v55 = vmul.f32 1.442695, %v674_v25  ;;  %v709_v12 = vmul.f32 1.442695, %v675_v26  ;;  %v680_v59 = vmul.f32 %v608_v20, %v2664_v37  ;;  %v993_v32 = vmul.f32 %v2701_v7, %v2511_v4 }
 0x13d   : > { %v2304_v41 = vpop.eup %2303  ;;  %789 = vst.msk [vmem:[#allocation2 + $0xa0] sm:$0xff] %vm343_vm0, %v2302_v34  ;;  %v711_v60 = vmul.f32 1.442695, %v676_v28  ;;  %v681_v19 = vmul.f32 %v612_v38, %v2651_v22  ;;  %v682_v63 = vmul.f32 %v612_v38, %v2664_v37  ;;  %2325 = vpow2.f32 %v705_v53 }
 0x13e   : > { %v2306_v51 = vpop.eup %2305  ;;  %790 = vst.msk [vmem:[#allocation2 + $0xa8] sm:$0xff] %vm343_vm0, %v2304_v41  ;;  %v713_v2 = vmul.f32 1.442695, %v677_v39  ;;  %v624_v5 = vrot.slane %v543_v44, %v2544_v13  ;;  %v683_v8 = vmul.f32 %v616_v46, %v2651_v22  ;;  %2327 = vpow2.f32 %v707_v55 }
 0x13f   : > { %v2308_v58 = vpop.eup %2307  ;;  %791 = vst.msk [vmem:[#allocation2 + $0xb0] sm:$0xff] %vm343_vm0, %v2306_v51  ;;  %v715_v15 = vmul.f32 1.442695, %v678_v50  ;;  %v684_v7 = vmul.f32 %v616_v46, %v2664_v37  ;;  %v685_v11 = vmul.f32 %v620_v47, %v2651_v22  ;;  %2329 = vpow2.f32 %v709_v12 }
 0x140   : > { %v2310_v61 = vpop.eup %2309  ;;  %792 = vst.msk [vmem:[#allocation2 + $0xb8] sm:$0xff] %vm343_vm0, %v2308_v58  ;;  %v717_v14 = vmul.f32 1.442695, %v679_v52  ;;  %2331 = vpow2.f32 %v711_v60  ;;  %v719_v20 = vmul.f32 1.442695, %v680_v59  ;;  %v1004_v21 = vrot.slane %v993_v32, %v2623_v57 }
 0x141   : > { %v2312_v3 = vpop.eup %2311  ;;  %793 = vst.msk [vmem:[#allocation2 + $0xc0] sm:$0xff] %vm343_vm0, %v2310_v61  ;;  %v997_v23 = vcombine.high %v993_v32, %v993_v32  ;;  %v686_v26 = vmul.f32 %v620_v47, %v2664_v37  ;;  %2333 = vpow2.f32 %v713_v2  ;;  %v721_v27 = vmul.f32 1.442695, %v681_v19 }
 0x142   : > { %v2314_v9 = vpop.eup %2313  ;;  %794 = vst.msk [vmem:[#allocation2 + $0xc8] sm:$0xff] %vm343_vm0, %v2312_v3  ;;  %v723_v28 = vmul.f32 1.442695, %v682_v63  ;;  %2335 = vpow2.f32 %v715_v15  ;;  %v1012_v38 = vcombine.high %v1004_v21, %v1004_v21  ;;  %v2776_v39 = vrot.slane %v1004_v21, %v2623_v57 }
 0x143   : > { %v2316_v16 = vpop.eup %2315  ;;  %795 = vst.msk [vmem:[#allocation2 + $0xd0] sm:$0xff] %vm343_vm0, %v2314_v9  ;;  %v1011_v41 = vrot.slane %v997_v23, %v2623_v57  ;;  %v687_v46 = vmul.f32 %v624_v5, %v2651_v22  ;;  %2337 = vpow2.f32 %v717_v14  ;;  %v725_v47 = vmul.f32 1.442695, %v683_v8 }
 0x144   : > { %v2318_v25 = vpop.eup %2317  ;;  %796 = vst.msk [vmem:[#allocation2 + $0xd8] sm:$0xff] %vm343_vm0, %v2316_v16  ;;  %v688_v51 = vmul.f32 %v624_v5, %v2664_v37  ;;  %2339 = vpow2.f32 %v719_v20  ;;  %v727_v52 = vmul.f32 1.442695, %v684_v7  ;;  %v2784_v53 = vrot.slane %v1012_v38, %v2623_v57 }
 0x145   : > { %v2320_v34 = vpop.eup %2319  ;;  %797 = vst.msk [vmem:[#allocation2 + $0xe0] sm:$0xff] %vm343_vm0, %v2318_v25  ;;  %2341 = vpow2.f32 %v721_v27  ;;  %v729_v55 = vmul.f32 1.442695, %v685_v11  ;;  %v2788_v12 = vrot.slane %v1011_v41, %v2623_v57  ;;  %v1013_v22 = vcombine.high %v1011_v41, %v1011_v41 }
 0x146   : > { %v2322_v44 = vpop.eup %2321  ;;  %798 = vst.msk [vmem:[#allocation2 + $0xe8] sm:$0xff] %vm343_vm0, %v2320_v34  ;;  %2343 = vpow2.f32 %v723_v28  ;;  %v731_v58 = vmul.f32 1.442695, %v686_v26  ;;  %v733_v59 = vmul.f32 1.442695, %v687_v46  ;;  %v1130_v21 = vrot.slane %v2657_v30, %v2544_v13 }
 0x147   : > { %v2324_v50 = vpop.eup %2323  ;;  %799 = vst.msk [vmem:[#allocation2 + $0xf0] sm:$0xff] %vm343_vm0, %v2322_v44  ;;  %2345 = vpow2.f32 %v725_v47  ;;  %v2791_v60 = vrot.slane %v1013_v22, %v2623_v57  ;;  %v735_v37 = vmul.f32 1.442695, %v688_v51  ;;  %v1134_v28 = vrot.slane %v2708_v18, %v2544_v13 }
 0x148   : > { %800 = vst.msk [vmem:[#allocation2 + $0xf8] sm:$0xff] %vm343_vm0, %v2324_v50  ;;  %2347 = vpow2.f32 %v727_v52  ;;  %v1091_v34 = vcombine.high %v2657_v30, %v2657_v30  ;;  %v1093_v50 = vcombine.high %v2708_v18, %v2708_v18  ;;  %v1146_v18 = vrot.slane %v2724_v48, %v2544_v13 }
 0x149   : > { %2349 = vpow2.f32 %v729_v55 }
 0x14a   : > { %v2326_v32 = vpop.eup %2325  ;;  %2351 = vpow2.f32 %v731_v58  ;;  %v1138_v47 = vrot.slane %v1091_v34, %v2544_v13  ;;  %v1142_v30 = vrot.slane %v1093_v50, %v2544_v13 }
 0x14b   : > { %v2328_v61 = vpop.eup %2327  ;;  %2353 = vpow2.f32 %v733_v59  ;;  %769 = vst.msk [vmem:[#allocation2] sm:$0xff] %vm343_vm0, %v2326_v32 }
 0x14c   : > { %v2330_v19 = vpop.eup %2329  ;;  %2355 = vpow2.f32 %v735_v37  ;;  %770 = vst.msk [vmem:[#allocation2 + $0x8] sm:$0xff] %vm343_vm0, %v2328_v61 }
 0x14d   : > { %v2332_v63 = vpop.eup %2331  ;;  %771 = vst.msk [vmem:[#allocation2 + $0x10] sm:$0xff] %vm343_vm0, %v2330_v19 }
 0x14e   : > { %v2334_v2 = vpop.eup %2333  ;;  %772 = vst.msk [vmem:[#allocation2 + $0x18] sm:$0xff] %vm343_vm0, %v2332_v63 }
 0x14f   : > { %v2336_v57 = vpop.eup %2335  ;;  %773 = vst.msk [vmem:[#allocation2 + $0x20] sm:$0xff] %vm343_vm0, %v2334_v2 }
 0x150   : > { %v2338_v3 = vpop.eup %2337  ;;  %774 = vst.msk [vmem:[#allocation2 + $0x28] sm:$0xff] %vm343_vm0, %v2336_v57  ;;  %v1150_v57 = vrot.slane %v2731_v36, %v2544_v13 }
 0x151   : > { %v2340_v5 = vpop.eup %2339  ;;  %775 = vst.msk [vmem:[#allocation2 + $0x30] sm:$0xff] %vm343_vm0, %v2338_v3  ;;  %v1092_v3 = vcombine.high %v2724_v48, %v2724_v48  ;;  %v1102_v48 = vrot.slane %v2784_v53, %v2544_v13 }
 0x152   : > { %v2342_v8 = vpop.eup %2341  ;;  %776 = vst.msk [vmem:[#allocation2 + $0x38] sm:$0xff] %vm343_vm0, %v2340_v5 }
 0x153   : > { %v2344_v15 = vpop.eup %2343  ;;  %777 = vst.msk [vmem:[#allocation2 + $0x40] sm:$0xff] %vm343_vm0, %v2342_v8 }
 0x154   : > { %v2346_v9 = vpop.eup %2345  ;;  %778 = vst.msk [vmem:[#allocation2 + $0x48] sm:$0xff] %vm343_vm0, %v2344_v15 }
 0x155   : > { %v2348_v7 = vpop.eup %2347  ;;  %779 = vst.msk [vmem:[#allocation2 + $0x50] sm:$0xff] %vm343_vm0, %v2346_v9 }
 0x156   : > { %v2350_v11 = vpop.eup %2349  ;;  %780 = vst.msk [vmem:[#allocation2 + $0x58] sm:$0xff] %vm343_vm0, %v2348_v7  ;;  %v1154_v7 = vrot.slane %v1092_v3, %v2544_v13 }
 0x157   : > { %v2352_v14 = vpop.eup %2351  ;;  %781 = vst.msk [vmem:[#allocation2 + $0x60] sm:$0xff] %vm343_vm0, %v2350_v11 }
 0x158   : > { %v2354_v16 = vpop.eup %2353  ;;  %782 = vst.msk [vmem:[#allocation2 + $0x68] sm:$0xff] %vm343_vm0, %v2352_v14 }
 0x159   : > { %v2356_v20 = vpop.eup %2355  ;;  %783 = vst.msk [vmem:[#allocation2 + $0x70] sm:$0xff] %vm343_vm0, %v2354_v16 }
 0x15a   : > { %784 = vst.msk [vmem:[#allocation2 + $0x78] sm:$0xff] %vm343_vm0, %v2356_v20 }
 0x167   : > { %v908_v23 = vpop.permute.xlu1 %907  ;;  %v904_v25 = vpop.permute.xlu0 %903 }
 0x168   : > { %v1192_v26 = vmul.f32 %v1130_v21, %v908_v23  ;;  %v1191_v27 = vmul.f32 %v1130_v21, %v904_v25  ;;  %v1098_v21 = vrot.slane %v2776_v39, %v2544_v13 }
 0x16a   : > { %1224 = vst.msk [vmem:[#allocation3 + $0x88] sm:$0xff] %vm343_vm0, %v1192_v26  ;;  %1223 = vst.msk [vmem:[#allocation3 + $0x80] sm:$0xff] %vm343_vm0, %v1191_v27 }
 0x16b   : > { %v920_v38 = vpop.permute.xlu1 %919  ;;  %v916_v41 = vpop.permute.xlu0 %915 }
 0x16c   : > { %v1194_v44 = vmul.f32 %v1134_v28, %v920_v38  ;;  %v1193_v46 = vmul.f32 %v1134_v28, %v916_v41  ;;  %v1042_v28 = vcombine.high %v2776_v39, %v2776_v39 }
 0x16e   : > { %1226 = vst.msk [vmem:[#allocation3 + $0x98] sm:$0xff] %vm343_vm0, %v1194_v44  ;;  %1225 = vst.msk [vmem:[#allocation3 + $0x90] sm:$0xff] %vm343_vm0, %v1193_v46  ;;  %v1106_v46 = vrot.slane %v1042_v28, %v2544_v13 }
 0x16f   : > { %v932_v51 = vpop.permute.xlu1 %931  ;;  %v928_v52 = vpop.permute.xlu0 %927 }
 0x170   : > { %v1196_v55 = vmul.f32 %v1138_v47, %v932_v51  ;;  %v1195_v22 = vmul.f32 %v1138_v47, %v928_v52  ;;  %v1044_v47 = vcombine.high %v2784_v53, %v2784_v53  ;;  %v1114_v53 = vrot.slane %v2788_v12, %v2544_v13 }
 0x172   : > { %1228 = vst.msk [vmem:[#allocation3 + $0xa8] sm:$0xff] %vm343_vm0, %v1196_v55  ;;  %1227 = vst.msk [vmem:[#allocation3 + $0xa0] sm:$0xff] %vm343_vm0, %v1195_v22  ;;  %v1110_v39 = vrot.slane %v1044_v47, %v2544_v13 }
 0x173   : > { %v944_v58 = vpop.permute.xlu1 %943  ;;  %v940_v59 = vpop.permute.xlu0 %939 }
 0x174   : > { %v1198_v37 = vmul.f32 %v1142_v30, %v944_v58  ;;  %v1197_v32 = vmul.f32 %v1142_v30, %v940_v59 }
 0x176   : > { %1230 = vst.msk [vmem:[#allocation3 + $0xb8] sm:$0xff] %vm343_vm0, %v1198_v37  ;;  %1229 = vst.msk [vmem:[#allocation3 + $0xb0] sm:$0xff] %vm343_vm0, %v1197_v32 }
 0x177   : > { %v956_v61 = vpop.permute.xlu1 %955  ;;  %v952_v19 = vpop.permute.xlu0 %951 }
 0x178   : > { %v1200_v63 = vmul.f32 %v1146_v18, %v956_v61  ;;  %v1199_v2 = vmul.f32 %v1146_v18, %v952_v19  ;;  %v1118_v19 = vrot.slane %v2791_v60, %v2544_v13 }
 0x17a   : > { %1232 = vst.msk [vmem:[#allocation3 + $0xc8] sm:$0xff] %vm343_vm0, %v1200_v63  ;;  %1231 = vst.msk [vmem:[#allocation3 + $0xc0] sm:$0xff] %vm343_vm0, %v1199_v2  ;;  %v1043_v63 = vcombine.high %v2788_v12, %v2788_v12 }
 0x17b   : > { %v968_v5 = vpop.permute.xlu1 %967  ;;  %v964_v8 = vpop.permute.xlu0 %963 }
 0x17c   : > { %v1202_v15 = vmul.f32 %v1150_v57, %v968_v5  ;;  %v1201_v9 = vmul.f32 %v1150_v57, %v964_v8  ;;  %v1122_v8 = vrot.slane %v1043_v63, %v2544_v13 }
 0x17e   : > { %1234 = vst.msk [vmem:[#allocation3 + $0xd8] sm:$0xff] %vm343_vm0, %v1202_v15  ;;  %1233 = vst.msk [vmem:[#allocation3 + $0xd0] sm:$0xff] %vm343_vm0, %v1201_v9  ;;  %v1045_v15 = vcombine.high %v2791_v60, %v2791_v60 }
 0x17f   : > { %v980_v11 = vpop.permute.xlu1 %979  ;;  %v976_v14 = vpop.permute.xlu0 %975 }
 0x180   : > { %v1204_v16 = vmul.f32 %v1154_v7, %v980_v11  ;;  %v1203_v20 = vmul.f32 %v1154_v7, %v976_v14  ;;  %v1126_v12 = vrot.slane %v1045_v15, %v2544_v13 }
 0x182   : > { %1236 = vst.msk [vmem:[#allocation3 + $0xe8] sm:$0xff] %vm343_vm0, %v1204_v16  ;;  %1235 = vst.msk [vmem:[#allocation3 + $0xe0] sm:$0xff] %vm343_vm0, %v1203_v20  ;;  %v1094_v16 = vcombine.high %v2731_v36, %v2731_v36  ;;  %v2883_v36 = vmov 0.0  }
 0x183   : > { %v820_v23 = vpop.permute.xlu1 %819  ;;  %v808_v25 = vpop.permute.xlu0 %807 }
 0x184   : > { %v1177_v26 = vmul.f32 %v1102_v48, %v820_v23  ;;  %v1175_v27 = vmul.f32 %v1098_v21, %v808_v25  ;;  %v1158_v60 = vrot.slane %v1094_v16, %v2544_v13 }
 0x186   : > { %1209 = vst.msk [vmem:[#allocation3 + $0x10] sm:$0xff] %vm343_vm0, %v1177_v26  ;;  %1207 = vst.msk [vmem:[#allocation3] sm:$0xff] %vm343_vm0, %v1175_v27 }
 0x187   : > { %v824_v34 = vpop.permute.xlu1 %823  ;;  %v812_v38 = vpop.permute.xlu0 %811 }
 0x188   : > { %v1178_v41 = vmul.f32 %v1102_v48, %v824_v34  ;;  %v1176_v44 = vmul.f32 %v1098_v21, %v812_v38  ;;  %v2881_v34 = vmov 0.0  }
 0x18a   : > { %1210 = vst.msk [vmem:[#allocation3 + $0x18] sm:$0xff] %vm343_vm0, %v1178_v41  ;;  %1208 = vst.msk [vmem:[#allocation3 + $0x8] sm:$0xff] %vm343_vm0, %v1176_v44 }
 0x18b   : > { %v836_v50 = vpop.permute.xlu1 %835  ;;  %v832_v51 = vpop.permute.xlu0 %831 }
 0x18c   : > { %v1180_v52 = vmul.f32 %v1106_v46, %v836_v50  ;;  %v1179_v55 = vmul.f32 %v1106_v46, %v832_v51 }
 0x18e   : > { %1212 = vst.msk [vmem:[#allocation3 + $0x28] sm:$0xff] %vm343_vm0, %v1180_v52  ;;  %1211 = vst.msk [vmem:[#allocation3 + $0x20] sm:$0xff] %vm343_vm0, %v1179_v55 }
 0x18f   : > { %v848_v22 = vpop.permute.xlu1 %847  ;;  %v844_v30 = vpop.permute.xlu0 %843 }
 0x190   : > { %v1182_v58 = vmul.f32 %v1110_v39, %v848_v22  ;;  %v1181_v59 = vmul.f32 %v1110_v39, %v844_v30 }
 0x192   : > { %1214 = vst.msk [vmem:[#allocation3 + $0x38] sm:$0xff] %vm343_vm0, %v1182_v58  ;;  %1213 = vst.msk [vmem:[#allocation3 + $0x30] sm:$0xff] %vm343_vm0, %v1181_v59 }
 0x193   : > { %v860_v37 = vpop.permute.xlu1 %859  ;;  %v856_v32 = vpop.permute.xlu0 %855 }
 0x194   : > { %v1184_v18 = vmul.f32 %v1114_v53, %v860_v37  ;;  %v1183_v61 = vmul.f32 %v1114_v53, %v856_v32 }
 0x196   : > { %1216 = vst.msk [vmem:[#allocation3 + $0x48] sm:$0xff] %vm343_vm0, %v1184_v18  ;;  %1215 = vst.msk [vmem:[#allocation3 + $0x40] sm:$0xff] %vm343_vm0, %v1183_v61 }
 0x197   : > { %v872_v2 = vpop.permute.xlu1 %871  ;;  %v868_v57 = vpop.permute.xlu0 %867 }
 0x198   : > { %v1186_v3 = vmul.f32 %v1118_v19, %v872_v2  ;;  %v1185_v5 = vmul.f32 %v1118_v19, %v868_v57 }
 0x19a   : > { %1218 = vst.msk [vmem:[#allocation3 + $0x58] sm:$0xff] %vm343_vm0, %v1186_v3  ;;  %1217 = vst.msk [vmem:[#allocation3 + $0x50] sm:$0xff] %vm343_vm0, %v1185_v5 }
 0x19b   : > { %v884_v9 = vpop.permute.xlu1 %883  ;;  %v880_v7 = vpop.permute.xlu0 %879 }
 0x19c   : > { %v1188_v11 = vmul.f32 %v1122_v8, %v884_v9  ;;  %v1187_v14 = vmul.f32 %v1122_v8, %v880_v7 }
 0x19e   : > { %1220 = vst.msk [vmem:[#allocation3 + $0x68] sm:$0xff] %vm343_vm0, %v1188_v11  ;;  %1219 = vst.msk [vmem:[#allocation3 + $0x60] sm:$0xff] %vm343_vm0, %v1187_v14 }
 0x19f   : > { %v896_v20 = vpop.permute.xlu1 %895  ;;  %v892_v48 = vpop.permute.xlu0 %891 }
 0x1a0   : > { %v1190_v21 = vmul.f32 %v1126_v12, %v896_v20  ;;  %v1189_v23 = vmul.f32 %v1126_v12, %v892_v48 }
 0x1a2   : > { %1222 = vst.msk [vmem:[#allocation3 + $0x78] sm:$0xff] %vm343_vm0, %v1190_v21  ;;  %1221 = vst.msk [vmem:[#allocation3 + $0x70] sm:$0xff] %vm343_vm0, %v1189_v23 }
 0x1a3   : > { %v992_v25 = vpop.permute.xlu1 %991  ;;  %v988_v26 = vpop.permute.xlu0 %987 }
 0x1a4   : > { %v1206_v27 = vmul.f32 %v1158_v60, %v992_v25  ;;  %v1205_v28 = vmul.f32 %v1158_v60, %v988_v26 }
 0x1a6   : > { %1238 = vst.msk [vmem:[#allocation3 + $0xf8] sm:$0xff] %vm343_vm0, %v1206_v27  ;;  %1237 = vst.msk [vmem:[#allocation3 + $0xf0] sm:$0xff] %vm343_vm0, %v1205_v28 }
 0x1a7 LB: >> { %s2169_s30 = sshll.u32 %s2419_s29, 7  ;;  %s1244_s29 = sadd.s32 1, %s2419_s29   ;;  %s2419_s29 = sphi %s2885_s29, %s1244_s29   ;;  %v2415_v36 = vphi %v2883_v36, %v1362_v36   ;;  %v2411_v34 = vphi %v2881_v34, %v1363_v34  }
 0x1a8   : >> { %s2893_s6 = scalar_lea.vmem [#allocation2], %s2169_s30  ;;  %s2896_s7 = scalar_lea.vmem [#allocation3], %s2169_s30 }
 0x1a9   : >> { %v1250_v13 = vld [vmem:[%s2893_s6] sm:$0xff]  ;;  %v1251_v41 = vld [vmem:[%s2893_s6 + $0x8] sm:$0xff]  ;;  %v2082_v50 = vld [vmem:[%s2893_s6 + $0x10] sm:$0xff]  ;;  %s2905_s8 = scalar_lea.vmem [#allocation4], %s2169_s30  ;;  %p1241_p7 = scmp.ge.s32.totalorder %s1244_s29, 2  }
 0x1aa   : >> { %v1252_v44 = vmul.f32 %v2415_v36, %v1250_v13  ;;  %v1253_v46 = vmul.f32 %v2411_v34, %v1251_v41  ;;  %v2083_v51 = vld [vmem:[%s2893_s6 + $0x18] sm:$0xff]  ;;  %v2094_v59 = vld [vmem:[%s2893_s6 + $0x20] sm:$0xff]  ;;  %v2095_v53 = vld [vmem:[%s2893_s6 + $0x28] sm:$0xff]  ;;  %1441 = vbcast.lane.b32.xlu1 (%p1241_p7), %v2566_v24, 304  ;;  %1377 = vbcast.lane.b32.xlu0 (%p1241_p7), %v2603_v42, 304  ;;  %vm1776_vm5 = vcmask (%p1241_p7), 1041409  }
 0x1ab   : >> { %v2106_v2 = vld [vmem:[%s2893_s6 + $0x30] sm:$0xff]  ;;  %v2107_v57 = vld [vmem:[%s2893_s6 + $0x38] sm:$0xff]  ;;  %v2118_v11 = vld [vmem:[%s2893_s6 + $0x40] sm:$0xff]  ;;  %vm1779_vm6 = vcmask (%p1241_p7), 1042434   ;;  %vm1782_vm7 = vcmask (%p1241_p7), 1043459   ;;  %vm1785_vm8 = vcmask (%p1241_p7), 1044484  }
 0x1ac   : >> { %v2119_v14 = vld [vmem:[%s2893_s6 + $0x48] sm:$0xff]  ;;  %v2130_v60 = vld [vmem:[%s2893_s6 + $0x50] sm:$0xff]  ;;  %v2131_v25 = vld [vmem:[%s2893_s6 + $0x58] sm:$0xff]  ;;  %vm1788_vm9 = vcmask (%p1241_p7), 1045509   ;;  %vm1791_vm10 = vcmask (%p1241_p7), 1046534   ;;  %vm1794_vm11 = vcmask (%p1241_p7), 1047559  }
 0x1ad   : >> { %v1255_v38 = vld [vmem:[%s2896_s7] sm:$0xff]  ;;  %v1256_v47 = vld [vmem:[%s2896_s7 + $0x8] sm:$0xff]  ;;  %v2086_v39 = vld [vmem:[%s2896_s7 + $0x10] sm:$0xff] }
 0x1ae   : >> { %v1257_v52 = vadd.f32 %v1255_v38, %v1252_v44  ;;  %v1258_v55 = vadd.f32 %v1256_v47, %v1253_v46  ;;  %v2087_v22 = vld [vmem:[%s2896_s7 + $0x18] sm:$0xff]  ;;  %v2098_v18 = vld [vmem:[%s2896_s7 + $0x20] sm:$0xff]  ;;  %v2099_v61 = vld [vmem:[%s2896_s7 + $0x28] sm:$0xff]  ;;  %1445 = vbcast.lane.b32.xlu1 (%p1241_p7), %v2566_v24, 312  ;;  %1381 = vbcast.lane.b32.xlu0 (%p1241_p7), %v2603_v42, 312 }
 0x1af   : >> { %v2110_v8 = vld [vmem:[%s2896_s7 + $0x30] sm:$0xff]  ;;  %v2111_v15 = vld [vmem:[%s2896_s7 + $0x38] sm:$0xff]  ;;  %v2122_v20 = vld [vmem:[%s2896_s7 + $0x40] sm:$0xff] }
 0x1b0   : >> { %1260 = vst.msk [vmem:[%s2905_s8] sm:$0xff] %vm343_vm0, %v1257_v52  ;;  %1261 = vst.msk [vmem:[%s2905_s8 + $0x8] sm:$0xff] %vm343_vm0, %v1258_v55  ;;  %v1267_v30 = vmul.f32 %v2082_v50, %v1257_v52  ;;  %v1268_v58 = vmul.f32 %v2083_v51, %v1258_v55  ;;  %v2123_v48 = vld [vmem:[%s2896_s7 + $0x48] sm:$0xff]  ;;  %v2134_v28 = vld [vmem:[%s2896_s7 + $0x50] sm:$0xff] }
 0x1b1   : >> { %v2135_v34 = vld [vmem:[%s2896_s7 + $0x58] sm:$0xff]  ;;  %v2142_v38 = vld [vmem:[%s2893_s6 + $0x60] sm:$0xff]  ;;  %v2143_v41 = vld [vmem:[%s2893_s6 + $0x68] sm:$0xff] }
 0x1b2   : >> { %v1272_v37 = vadd.f32 %v2086_v39, %v1267_v30  ;;  %v1273_v32 = vadd.f32 %v2087_v22, %v1268_v58  ;;  %v2146_v47 = vld [vmem:[%s2896_s7 + $0x60] sm:$0xff]  ;;  %v2147_v50 = vld [vmem:[%s2896_s7 + $0x68] sm:$0xff]  ;;  %v2154_v55 = vld [vmem:[%s2893_s6 + $0x70] sm:$0xff]  ;;  %1389 = vbcast.lane.b32.xlu1 (%p1241_p7), %v2614_v49, 312  ;;  %1385 = vbcast.lane.b32.xlu0 (%p1241_p7), %v2614_v49, 304 }
 0x1b3   : >> { %v2155_v39 = vld [vmem:[%s2893_s6 + $0x78] sm:$0xff]  ;;  %v2158_v58 = vld [vmem:[%s2896_s7 + $0x70] sm:$0xff] }
 0x1b4   : >> { %2090 = vst.msk [vmem:[%s2905_s8 + $0x10] sm:$0xff] %vm343_vm0, %v1272_v37  ;;  %2091 = vst.msk [vmem:[%s2905_s8 + $0x18] sm:$0xff] %vm343_vm0, %v1273_v32  ;;  %v1282_v19 = vmul.f32 %v2094_v59, %v1272_v37  ;;  %v1283_v63 = vmul.f32 %v2095_v53, %v1273_v32  ;;  %v2159_v59 = vld [vmem:[%s2896_s7 + $0x78] sm:$0xff] }
 0x1b6   : >> { %v1287_v3 = vadd.f32 %v2098_v18, %v1282_v19  ;;  %v1288_v5 = vadd.f32 %v2099_v61, %v1283_v63  ;;  %1453 = vbcast.lane.b32.xlu1 (%p1241_p7), %v2572_v29, 312  ;;  %1449 = vbcast.lane.b32.xlu0 (%p1241_p7), %v2572_v29, 304 }
 0x1b8   : >> { %2102 = vst.msk [vmem:[%s2905_s8 + $0x20] sm:$0xff] %vm343_vm0, %v1287_v3  ;;  %2103 = vst.msk [vmem:[%s2905_s8 + $0x28] sm:$0xff] %vm343_vm0, %v1288_v5  ;;  %v1297_v9 = vmul.f32 %v2106_v2, %v1287_v3  ;;  %v1298_v7 = vmul.f32 %v2107_v57, %v1288_v5 }
 0x1ba   : >> { %v1302_v12 = vadd.f32 %v2110_v8, %v1297_v9  ;;  %v1303_v16 = vadd.f32 %v2111_v15, %v1298_v7  ;;  %1373 = vbcast.lane.b32.xlu1 (%p1241_p7), %v2607_v43, 312  ;;  %1369 = vbcast.lane.b32.xlu0 (%p1241_p7), %v2607_v43, 304 }
 0x1bc   : >> { %2114 = vst.msk [vmem:[%s2905_s8 + $0x30] sm:$0xff] %vm343_vm0, %v1302_v12  ;;  %2115 = vst.msk [vmem:[%s2905_s8 + $0x38] sm:$0xff] %vm343_vm0, %v1303_v16  ;;  %v1312_v21 = vmul.f32 %v2118_v11, %v1302_v12  ;;  %v1313_v23 = vmul.f32 %v2119_v14, %v1303_v16 }
 0x1be   : >> { %v1317_v26 = vadd.f32 %v2122_v20, %v1312_v21  ;;  %v1318_v27 = vadd.f32 %v2123_v48, %v1313_v23  ;;  %1397 = vbcast.lane.b32.xlu1 (%p1241_p7), %v2620_v56, 312  ;;  %1393 = vbcast.lane.b32.xlu0 (%p1241_p7), %v2620_v56, 304 }
 0x1c0   : >> { %2126 = vst.msk [vmem:[%s2905_s8 + $0x40] sm:$0xff] %vm343_vm0, %v1317_v26  ;;  %2127 = vst.msk [vmem:[%s2905_s8 + $0x48] sm:$0xff] %vm343_vm0, %v1318_v27  ;;  %v1327_v36 = vmul.f32 %v2130_v60, %v1317_v26  ;;  %v1328_v13 = vmul.f32 %v2131_v25, %v1318_v27  ;;  %v3010_v27 = vmul.f32 (%p1241_p7), %v2496_v1, %v2533_v10 }
 0x1c2   : >> { %v1332_v44 = vadd.f32 %v2134_v28, %v1327_v36  ;;  %v1333_v46 = vadd.f32 %v2135_v34, %v1328_v13  ;;  %1437 = vbcast.lane.b32.xlu1 (%p1241_p7), %v2553_v17, 312  ;;  %1433 = vbcast.lane.b32.xlu0 (%p1241_p7), %v2553_v17, 304 }
 0x1c4   : >> { %2138 = vst.msk [vmem:[%s2905_s8 + $0x50] sm:$0xff] %vm343_vm0, %v1332_v44  ;;  %2139 = vst.msk [vmem:[%s2905_s8 + $0x58] sm:$0xff] %vm343_vm0, %v1333_v46  ;;  %v1342_v51 = vmul.f32 %v2142_v38, %v1332_v44  ;;  %v1343_v52 = vmul.f32 %v2143_v41, %v1333_v46 }
 0x1c6   : >> { %v1347_v22 = vadd.f32 %v2146_v47, %v1342_v51  ;;  %v1348_v30 = vadd.f32 %v2147_v50, %v1343_v52  ;;  %1461 = vbcast.lane.b32.xlu1 (%p1241_p7), %v2578_v31, 312  ;;  %1457 = vbcast.lane.b32.xlu0 (%p1241_p7), %v2578_v31, 304  ;;  %v3014_v50 = vmul.f32 (%p1241_p7), %v2496_v1, %v2511_v4 }
 0x1c8   : >> { %2150 = vst.msk [vmem:[%s2905_s8 + $0x60] sm:$0xff] %vm343_vm0, %v1347_v22  ;;  %2151 = vst.msk [vmem:[%s2905_s8 + $0x68] sm:$0xff] %vm343_vm0, %v1348_v30  ;;  %v1357_v53 = vmul.f32 %v2154_v55, %v1347_v22  ;;  %v1358_v37 = vmul.f32 %v2155_v39, %v1348_v30  ;;  %1243 = sbr.rel (!%p1241_p7) target bundleno = 423 (0x1a7), region = 113  ;;  %v1720_v55 = vrot.slane (%p1241_p7), %v3010_v27, 1  ;;  %v1713_v1 = vrot.slane (%p1241_p7), %v3014_v50, 1 }
 0x1c9   : > { %v1714_v4 = vrot.slane (%p1241_p7), %v3014_v50, 2 }
 0x1ca   : >> { %v1362_v36 = vadd.f32 %v2158_v58, %v1357_v53   ;;  %v1363_v34 = vadd.f32 %v2159_v59, %v1358_v37   ;;  %1405 = vbcast.lane.b32.xlu1 (%p1241_p7), %v2632_v0, 312  ;;  %1401 = vbcast.lane.b32.xlu0 (%p1241_p7), %v2632_v0, 304 }
 0x1cc   : >> { %2162 = vst.msk [vmem:[%s2905_s8 + $0x70] sm:$0xff] %vm343_vm0, %v1362_v36  ;;  %2163 = vst.msk [vmem:[%s2905_s8 + $0x78] sm:$0xff] %vm343_vm0, %v1363_v34 }
 0x1ce   : > { %1469 = vbcast.lane.b32.xlu1 %v2584_v33, 312  ;;  %1465 = vbcast.lane.b32.xlu0 %v2584_v33, 304 }
 0x1d2   : > { %1413 = vbcast.lane.b32.xlu1 %v2640_v6, 312  ;;  %1409 = vbcast.lane.b32.xlu0 %v2640_v6, 304 }
 0x1d3   : > { %v1514_v29 = vld [vmem:[#allocation4 + $0x98] sm:$0xff]  ;;  %v1513_v42 = vld [vmem:[#allocation4 + $0x90] sm:$0xff]  ;;  %v1500_v57 = vld [vmem:[#allocation4 + $0x28] sm:$0xff] }
 0x1d4   : > { %v1498_v31 = vld [vmem:[#allocation4 + $0x18] sm:$0xff]  ;;  %v1497_v43 = vld [vmem:[#allocation4 + $0x10] sm:$0xff]  ;;  %v1499_v3 = vld [vmem:[#allocation4 + $0x20] sm:$0xff] }
 0x1d5   : > { %v1516_v23 = vld [vmem:[#allocation4 + $0xa8] sm:$0xff]  ;;  %v1515_v60 = vld [vmem:[#allocation4 + $0xa0] sm:$0xff]  ;;  %v1502_v51 = vld [vmem:[#allocation4 + $0x38] sm:$0xff] }
 0x1d6   : > { %1477 = vbcast.lane.b32.xlu1 %v2590_v35, 312  ;;  %1473 = vbcast.lane.b32.xlu0 %v2590_v35, 304  ;;  %v1496_v25 = vld [vmem:[#allocation4 + $0x8] sm:$0xff]  ;;  %v1495_v26 = vld [vmem:[#allocation4] sm:$0xff]  ;;  %v1501_v52 = vld [vmem:[#allocation4 + $0x30] sm:$0xff] }
 0x1da   : > { %1421 = vbcast.lane.b32.xlu1 %v2674_v45, 312  ;;  %1417 = vbcast.lane.b32.xlu0 %v2674_v45, 304 }
 0x1de   : > { %1485 = vbcast.lane.b32.xlu1 %v2598_v40, 312  ;;  %1481 = vbcast.lane.b32.xlu0 %v2598_v40, 304 }
 0x1e2   : > { %1429 = vbcast.lane.b32.xlu1 %v2681_v54, 312  ;;  %1425 = vbcast.lane.b32.xlu0 %v2681_v54, 304 }
 0x1e6   : > { %1493 = vbcast.lane.b32.xlu1 %v2691_v62, 312  ;;  %1489 = vbcast.lane.b32.xlu0 %v2691_v62, 304 }
 0x21c   : > { %v1442_v17 = vpop.permute.xlu1 %1441  ;;  %v1378_v24 = vpop.permute.xlu0 %1377 }
 0x21d   : > { %v1545_v0 = vmul.f32 %v1513_v42, %v1442_v17  ;;  %v1529_v40 = vmul.f32 %v1497_v43, %v1378_v24  ;;  %v1715_v42 = vrot.slane %v3014_v50, 3  ;;  %v1512_v43 = vld [vmem:[#allocation4 + $0x88] sm:$0xff] }
 0x21f   : > { %v1640_v62 = vsel %vm343_vm0, %v1545_v0, 0.0  ;;  %v1568_v18 = vsel %vm343_vm0, %v1529_v40, 0.0  ;;  %v1716_v0 = vrot.slane %v3014_v50, 4 }
 0x220   : > { %v1446_v33 = vpop.permute.xlu1 %1445  ;;  %v1382_v35 = vpop.permute.xlu0 %1381 }
 0x221   : > { %v1546_v49 = vmul.f32 %v1514_v29, %v1446_v33  ;;  %v1530_v56 = vmul.f32 %v1498_v31, %v1382_v35  ;;  %v1504_v31 = vld [vmem:[#allocation4 + $0x48] sm:$0xff]  ;;  %v1503_v33 = vld [vmem:[#allocation4 + $0x40] sm:$0xff]  ;;  %v1721_v35 = vrot.slane %v3010_v27, 2 }
 0x223   : > { %v1641_v54 = vsel %vm343_vm0, %v1546_v49, 0.0  ;;  %v1569_v32 = vsel %vm343_vm0, %v1530_v56, 0.0  ;;  %v1511_v49 = vld [vmem:[#allocation4 + $0x80] sm:$0xff]  ;;  %v1722_v56 = vrot.slane %v3010_v27, 3 }
 0x224   : > { %v1390_v6 = vpop.permute.xlu1 %1389  ;;  %v1386_v45 = vpop.permute.xlu0 %1385  ;;  %v1642_v63 = vadd.f32 %v1641_v54, %v1640_v62  ;;  %v1570_v2 = vadd.f32 %v1569_v32, %v1568_v18  ;;  %v1518_v54 = vld [vmem:[#allocation4 + $0xb8] sm:$0xff]  ;;  %v1517_v32 = vld [vmem:[#allocation4 + $0xb0] sm:$0xff] }
 0x225   : > { %v1532_v7 = vmul.f32 %v1500_v57, %v1390_v6  ;;  %v1531_v11 = vmul.f32 %v1499_v3, %v1386_v45 }
 0x226   : > { %v1643_v15 = vrot.slane %v1642_v63, 4  ;;  %v1571_v9 = vrot.slane %v1570_v2, 4 }
 0x227   : > { %v1578_v48 = vsel %vm343_vm0, %v1532_v7, 0.0  ;;  %v1577_v21 = vsel %vm343_vm0, %v1531_v11, 0.0  ;;  %v1519_v7 = vld [vmem:[#allocation4 + $0xc0] sm:$0xff] }
 0x228   : > { %v1454_v61 = vpop.permute.xlu1 %1453  ;;  %v1450_v19 = vpop.permute.xlu0 %1449  ;;  %v1644_v16 = vadd.f32 %v1643_v15, %v1642_v63  ;;  %v1572_v20 = vadd.f32 %v1571_v9, %v1570_v2  ;;  %v1579_v28 = vadd.f32 %v1578_v48, %v1577_v21  ;;  %v1520_v9 = vld [vmem:[#allocation4 + $0xc8] sm:$0xff] }
 0x229   : > { %v1548_v34 = vmul.f32 %v1516_v23, %v1454_v61  ;;  %v1547_v36 = vmul.f32 %v1515_v60, %v1450_v19  ;;  %v1723_v61 = vrot.slane %v3010_v27, 4  ;;  %v1717_v60 = vrot.slane %v3014_v50, 5 }
 0x22a   : > { %v1645_v41 = vrot.slane %v1644_v16, 2  ;;  %v1573_v44 = vrot.slane %v1572_v20, 2  ;;  %v1580_v39 = vrot.slane %v1579_v28, 4 }
 0x22b   : > { %v1650_v10 = vsel %vm343_vm0, %v1548_v34, 0.0  ;;  %v1649_v22 = vsel %vm343_vm0, %v1547_v36, 0.0  ;;  %v1718_v36 = vrot.slane %v3014_v50, 6 }
 0x22c   : > { %v1374_v5 = vpop.permute.xlu1 %1373  ;;  %v1370_v8 = vpop.permute.xlu0 %1369  ;;  %v1646_v59 = vadd.f32 %v1645_v41, %v1644_v16  ;;  %v1574_v53 = vadd.f32 %v1573_v44, %v1572_v20  ;;  %v1581_v40 = vadd.f32 %v1580_v39, %v1579_v28  ;;  %v1651_v6 = vadd.f32 %v1650_v10, %v1649_v22 }
 0x22d   : > { %v1528_v46 = vmul.f32 %v1496_v25, %v1374_v5  ;;  %v1527_v47 = vmul.f32 %v1495_v26, %v1370_v8  ;;  %v1724_v25 = vrot.slane %v3010_v27, 5 }
 0x22e   : > { %v1647_v19 = vrot.slane %v1646_v59, 1  ;;  %v1575_v63 = vrot.slane %v1574_v53, 1  ;;  %v1582_v20 = vrot.slane %v1581_v40, 2  ;;  %v1652_v41 = vrot.slane %v1651_v6, 4 }
 0x22f   : > { %v1560_v37 = vsel %vm343_vm0, %v1528_v46, 0.0  ;;  %v1559_v17 = vsel %vm343_vm0, %v1527_v47, 0.0  ;;  %v1506_v46 = vld [vmem:[#allocation4 + $0x58] sm:$0xff]  ;;  %v1505_v47 = vld [vmem:[#allocation4 + $0x50] sm:$0xff] }
 0x230   : > { %v1398_v14 = vpop.permute.xlu1 %1397  ;;  %v1394_v12 = vpop.permute.xlu0 %1393  ;;  %v1561_v45 = vadd.f32 %v1560_v37, %v1559_v17  ;;  %v1583_v22 = vadd.f32 %v1582_v20, %v1581_v40  ;;  %v1508_v20 = vld [vmem:[#allocation4 + $0x68] sm:$0xff] }
 0x231   : > { %v1534_v24 = vmul.f32 %v1502_v51, %v1398_v14  ;;  %v1533_v29 = vmul.f32 %v1501_v52, %v1394_v12 }
 0x232   : > { %v1562_v48 = vrot.slane %v1561_v45, 4 }
 0x233   : > { %v1587_v3 = vsel %vm343_vm0, %v1534_v24, 0.0  ;;  %v1586_v5 = vsel %vm343_vm0, %v1533_v29, 0.0 }
 0x234   : > { %v1438_v13 = vpop.permute.xlu1 %1437  ;;  %v1434_v38 = vpop.permute.xlu0 %1433  ;;  %v1588_v26 = vadd.f32 %v1587_v3, %v1586_v5 }
 0x235   : > { %v1544_v8 = vmul.f32 %v1512_v43, %v1438_v13  ;;  %v1543_v15 = vmul.f32 %v1511_v49, %v1434_v38  ;;  %v1648_v13 = vadd.f32 %v1647_v19, %v1646_v59  ;;  %v1576_v38 = vadd.f32 %v1575_v63, %v1574_v53 }
 0x236   : > { %v1589_v17 = vrot.slane %v1588_v26, 4  ;;  %v1719_v19 = vrot.slane %v3014_v50, 7 }
 0x237   : > { %v1632_v51 = vsel %vm343_vm0, %v1544_v8, 0.0  ;;  %v1631_v52 = vsel %vm343_vm0, %v1543_v15, 0.0  ;;  %v3047_v63 = vadd.f32 %v1720_v55, %v1648_v13 }
 0x238   : > { %v1462_v30 = vpop.permute.xlu1 %1461  ;;  %v1458_v58 = vpop.permute.xlu0 %1457  ;;  %v1633_v43 = vadd.f32 %v1632_v51, %v1631_v52  ;;  %v1590_v8 = vadd.f32 %v1589_v17, %v1588_v26 }
 0x239   : > { %v1550_v11 = vmul.f32 %v1518_v54, %v1462_v30  ;;  %v1549_v14 = vmul.f32 %v1517_v32, %v1458_v58  ;;  %v1563_v30 = vadd.f32 %v1562_v48, %v1561_v45  ;;  %v1522_v32 = vld [vmem:[#allocation4 + $0xd8] sm:$0xff]  ;;  %v1507_v48 = vld [vmem:[#allocation4 + $0x60] sm:$0xff] }
 0x23b   : > { %v1659_v39 = vsel %vm343_vm0, %v1550_v11, 0.0  ;;  %v1658_v10 = vsel %vm343_vm0, %v1549_v14, 0.0  ;;  %v1634_v14 = vrot.slane %v1633_v43, 4 }
 0x23c   : > { %v1406_v62 = vpop.permute.xlu1 %1405  ;;  %v1402_v18 = vpop.permute.xlu0 %1401  ;;  %v1660_v49 = vadd.f32 %v1659_v39, %v1658_v10 }
 0x23d   : > { %v1536_v2 = vmul.f32 %v1504_v31, %v1406_v62  ;;  %v1535_v57 = vmul.f32 %v1503_v33, %v1402_v18  ;;  %v1725_v31 = vrot.slane %v3010_v27, 6  ;;  %v1653_v33 = vadd.f32 %v1652_v41, %v1651_v6  ;;  %v1521_v62 = vld [vmem:[#allocation4 + $0xd0] sm:$0xff] }
 0x23e   : > { %v1584_v6 = vrot.slane %v1583_v22, 1  ;;  %v1635_v39 = vadd.f32 %v1634_v14, %v1633_v43 }
 0x23f   : > { %v1596_v12 = vsel %vm343_vm0, %v1536_v2, 0.0  ;;  %v1595_v16 = vsel %vm343_vm0, %v1535_v57, 0.0  ;;  %v3051_v2 = vadd.f32 %v1713_v1, %v1576_v38  ;;  %v1564_v57 = vrot.slane %v1563_v30, 2 }
 0x240   : > { %v1470_v21 = vpop.permute.xlu1 %1469  ;;  %v1466_v23 = vpop.permute.xlu0 %1465  ;;  %v1597_v44 = vadd.f32 %v1596_v12, %v1595_v16  ;;  %v1654_v11 = vrot.slane %v1653_v33, 2  ;;  %v1661_v12 = vrot.slane %v1660_v49, 4 }
 0x241   : > { %v1552_v28 = vmul.f32 %v1520_v9, %v1470_v21  ;;  %v1551_v34 = vmul.f32 %v1519_v7, %v1466_v23  ;;  %v1565_v26 = vadd.f32 %v1564_v57, %v1563_v30 }
 0x242   : > { %v1598_v54 = vrot.slane %v1597_v44, 4  ;;  %v3057_v52 = vadd.f32 %v1654_v11, %v1653_v33  ;;  %v1662_v10 = vadd.f32 %v1661_v12, %v1660_v49 }
 0x243   : > { %v1668_v58 = vsel %vm343_vm0, %v1552_v28, 0.0  ;;  %v1667_v37 = vsel %vm343_vm0, %v1551_v34, 0.0  ;;  %v1796_v28 = vrot.slane %v3047_v63, 7  ;;  %v1775_v34 = vrot.slane %v3051_v2, 7 }
 0x244   : > { %v1414_v59 = vpop.permute.xlu1 %1413  ;;  %v1410_v53 = vpop.permute.xlu0 %1409  ;;  %v1669_v18 = vadd.f32 %v1668_v58, %v1667_v37  ;;  %v1599_v16 = vadd.f32 %v1598_v54, %v1597_v44  ;;  %v1524_v37 = vld [vmem:[#allocation4 + $0xe8] sm:$0xff]  ;;  %v1566_v54 = vrot.slane %v1565_v26, 1 }
 0x245   : > { %v1538_v24 = vmul.f32 %v1506_v46, %v1414_v59  ;;  %v1537_v29 = vmul.f32 %v1505_v47, %v1410_v53  ;;  %v1591_v46 = vrot.slane %v1590_v8, 2  ;;  %v1523_v59 = vld [vmem:[#allocation4 + $0xe0] sm:$0xff] }
 0x246   : > { %v1670_v55 = vrot.slane %v1669_v18, 4  ;;  %v1600_v53 = vrot.slane %v1599_v16, 2  ;;  %v1567_v12 = vadd.f32 %v1566_v54, %v1565_v26 }
 0x247   : > { %v1605_v40 = vsel %vm343_vm0, %v1538_v24, 0.0  ;;  %v1604_v45 = vsel %vm343_vm0, %v1537_v29, 0.0  ;;  %v3061_v29 = vadd.f32 %v1584_v6, %v1583_v22  ;;  %v1592_v33 = vadd.f32 %v1591_v46, %v1590_v8 }
 0x248   : > { %v1478_v3 = vpop.permute.xlu1 %1477  ;;  %v1474_v5 = vpop.permute.xlu0 %1473  ;;  %v1606_v15 = vadd.f32 %v1605_v40, %v1604_v45  ;;  %v1671_v17 = vadd.f32 %v1670_v55, %v1669_v18  ;;  %v1601_v11 = vadd.f32 %v1600_v53, %v1599_v16  ;;  %v1526_v16 = vld [vmem:[#allocation4 + $0xf8] sm:$0xff] }
 0x249   : > { %v1554_v9 = vmul.f32 %v1522_v32, %v1478_v3  ;;  %v1553_v7 = vmul.f32 %v1521_v62, %v1474_v5  ;;  %v1656_v3 = vrot.slane %v3057_v52, 1  ;;  %v1636_v5 = vrot.slane %v1635_v39, 2 }
 0x24a   : > { %v1607_v21 = vrot.slane %v1606_v15, 4  ;;  %v1672_v14 = vrot.slane %v1671_v17, 2 }
 0x24b   : > { %v1677_v23 = vsel %vm343_vm0, %v1554_v9, 0.0  ;;  %v1676_v1 = vsel %vm343_vm0, %v1553_v7, 0.0  ;;  %v1510_v9 = vld [vmem:[#allocation4 + $0x78] sm:$0xff]  ;;  %v1509_v7 = vld [vmem:[#allocation4 + $0x70] sm:$0xff] }
 0x24c   : > { %v1678_v13 = vadd.f32 %v1677_v23, %v1676_v1  ;;  %v1422_v38 = vpop.permute.xlu1 %1421  ;;  %v1418_v41 = vpop.permute.xlu0 %1417  ;;  %v1608_v47 = vadd.f32 %v1607_v21, %v1606_v15  ;;  %v1663_v15 = vrot.slane %v1662_v10, 2  ;;  %v1593_v23 = vrot.slane %v1592_v33, 1 }
 0x24d   : > { %v1540_v51 = vmul.f32 %v1508_v20, %v1422_v38  ;;  %v1539_v44 = vmul.f32 %v1507_v48, %v1418_v41  ;;  %v1637_v41 = vadd.f32 %v1636_v5, %v1635_v39 }
 0x24e   : > { %v1679_v58 = vrot.slane %v1678_v13, 4  ;;  %v1609_v32 = vrot.slane %v1608_v47, 2  ;;  %v1664_v46 = vadd.f32 %v1663_v15, %v1662_v10 }
 0x24f   : > { %v1614_v24 = vsel %vm343_vm0, %v1540_v51, 0.0  ;;  %v1613_v30 = vsel %vm343_vm0, %v1539_v44, 0.0 }
 0x250   : > { %v1615_v62 = vadd.f32 %v1614_v24, %v1613_v30  ;;  %v1486_v40 = vpop.permute.xlu1 %1485  ;;  %v1482_v45 = vpop.permute.xlu0 %1481  ;;  %v1680_v57 = vadd.f32 %v1679_v58, %v1678_v13  ;;  %v1610_v20 = vadd.f32 %v1609_v32, %v1608_v47  ;;  %v1525_v58 = vld [vmem:[#allocation4 + $0xf0] sm:$0xff] }
 0x251   : > { %v1556_v43 = vmul.f32 %v1524_v37, %v1486_v40  ;;  %v1555_v49 = vmul.f32 %v1523_v59, %v1482_v45  ;;  %v1602_v37 = vrot.slane %v1601_v11, 1  ;;  %v1673_v59 = vadd.f32 %v1672_v14, %v1671_v17 }
 0x252   : > { %v1616_v18 = vrot.slane %v1615_v62, 4  ;;  %v1681_v1 = vrot.slane %v1680_v57, 2  ;;  %v1611_v53 = vrot.slane %v1610_v20, 1  ;;  %v1594_v40 = vadd.f32 %v1593_v23, %v1592_v33 }
 0x253   : > { %v1686_v22 = vsel %vm343_vm0, %v1556_v43, 0.0  ;;  %v1685_v6 = vsel %vm343_vm0, %v1555_v49, 0.0  ;;  %v1638_v43 = vrot.slane %v1637_v41, 1  ;;  %v1665_v17 = vrot.slane %v1664_v46, 1 }
 0x254   : > { %v1617_v48 = vadd.f32 %v1616_v18, %v1615_v62  ;;  %v1687_v8 = vadd.f32 %v1686_v22, %v1685_v6  ;;  %v1430_v55 = vpop.permute.xlu1 %1429  ;;  %v1426_v21 = vpop.permute.xlu0 %1425  ;;  %v1682_v39 = vadd.f32 %v1681_v1, %v1680_v57  ;;  %v1603_v18 = vadd.f32 %v1602_v37, %v1601_v11 }
 0x255   : > { %v1542_v13 = vmul.f32 %v1510_v9, %v1430_v55  ;;  %v1541_v38 = vmul.f32 %v1509_v7, %v1426_v21  ;;  %v1674_v14 = vrot.slane %v1673_v59, 1  ;;  %v1612_v22 = vadd.f32 %v1611_v53, %v1610_v20 }
 0x256   : > { %v1618_v51 = vrot.slane %v1617_v48, 2  ;;  %v1688_v44 = vrot.slane %v1687_v8, 4  ;;  %v1745_v57 = vadd.f32 %v1714_v4, %v3061_v29  ;;  %v1743_v21 = vadd.f32 %v3014_v50, %v1567_v12 }
 0x257   : > { %v1623_v26 = vsel %vm343_vm0, %v1542_v13, 0.0  ;;  %v1622_v47 = vsel %vm343_vm0, %v1541_v38, 0.0  ;;  %v1746_v11 = vadd.f32 %v1715_v42, %v1594_v40  ;;  %v1639_v13 = vadd.f32 %v1638_v43, %v1637_v41 }
 0x258   : > { %v1619_v24 = vadd.f32 %v1618_v51, %v1617_v48  ;;  %v1689_v30 = vadd.f32 %v1688_v44, %v1687_v8  ;;  %v1624_v54 = vadd.f32 %v1623_v26, %v1622_v47  ;;  %v1494_v32 = vpop.permute.xlu1 %1493  ;;  %v1490_v62 = vpop.permute.xlu0 %1489  ;;  %v1683_v48 = vrot.slane %v1682_v39, 1 }
 0x259   : > { %v1558_v10 = vmul.f32 %v1526_v16, %v1494_v32  ;;  %v1557_v45 = vmul.f32 %v1525_v58, %v1490_v62  ;;  %v1666_v20 = vadd.f32 %v1665_v17, %v1664_v46  ;;  %v1747_v38 = vadd.f32 %v1716_v0, %v1603_v18 }
 0x25a   : > { %v1620_v49 = vrot.slane %v1619_v24, 1  ;;  %v1690_v5 = vrot.slane %v1689_v30, 2  ;;  %v1625_v15 = vrot.slane %v1624_v54, 4  ;;  %v1657_v4 = vadd.f32 %v1656_v3, %v3057_v52 }
 0x25b   : > { %v1695_v9 = vsel %vm343_vm0, %v1558_v10, 0.0  ;;  %v1694_v7 = vsel %vm343_vm0, %v1557_v45, 0.0  ;;  %v1675_v29 = vadd.f32 %v1674_v14, %v1673_v59  ;;  %v1748_v12 = vadd.f32 %v1717_v60, %v1612_v22 }
 0x25c   : > { %v1691_v6 = vadd.f32 %v1690_v5, %v1689_v30  ;;  %v1626_v33 = vadd.f32 %v1625_v15, %v1624_v54  ;;  %v1621_v8 = vadd.f32 %v1620_v49, %v1619_v24  ;;  %v1696_v55 = vadd.f32 %v1695_v9, %v1694_v7 }
 0x25d   : > { %v1778_v42 = vrot.slane %v1745_v57, 6  ;;  %v1684_v16 = vadd.f32 %v1683_v48, %v1682_v39  ;;  %v1777_v0 = vsel %vm1776_vm5, %v1775_v34, %v1743_v21  ;;  %v1781_v58 = vrot.slane %v1746_v11, 5 }
 0x25e   : > { %v1692_v23 = vrot.slane %v1691_v6, 1  ;;  %v1627_v1 = vrot.slane %v1626_v33, 2  ;;  %v1697_v51 = vrot.slane %v1696_v55, 4  ;;  %v1749_v41 = vadd.f32 %v1718_v36, %v1621_v8 }
 0x25f   : > { %v1751_v52 = vadd.f32 %v3010_v27, %v1639_v13  ;;  %v1754_v3 = vadd.f32 %v1722_v56, %v1666_v20  ;;  %v1784_v60 = vrot.slane %v1747_v38, 4  ;;  %v1753_v47 = vadd.f32 %v1721_v35, %v1657_v4 }
 0x260   : > { %v1628_v44 = vadd.f32 %v1627_v1, %v1626_v33  ;;  %v1698_v46 = vadd.f32 %v1697_v51, %v1696_v55  ;;  %v1693_v37 = vadd.f32 %v1692_v23, %v1691_v6  ;;  %v1755_v36 = vadd.f32 %v1723_v61, %v1675_v29 }
 0x261   : > { %v1787_v53 = vrot.slane %v1748_v12, 3  ;;  %v1780_v34 = vsel %vm1779_vm6, %v1778_v42, %v1777_v0  ;;  %v1756_v24 = vadd.f32 %v1724_v25, %v1684_v16  ;;  %v1790_v30 = vrot.slane %v1749_v41, 2 }
 0x262   : > { %v1629_v26 = vrot.slane %v1628_v44, 1  ;;  %v1699_v59 = vrot.slane %v1698_v46, 2  ;;  %v1783_v32 = vsel %vm1782_vm7, %v1781_v58, %v1780_v34  ;;  %v1757_v56 = vadd.f32 %v1725_v31, %v1693_v37 }
 0x263   : > { %v1726_v62 = vrot.slane %v3010_v27, 7  ;;  %v1797_v61 = vsel %vm1776_vm5, %v1796_v28, %v1751_v52  ;;  %v1800_v40 = vrot.slane %v1754_v3, 5  ;;  %v1786_v25 = vsel %vm1785_vm8, %v1784_v60, %v1783_v32 }
 0x264   : > { %v1630_v2 = vadd.f32 %v1629_v26, %v1628_v44  ;;  %v1700_v54 = vadd.f32 %v1699_v59, %v1698_v46  ;;  %v1798_v10 = vrot.slane %v1753_v47, 6  ;;  %v1802_v45 = vrot.slane %v1755_v36, 4 }
 0x265   : > { %v1789_v43 = vsel %vm1788_vm9, %v1787_v53, %v1786_v25  ;;  %v1804_v49 = vrot.slane %v1756_v24, 3  ;;  %v1806_v63 = vrot.slane %v1757_v56, 2 }
 0x266   : > { %v1750_v35 = vadd.f32 %v1719_v19, %v1630_v2  ;;  %v1701_v39 = vrot.slane %v1700_v54, 1  ;;  %v1792_v50 = vsel %vm1791_vm10, %v1790_v30, %v1789_v43  ;;  %v1799_v27 = vsel %vm1779_vm6, %v1798_v10, %v1797_v61 }
 0x267   : > { %v1801_v28 = vsel %vm1782_vm7, %v1800_v40, %v1799_v27 }
 0x268   : > { %v1793_v31 = vrot.slane %v1750_v35, 1  ;;  %v1702_v19 = vadd.f32 %v1701_v39, %v1700_v54  ;;  %v1803_v17 = vsel %vm1785_vm8, %v1802_v45, %v1801_v28 }
 0x269   : > { %v1805_v18 = vsel %vm1788_vm9, %v1804_v49, %v1803_v17 }
 0x26a   : > { %v1795_v5 = vsel %vm1794_vm11, %v1793_v31, %v1792_v50  ;;  %v1758_v15 = vadd.f32 %v1726_v62, %v1702_v19  ;;  %v1807_v7 = vsel %vm1791_vm10, %v1806_v63, %v1805_v18 }
 0x26b   : > { %1812 = vst.msk [vmem:[%s2509_s16] sm:$0xff] %vm343_vm0, %v1795_v5 }
 0x26c   : > { %v1808_v9 = vrot.slane %v1758_v15, 1 }
 0x26e   : > { %v1809_v14 = vsel %vm1794_vm11, %v1808_v9, %v1807_v7 }
 0x26f   : > { %1813 = vst.msk [vmem:[%s2509_s16 + $0x8] sm:$0xff] %vm343_vm0, %v1809_v14 }
 0x270 PF: > { %s15_s22 = sadd.s32 1, %s2407_s22   ;;  %s3144_s18 = smov %s2399_s20 }
 0x271   : > { %p12_p8 = scmp.ge.s32.totalorder %s15_s22, 10   ;;  %s3145_s19 = smov %s2403_s21 }
 0x272   : > { %s3146_s20 = smov %s3149_s23  ;;  %s3147_s21 = smov %s3153_s24 }
 0x273   :  { %14 = sbr.rel (!%p12_p8) target bundleno = 3 (0x3), region = 124 }

// kernel: ss2d_cross_forward.9
= control target key start
LH: loop header
LB: loop body
LE: loop exit
PB: predicated region body
PF: predicated region fallthrough
CT: control target
= control target key end

     0   :  { %vm37_vm0 = vcmask 261120   ;;  %s1862_s0 = inlined_call_operand.vmem [shape: f32[128,32], index: 0, kind: input, shape index: {}]   ;;  %s1863_s1 = inlined_call_operand.vmem [shape: f32[128,32], index: 1, kind: input, shape index: {}]   ;;  %s1864_s2 = inlined_call_operand.vmem [shape: f32[1,32], index: 2, kind: input, shape index: {}]   ;;  %s1865_s3 = inlined_call_operand.vmem [shape: f32[1,32], index: 3, kind: input, shape index: {}]   ;;  %s1866_s4 = inlined_call_operand.vmem [shape: f32[128,32], index: 4, kind: input, shape index: {}]   ;;  %s1867_s5 = inlined_call_operand.hbm [shape: f32[128,128], index: 5, kind: output, shape index: {}]  }
   0x1   :  { %v1261_v0 = vld [vmem:[%s1862_s0] sm:$0xff]  ;;  %v1266_v1 = vld [vmem:[%s1862_s0 + $0x8] sm:$0xff]  ;;  %v1289_v8 = vld [vmem:[%s1862_s0 + $0x10] sm:$0xff] }
   0x2   :  { %v1271_v2 = vld [vmem:[%s1862_s0 + $0x40] sm:$0xff]  ;;  %v38_v3 = vsel %vm37_vm0, %v1261_v0, 0.0  ;;  %v41_v4 = vsel %vm37_vm0, %v1266_v1, 0.0  ;;  %v1280_v5 = vld [vmem:[%s1862_s0 + $0x48] sm:$0xff]  ;;  %v1294_v9 = vld [vmem:[%s1862_s0 + $0x50] sm:$0xff] }
   0x3   :  { %39 = vadd.xlane.f32.xlu0 %v38_v3  ;;  %42 = vadd.xlane.f32.xlu1 %v41_v4  ;;  %v62_v6 = vsel %vm37_vm0, %v1271_v2, 0.0  ;;  %v65_v7 = vsel %vm37_vm0, %v1280_v5, 0.0 }
   0x4   :  { %10 = vsyncpa [#allocation3], 0  ;;  %v44_v10 = vsel %vm37_vm0, %v1289_v8, 0.0  ;;  %v68_v11 = vsel %vm37_vm0, %v1294_v9, 0.0  ;;  %v1303_v12 = vld [vmem:[%s1862_s0 + $0x18] sm:$0xff]  ;;  %v1317_v16 = vld [vmem:[%s1862_s0 + $0x20] sm:$0xff] }
   0x5   :  { %v1308_v13 = vld [vmem:[%s1862_s0 + $0x58] sm:$0xff]  ;;  %v47_v14 = vsel %vm37_vm0, %v1303_v12, 0.0  ;;  %v1322_v17 = vld [vmem:[%s1862_s0 + $0x60] sm:$0xff]  ;;  %v50_v18 = vsel %vm37_vm0, %v1317_v16, 0.0  ;;  %v1331_v20 = vld [vmem:[%s1862_s0 + $0x28] sm:$0xff] }
   0x6   :  { %v71_v15 = vsel %vm37_vm0, %v1308_v13, 0.0  ;;  %v74_v19 = vsel %vm37_vm0, %v1322_v17, 0.0  ;;  %v1336_v21 = vld [vmem:[%s1862_s0 + $0x68] sm:$0xff]  ;;  %v53_v22 = vsel %vm37_vm0, %v1331_v20, 0.0  ;;  %v1345_v24 = vld [vmem:[%s1862_s0 + $0x30] sm:$0xff]  ;;  %v1359_v28 = vld [vmem:[%s1862_s0 + $0x38] sm:$0xff] }
   0x7   :  { %63 = vadd.xlane.f32.xlu0 %v62_v6  ;;  %66 = vadd.xlane.f32.xlu1 %v65_v7  ;;  %v77_v23 = vsel %vm37_vm0, %v1336_v21, 0.0  ;;  %v1350_v25 = vld [vmem:[%s1862_s0 + $0x70] sm:$0xff]  ;;  %v56_v26 = vsel %vm37_vm0, %v1345_v24, 0.0  ;;  %v1364_v29 = vld [vmem:[%s1862_s0 + $0x78] sm:$0xff]  ;;  %v59_v30 = vsel %vm37_vm0, %v1359_v28, 0.0  ;;  %v578_v34 = vld [vmem:[%s1866_s4 + $0x68] sm:$0xff] }
   0x8   :  { %v80_v27 = vsel %vm37_vm0, %v1350_v25, 0.0  ;;  %v83_v31 = vsel %vm37_vm0, %v1364_v29, 0.0  ;;  %v580_v32 = vld [vmem:[%s1866_s4 + $0x78] sm:$0xff]  ;;  %v579_v33 = vld [vmem:[%s1866_s4 + $0x70] sm:$0xff]  ;;  %v577_v35 = vld [vmem:[%s1866_s4 + $0x60] sm:$0xff] }
   0x9   :  { %952 = vmatprep.subr.msk.mxu0 %vm37_vm0, %v580_v32  ;;  %1008 = vmatprep.subr.msk.mxu1 %vm37_vm0, %v580_v32  ;;  %v576_v36 = vld [vmem:[%s1866_s4 + $0x58] sm:$0xff]  ;;  %v575_v37 = vld [vmem:[%s1866_s4 + $0x50] sm:$0xff]  ;;  %v574_v38 = vld [vmem:[%s1866_s4 + $0x48] sm:$0xff] }
   0xa   :  { %953 = vmatpush3.xpose.msk.msra.mxu0 %vm37_vm0, %v580_v32  ;;  %1024 = vmatpush3.xpose.msk.msra.mxu1 %vm37_vm0, %v580_v32  ;;  %v573_v39 = vld [vmem:[%s1866_s4 + $0x40] sm:$0xff]  ;;  %v572_v40 = vld [vmem:[%s1866_s4 + $0x38] sm:$0xff] }
   0xb   :  { %45 = vadd.xlane.f32.xlu0 %v44_v10  ;;  %69 = vadd.xlane.f32.xlu1 %v68_v11 }
   0xc   :  { %954 = vmatprep.subr.msk.mxu0 %vm37_vm0, %v579_v33  ;;  %1009 = vmatprep.subr.msk.mxu1 %vm37_vm0, %v579_v33 }
   0xe   :  { %955 = vmatpush3.xpose.msk.msra.mxu0 %vm37_vm0, %v579_v33  ;;  %1025 = vmatpush3.xpose.msk.msra.mxu1 %vm37_vm0, %v579_v33 }
   0xf   :  { %48 = vadd.xlane.f32.xlu0 %v47_v14  ;;  %72 = vadd.xlane.f32.xlu1 %v71_v15 }
  0x10   :  { %956 = vmatprep.subr.msk.mxu0 %vm37_vm0, %v578_v34  ;;  %1010 = vmatprep.subr.msk.mxu1 %vm37_vm0, %v578_v34 }
  0x12   :  { %957 = vmatpush3.xpose.msk.msra.mxu0 %vm37_vm0, %v578_v34  ;;  %1026 = vmatpush3.xpose.msk.msra.mxu1 %vm37_vm0, %v578_v34 }
  0x13   :  { %51 = vadd.xlane.f32.xlu0 %v50_v18  ;;  %75 = vadd.xlane.f32.xlu1 %v74_v19 }
  0x14   :  { %958 = vmatprep.subr.msk.mxu0 %vm37_vm0, %v577_v35  ;;  %1011 = vmatprep.subr.msk.mxu1 %vm37_vm0, %v577_v35 }
  0x16   :  { %959 = vmatpush3.xpose.msk.msra.mxu0 %vm37_vm0, %v577_v35  ;;  %1027 = vmatpush3.xpose.msk.msra.mxu1 %vm37_vm0, %v577_v35 }
  0x17   :  { %54 = vadd.xlane.f32.xlu0 %v53_v22  ;;  %78 = vadd.xlane.f32.xlu1 %v77_v23 }
  0x18   :  { %960 = vmatprep.subr.msk.mxu0 %vm37_vm0, %v576_v36  ;;  %1012 = vmatprep.subr.msk.mxu1 %vm37_vm0, %v576_v36 }
  0x1a   :  { %961 = vmatpush3.xpose.msk.msra.mxu0 %vm37_vm0, %v576_v36  ;;  %1028 = vmatpush3.xpose.msk.msra.mxu1 %vm37_vm0, %v576_v36 }
  0x1b   :  { %57 = vadd.xlane.f32.xlu0 %v56_v26  ;;  %81 = vadd.xlane.f32.xlu1 %v80_v27 }
  0x1c   :  { %962 = vmatprep.subr.msk.mxu0 %vm37_vm0, %v575_v37  ;;  %1013 = vmatprep.subr.msk.mxu1 %vm37_vm0, %v575_v37 }
  0x1e   :  { %963 = vmatpush3.xpose.msk.msra.mxu0 %vm37_vm0, %v575_v37  ;;  %1029 = vmatpush3.xpose.msk.msra.mxu1 %vm37_vm0, %v575_v37 }
  0x1f   :  { %60 = vadd.xlane.f32.xlu0 %v59_v30  ;;  %84 = vadd.xlane.f32.xlu1 %v83_v31  ;;  %v571_v30 = vld [vmem:[%s1866_s4 + $0x30] sm:$0xff] }
  0x20   :  { %964 = vmatprep.subr.msk.mxu0 %vm37_vm0, %v574_v38  ;;  %1014 = vmatprep.subr.msk.mxu1 %vm37_vm0, %v574_v38 }
  0x22   :  { %965 = vmatpush3.xpose.msk.msra.mxu0 %vm37_vm0, %v574_v38  ;;  %1030 = vmatpush3.xpose.msk.msra.mxu1 %vm37_vm0, %v574_v38 }
  0x23   :  { %966 = vmatprep.subr.msk.mxu0 %vm37_vm0, %v573_v39  ;;  %1015 = vmatprep.subr.msk.mxu1 %vm37_vm0, %v573_v39 }
  0x26   :  { %967 = vmatpush3.xpose.msk.msra.mxu0 %vm37_vm0, %v573_v39  ;;  %1031 = vmatpush3.xpose.msk.msra.mxu1 %vm37_vm0, %v573_v39 }
  0x27   :  { %968 = vmatprep.subr.msk.mxu0 %vm37_vm0, %v572_v40  ;;  %1016 = vmatprep.subr.msk.mxu1 %vm37_vm0, %v572_v40 }
  0x2a   :  { %969 = vmatpush3.xpose.msk.msra.mxu0 %vm37_vm0, %v572_v40  ;;  %1032 = vmatpush3.xpose.msk.msra.mxu1 %vm37_vm0, %v572_v40 }
  0x2b   :  { %970 = vmatprep.subr.msk.mxu0 %vm37_vm0, %v571_v30  ;;  %1017 = vmatprep.subr.msk.mxu1 %vm37_vm0, %v571_v30 }
  0x2e   :  { %971 = vmatpush3.xpose.msk.msra.mxu0 %vm37_vm0, %v571_v30  ;;  %1033 = vmatpush3.xpose.msk.msra.mxu1 %vm37_vm0, %v571_v30 }
  0x8c   :  { %v40_v41 = vpop.xlane.xlu0 %39  ;;  %v43_v42 = vpop.xlane.xlu1 %42 }
  0x8d   :  { %v87_v43 = vmul.f32 0.03125, %v40_v41  ;;  %v88_v44 = vmul.f32 0.03125, %v43_v42  ;;  %v570_v42 = vld [vmem:[%s1866_s4 + $0x28] sm:$0xff] }
  0x8e   :  { %972 = vmatprep.subr.msk.mxu0 %vm37_vm0, %v570_v42  ;;  %1018 = vmatprep.subr.msk.mxu1 %vm37_vm0, %v570_v42 }
  0x8f   :  { %v1434_v45 = vsub.f32 %v1261_v0, %v87_v43  ;;  %v1437_v46 = vsub.f32 %v1266_v1, %v88_v44  ;;  %973 = vmatpush3.xpose.msk.msra.mxu0 %vm37_vm0, %v570_v42  ;;  %1034 = vmatpush3.xpose.msk.msra.mxu1 %vm37_vm0, %v570_v42 }
  0x90   :  { %v64_v47 = vpop.xlane.xlu0 %63  ;;  %v67_v48 = vpop.xlane.xlu1 %66 }
  0x91   :  { %v95_v49 = vmul.f32 0.03125, %v64_v47  ;;  %v96_v50 = vmul.f32 0.03125, %v67_v48  ;;  %v119_v51 = vmul.f32 %v1434_v45, %v1434_v45  ;;  %v120_v52 = vmul.f32 %v1437_v46, %v1437_v46 }
  0x93   :  { %v1444_v53 = vsub.f32 %v1271_v2, %v95_v49  ;;  %v1447_v54 = vsub.f32 %v1280_v5, %v96_v50  ;;  %v135_v55 = vsel %vm37_vm0, %v119_v51, 0.0  ;;  %v138_v58 = vsel %vm37_vm0, %v120_v52, 0.0 }
  0x94   :  { %136 = vadd.xlane.f32.xlu0 %v135_v55  ;;  %v46_v56 = vpop.xlane.xlu0 %45  ;;  %v70_v57 = vpop.xlane.xlu1 %69  ;;  %v569_v55 = vld [vmem:[%s1866_s4 + $0x20] sm:$0xff] }
  0x95   :  { %v89_v59 = vmul.f32 0.03125, %v46_v56  ;;  %v97_v60 = vmul.f32 0.03125, %v70_v57  ;;  %v127_v61 = vmul.f32 %v1444_v53, %v1444_v53  ;;  %v128_v62 = vmul.f32 %v1447_v54, %v1447_v54  ;;  %974 = vmatprep.subr.msk.mxu0 %vm37_vm0, %v569_v55  ;;  %1019 = vmatprep.subr.msk.mxu1 %vm37_vm0, %v569_v55 }
  0x96   :  { %975 = vmatpush3.xpose.msk.msra.mxu0 %vm37_vm0, %v569_v55  ;;  %1035 = vmatpush3.xpose.msk.msra.mxu1 %vm37_vm0, %v569_v55 }
  0x97   :  { %v1456_v63 = vsub.f32 %v1289_v8, %v89_v59  ;;  %v1459_v0 = vsub.f32 %v1294_v9, %v97_v60  ;;  %v159_v1 = vsel %vm37_vm0, %v127_v61, 0.0  ;;  %v162_v4 = vsel %vm37_vm0, %v128_v62, 0.0  ;;  %v568_v61 = vld [vmem:[%s1866_s4 + $0x18] sm:$0xff] }
  0x98   :  { %139 = vadd.xlane.f32.xlu0 %v138_v58  ;;  %160 = vadd.xlane.f32.xlu1 %v159_v1  ;;  %v49_v2 = vpop.xlane.xlu0 %48  ;;  %v73_v3 = vpop.xlane.xlu1 %72 }
  0x99   :  { %v90_v5 = vmul.f32 0.03125, %v49_v2  ;;  %v98_v6 = vmul.f32 0.03125, %v73_v3  ;;  %v121_v7 = vmul.f32 %v1456_v63, %v1456_v63  ;;  %v129_v8 = vmul.f32 %v1459_v0, %v1459_v0  ;;  %976 = vmatprep.subr.msk.mxu0 %vm37_vm0, %v568_v61  ;;  %1020 = vmatprep.subr.msk.mxu1 %vm37_vm0, %v568_v61  ;;  %v567_v2 = vld [vmem:[%s1866_s4 + $0x10] sm:$0xff] }
  0x9a   :  { %977 = vmatpush3.xpose.msk.msra.mxu0 %vm37_vm0, %v568_v61  ;;  %1036 = vmatpush3.xpose.msk.msra.mxu1 %vm37_vm0, %v568_v61 }
  0x9b   :  { %v1468_v10 = vsub.f32 %v1303_v12, %v90_v5  ;;  %v1471_v9 = vsub.f32 %v1308_v13, %v98_v6  ;;  %v141_v11 = vsel %vm37_vm0, %v121_v7, 0.0  ;;  %v165_v18 = vsel %vm37_vm0, %v129_v8, 0.0  ;;  %978 = vmatprep.subr.msk.mxu0 %vm37_vm0, %v567_v2  ;;  %1021 = vmatprep.subr.msk.mxu1 %vm37_vm0, %v567_v2  ;;  %v565_v5 = vld [vmem:[%s1866_s4] sm:$0xff]  ;;  %v1587_v8 = vld [vmem:[%s1863_s1 + $0x8] sm:$0xff] }
  0x9c   :  { %163 = vadd.xlane.f32.xlu1 %v162_v4  ;;  %142 = vadd.xlane.f32.xlu0 %v141_v11  ;;  %v52_v14 = vpop.xlane.xlu0 %51  ;;  %v76_v15 = vpop.xlane.xlu1 %75  ;;  %v566_v4 = vld [vmem:[%s1866_s4 + $0x8] sm:$0xff]  ;;  %v1581_v6 = vld [vmem:[%s1863_s1] sm:$0xff] }
  0x9d   :  { %v91_v19 = vmul.f32 0.03125, %v52_v14  ;;  %v99_v22 = vmul.f32 0.03125, %v76_v15  ;;  %v122_v23 = vmul.f32 %v1468_v10, %v1468_v10  ;;  %v130_v12 = vmul.f32 %v1471_v9, %v1471_v9  ;;  %v1592_v11 = vld [vmem:[%s1863_s1 + $0x40] sm:$0xff] }
  0x9e   :  { %979 = vmatpush3.xpose.msk.msra.mxu0 %vm37_vm0, %v567_v2  ;;  %1037 = vmatpush3.xpose.msk.msra.mxu1 %vm37_vm0, %v567_v2  ;;  %v856_v7 = vmul.f32 -1.442695, %v1581_v6  ;;  %v857_v14 = vmul.f32 -1.442695, %v1587_v8  ;;  %v864_v15 = vmul.f32 -1.442695, %v1592_v11 }
  0x9f   :  { %v1480_v26 = vsub.f32 %v1317_v16, %v91_v19  ;;  %v1483_v13 = vsub.f32 %v1322_v17, %v99_v22  ;;  %v144_v27 = vsel %vm37_vm0, %v122_v23, 0.0  ;;  %v168_v33 = vsel %vm37_vm0, %v130_v12, 0.0  ;;  %980 = vmatprep.subr.msk.mxu0 %vm37_vm0, %v566_v4  ;;  %1022 = vmatprep.subr.msk.mxu1 %vm37_vm0, %v566_v4  ;;  %v1604_v19 = vld [vmem:[%s1863_s1 + $0x48] sm:$0xff]  ;;  %v1609_v22 = vld [vmem:[%s1863_s1 + $0x18] sm:$0xff] }
  0xa0   :  { %166 = vadd.xlane.f32.xlu1 %v165_v18  ;;  %145 = vadd.xlane.f32.xlu0 %v144_v27  ;;  %v55_v31 = vpop.xlane.xlu0 %54  ;;  %v79_v32 = vpop.xlane.xlu1 %78  ;;  %1043 = vpow2.f32 %v856_v7  ;;  %v1599_v18 = vld [vmem:[%s1863_s1 + $0x10] sm:$0xff]  ;;  %v865_v12 = vmul.f32 -1.442695, %v1604_v19  ;;  %v859_v30 = vmul.f32 -1.442695, %v1609_v22 }
  0xa1   :  { %v92_v34 = vmul.f32 0.03125, %v55_v31  ;;  %v100_v35 = vmul.f32 0.03125, %v79_v32  ;;  %v123_v16 = vmul.f32 %v1480_v26, %v1480_v26  ;;  %v131_v17 = vmul.f32 %v1483_v13, %v1483_v13  ;;  %v1616_v27 = vld [vmem:[%s1863_s1 + $0x50] sm:$0xff]  ;;  %v1622_v31 = vld [vmem:[%s1863_s1 + $0x20] sm:$0xff] }
  0xa2   :  { %981 = vmatpush3.xpose.msk.msra.mxu0 %vm37_vm0, %v566_v4  ;;  %1038 = vmatpush3.xpose.msk.msra.mxu1 %vm37_vm0, %v566_v4  ;;  %1045 = vpow2.f32 %v857_v14  ;;  %v858_v23 = vmul.f32 -1.442695, %v1599_v18  ;;  %v866_v32 = vmul.f32 -1.442695, %v1616_v27  ;;  %v1671_v4 = vld [vmem:[%s1863_s1 + $0x78] sm:$0xff] }
  0xa3   :  { %v1499_v36 = vsub.f32 %v1331_v20, %v92_v34  ;;  %v1502_v37 = vsub.f32 %v1336_v21, %v100_v35  ;;  %v147_v38 = vsel %vm37_vm0, %v123_v16, 0.0  ;;  %v171_v41 = vsel %vm37_vm0, %v131_v17, 0.0  ;;  %982 = vmatprep.subr.msk.mxu0 %vm37_vm0, %v565_v5  ;;  %1023 = vmatprep.subr.msk.mxu1 %vm37_vm0, %v565_v5  ;;  %v1629_v34 = vld [vmem:[%s1863_s1 + $0x58] sm:$0xff]  ;;  %v1635_v17 = vld [vmem:[%s1863_s1 + $0x28] sm:$0xff] }
  0xa4   :  { %169 = vadd.xlane.f32.xlu1 %v168_v33  ;;  %148 = vadd.xlane.f32.xlu0 %v147_v38  ;;  %v58_v39 = vpop.xlane.xlu0 %57  ;;  %v82_v40 = vpop.xlane.xlu1 %81  ;;  %1047 = vpow2.f32 %v864_v15  ;;  %v860_v33 = vmul.f32 -1.442695, %v1622_v31  ;;  %v867_v16 = vmul.f32 -1.442695, %v1629_v34  ;;  %v1640_v38 = vld [vmem:[%s1863_s1 + $0x60] sm:$0xff] }
  0xa5   :  { %v93_v43 = vmul.f32 0.03125, %v58_v39  ;;  %v101_v44 = vmul.f32 0.03125, %v82_v40  ;;  %v124_v20 = vmul.f32 %v1499_v36, %v1499_v36  ;;  %v132_v21 = vmul.f32 %v1502_v37, %v1502_v37 }
  0xa6   :  { %983 = vmatpush3.xpose.msk.msra.mxu0 %vm37_vm0, %v565_v5  ;;  %1039 = vmatpush3.xpose.msk.msra.mxu1 %vm37_vm0, %v565_v5  ;;  %1049 = vpow2.f32 %v858_v23  ;;  %v861_v42 = vmul.f32 -1.442695, %v1635_v17  ;;  %v871_v14 = vmul.f32 -1.442695, %v1671_v4 }
  0xa7   :  { %v1518_v47 = vsub.f32 %v1345_v24, %v93_v43  ;;  %v1521_v48 = vsub.f32 %v1350_v25, %v101_v44  ;;  %v150_v49 = vsel %vm37_vm0, %v124_v20, 0.0  ;;  %v174_v52 = vsel %vm37_vm0, %v132_v21, 0.0  ;;  %v1647_v44 = vld [vmem:[%s1863_s1 + $0x30] sm:$0xff]  ;;  %v1652_v21 = vld [vmem:[%s1863_s1 + $0x68] sm:$0xff] }
  0xa8   :  { %172 = vadd.xlane.f32.xlu1 %v171_v41  ;;  %151 = vadd.xlane.f32.xlu0 %v150_v49  ;;  %v61_v50 = vpop.xlane.xlu0 %60  ;;  %v85_v51 = vpop.xlane.xlu1 %84  ;;  %1051 = vpow2.f32 %v865_v12  ;;  %v868_v43 = vmul.f32 -1.442695, %v1640_v38 }
  0xa9   :  { %v94_v56 = vmul.f32 0.03125, %v61_v50  ;;  %v102_v57 = vmul.f32 0.03125, %v85_v51  ;;  %v125_v24 = vmul.f32 %v1518_v47, %v1518_v47  ;;  %v133_v25 = vmul.f32 %v1521_v48, %v1521_v48 }
  0xaa   :  { %1053 = vpow2.f32 %v859_v30 }
  0xab   :  { %v1537_v58 = vsub.f32 %v1359_v28, %v94_v56  ;;  %v1540_v59 = vsub.f32 %v1364_v29, %v102_v57  ;;  %v153_v60 = vsel %vm37_vm0, %v125_v24, 0.0  ;;  %v177_v62 = vsel %vm37_vm0, %v133_v25, 0.0  ;;  %v1659_v24 = vld [vmem:[%s1863_s1 + $0x38] sm:$0xff] }
  0xac   :  { %175 = vadd.xlane.f32.xlu1 %v174_v52  ;;  %154 = vadd.xlane.f32.xlu0 %v153_v60  ;;  %1055 = vpow2.f32 %v866_v32  ;;  %v862_v52 = vmul.f32 -1.442695, %v1647_v44  ;;  %v869_v56 = vmul.f32 -1.442695, %v1652_v21 }
  0xad   :  { %v126_v1 = vmul.f32 %v1537_v58, %v1537_v58  ;;  %v134_v28 = vmul.f32 %v1540_v59, %v1540_v59  ;;  %1057 = vpow2.f32 %v860_v33  ;;  %v1044_v35 = vpop.eup %1043 }
  0xae   :  { %v357_v40 = vadd.f32 1.0, %v1044_v35  ;;  %1059 = vpow2.f32 %v867_v16 }
  0xaf   :  { %v156_v29 = vsel %vm37_vm0, %v126_v1, 0.0  ;;  %v180_v3 = vsel %vm37_vm0, %v134_v28, 0.0  ;;  %v1046_v39 = vpop.eup %1045  ;;  %v863_v1 = vmul.f32 -1.442695, %v1659_v24 }
  0xb0   :  { %178 = vadd.xlane.f32.xlu1 %v177_v62  ;;  %157 = vadd.xlane.f32.xlu0 %v156_v29  ;;  %v358_v20 = vadd.f32 1.0, %v1046_v39  ;;  %1061 = vrcp.f32 %v357_v40  ;;  %v1665_v29 = vld [vmem:[%s1863_s1 + $0x70] sm:$0xff] }
  0xb1   :  { %v1048_v41 = vpop.eup %1047  ;;  %1063 = vpow2.f32 %v861_v42 }
  0xb2   :  { %v365_v50 = vadd.f32 1.0, %v1048_v41  ;;  %1065 = vpow2.f32 %v868_v43 }
  0xb3   :  { %v1050_v49 = vpop.eup %1049  ;;  %1067 = vrcp.f32 %v358_v20 }
  0xb4   :  { %181 = vadd.xlane.f32.xlu1 %v180_v3  ;;  %v359_v57 = vadd.f32 1.0, %v1050_v49  ;;  %1069 = vrcp.f32 %v365_v50  ;;  %v870_v3 = vmul.f32 -1.442695, %v1665_v29 }
  0xb5   :  { %v1052_v51 = vpop.eup %1051  ;;  %1071 = vpow2.f32 %v862_v52 }
  0xb6   :  { %v366_v60 = vadd.f32 1.0, %v1052_v51  ;;  %1073 = vpow2.f32 %v869_v56 }
  0xb7   :  { %v1054_v55 = vpop.eup %1053  ;;  %1075 = vrcp.f32 %v359_v57 }
  0xb8   :  { %v360_v62 = vadd.f32 1.0, %v1054_v55  ;;  %1077 = vrcp.f32 %v366_v60 }
  0xb9   :  { %v1056_v25 = vpop.eup %1055 }
  0xba   :  { %v1058_v61 = vpop.eup %1057  ;;  %v367_v28 = vadd.f32 1.0, %v1056_v25  ;;  %1079 = vrcp.f32 %v360_v62 }
  0xbb   :  { %v361_v2 = vadd.f32 1.0, %v1058_v61  ;;  %1081 = vpow2.f32 %v863_v1  ;;  %v1060_v5 = vpop.eup %1059 }
  0xbc   :  { %1083 = vrcp.f32 %v367_v28  ;;  %v368_v23 = vadd.f32 1.0, %v1060_v5 }
  0xbd   :  { %1085 = vrcp.f32 %v361_v2  ;;  %v1062_v7 = vpop.eup %1061 }
  0xbe   :  { %v1064_v15 = vpop.eup %1063  ;;  %1087 = vpow2.f32 %v870_v3  ;;  %v1675_v32 = vmul.f32 %v1062_v7, %v1581_v6 }
  0xbf   :  { %v1066_v12 = vpop.eup %1065  ;;  %v362_v35 = vadd.f32 1.0, %v1064_v15  ;;  %1089 = vpow2.f32 %v871_v14 }
  0xc0   :  { %v1068_v30 = vpop.eup %1067  ;;  %1091 = vrcp.f32 %v368_v23  ;;  %v369_v39 = vadd.f32 1.0, %v1066_v12  ;;  %v872_v43 = vmul.f32 -1.442695, %v1675_v32 }
  0xc1   :  { %v1070_v33 = vpop.eup %1069  ;;  %v1678_v41 = vmul.f32 %v1068_v30, %v1587_v8  ;;  %1093 = vrcp.f32 %v362_v35 }
  0xc2   :  { %v1072_v16 = vpop.eup %1071  ;;  %v1682_v20 = vmul.f32 %v1070_v33, %v1592_v11  ;;  %1095 = vrcp.f32 %v369_v39 }
  0xc3   :  { %v1074_v40 = vpop.eup %1073  ;;  %v363_v6 = vadd.f32 1.0, %v1072_v16  ;;  %v873_v55 = vmul.f32 -1.442695, %v1678_v41  ;;  %1097 = vpow2.f32 %v872_v43 }
  0xc4   :  { %v1076_v42 = vpop.eup %1075  ;;  %v370_v51 = vadd.f32 1.0, %v1074_v40  ;;  %v880_v57 = vmul.f32 -1.442695, %v1682_v20 }
  0xc5   :  { %v1078_v49 = vpop.eup %1077  ;;  %v1686_v56 = vmul.f32 %v1076_v42, %v1599_v18  ;;  %1099 = vrcp.f32 %v363_v6 }
  0xc6   :  { %v1690_v25 = vmul.f32 %v1078_v49, %v1604_v19  ;;  %1101 = vrcp.f32 %v370_v51 }
  0xc7   :  { %v1080_v50 = vpop.eup %1079  ;;  %1103 = vpow2.f32 %v873_v55  ;;  %v874_v1 = vmul.f32 -1.442695, %v1686_v56 }
  0xc8   :  { %v1082_v52 = vpop.eup %1081  ;;  %v1693_v60 = vmul.f32 %v1080_v50, %v1609_v22  ;;  %1105 = vpow2.f32 %v880_v57  ;;  %v881_v28 = vmul.f32 -1.442695, %v1690_v25 }
  0xc9   :  { %v1084_v8 = vpop.eup %1083  ;;  %v364_v61 = vadd.f32 1.0, %v1082_v52 }
  0xca   :  { %v1086_v11 = vpop.eup %1085  ;;  %v1697_v18 = vmul.f32 %v1084_v8, %v1616_v27  ;;  %v875_v2 = vmul.f32 -1.442695, %v1693_v60 }
  0xcb   :  { %v1088_v62 = vpop.eup %1087  ;;  %v1701_v19 = vmul.f32 %v1086_v11, %v1622_v31  ;;  %1107 = vrcp.f32 %v364_v61 }
  0xcc   :  { %v1090_v22 = vpop.eup %1089  ;;  %v371_v3 = vadd.f32 1.0, %v1088_v62  ;;  %1109 = vpow2.f32 %v874_v1  ;;  %v882_v7 = vmul.f32 -1.442695, %v1697_v18 }
  0xcd   :  { %v1092_v5 = vpop.eup %1091  ;;  %1111 = vpow2.f32 %v881_v28  ;;  %v876_v14 = vmul.f32 -1.442695, %v1701_v19  ;;  %v372_v27 = vadd.f32 1.0, %v1090_v22 }
  0xce   :  { %1113 = vpow2.f32 %v875_v2  ;;  %v1094_v15 = vpop.eup %1093  ;;  %v1707_v23 = vmul.f32 %v1092_v5, %v1629_v34 }
  0xcf   :  { %1115 = vrcp.f32 %v371_v3  ;;  %v1096_v31 = vpop.eup %1095  ;;  %v1710_v30 = vmul.f32 %v1094_v15, %v1635_v17 }
  0xd0   :  { %1117 = vpow2.f32 %v882_v7  ;;  %v1098_v12 = vpop.eup %1097  ;;  %v883_v35 = vmul.f32 -1.442695, %v1707_v23  ;;  %v1714_v16 = vmul.f32 %v1096_v31, %v1640_v38 }
  0xd1   :  { %1119 = vpow2.f32 %v876_v14  ;;  %v469_v42 = vadd.f32 1.0, %v1098_v12  ;;  %v877_v43 = vmul.f32 -1.442695, %v1710_v30 }
  0xd2   :  { %1121 = vrcp.f32 %v372_v27  ;;  %v1100_v33 = vpop.eup %1099  ;;  %v884_v17 = vmul.f32 -1.442695, %v1714_v16 }
  0xd3   :  { %v1102_v39 = vpop.eup %1101  ;;  %v1718_v49 = vmul.f32 %v1100_v33, %v1647_v44  ;;  %1123 = vpow2.f32 %v883_v35 }
  0xd4   :  { %v1104_v40 = vpop.eup %1103  ;;  %v1722_v6 = vmul.f32 %v1102_v39, %v1652_v21  ;;  %1125 = vrcp.f32 %v469_v42 }
  0xd5   :  { %v1106_v34 = vpop.eup %1105  ;;  %v470_v51 = vadd.f32 1.0, %v1104_v40  ;;  %1127 = vpow2.f32 %v877_v43  ;;  %v878_v8 = vmul.f32 -1.442695, %v1718_v49 }
  0xd6   :  { %v477_v38 = vadd.f32 1.0, %v1106_v34  ;;  %1129 = vpow2.f32 %v884_v17  ;;  %v885_v44 = vmul.f32 -1.442695, %v1722_v6 }
  0xd7   :  { %1131 = vrcp.f32 %v470_v51 }
  0xd8   :  { %v1108_v50 = vpop.eup %1107  ;;  %1133 = vrcp.f32 %v477_v38 }
  0xd9   :  { %v1110_v52 = vpop.eup %1109  ;;  %v1727_v11 = vmul.f32 %v1108_v50, %v1659_v24  ;;  %1135 = vpow2.f32 %v878_v8 }
  0xda   :  { %v1112_v55 = vpop.eup %1111  ;;  %v471_v21 = vadd.f32 1.0, %v1110_v52  ;;  %1137 = vpow2.f32 %v885_v44 }
  0xdb   :  { %v1114_v57 = vpop.eup %1113  ;;  %v478_v1 = vadd.f32 1.0, %v1112_v55  ;;  %v879_v5 = vmul.f32 -1.442695, %v1727_v11 }
  0xdc   :  { %v1116_v61 = vpop.eup %1115  ;;  %v472_v2 = vadd.f32 1.0, %v1114_v57  ;;  %1139 = vrcp.f32 %v471_v21 }
  0xdd   :  { %v1118_v62 = vpop.eup %1117  ;;  %v1731_v7 = vmul.f32 %v1116_v61, %v1665_v29  ;;  %1141 = vrcp.f32 %v478_v1 }
  0xde   :  { %v1120_v28 = vpop.eup %1119  ;;  %v479_v24 = vadd.f32 1.0, %v1118_v62  ;;  %1143 = vrcp.f32 %v472_v2 }
  0xdf   :  { %v1122_v22 = vpop.eup %1121  ;;  %v473_v15 = vadd.f32 1.0, %v1120_v28  ;;  %1145 = vpow2.f32 %v879_v5  ;;  %v886_v35 = vmul.f32 -1.442695, %v1731_v7 }
  0xe0   :  { %v1734_v31 = vmul.f32 %v1122_v22, %v1671_v4  ;;  %v1124_v39 = vpop.eup %1123 }
  0xe1   :  { %v1126_v42 = vpop.eup %1125  ;;  %v480_v52 = vadd.f32 1.0, %v1124_v39 }
  0xe2   :  { %v887_v17 = vmul.f32 -1.442695, %v1734_v31  ;;  %v1128_v50 = vpop.eup %1127 }
  0xe3   :  { %v1130_v38 = vpop.eup %1129  ;;  %v474_v62 = vadd.f32 1.0, %v1128_v50 }
  0xe4   :  { %v1132_v57 = vpop.eup %1131  ;;  %v481_v22 = vadd.f32 1.0, %v1130_v38  ;;  %v1745_v38 = vld [vmem:[%s1864_s2] ss:$0 sm:$0xff] }
  0xe5   :  { %v1134_v44 = vpop.eup %1133 }
  0xe6   :  { %v1136_v1 = vpop.eup %1135 }
  0xe7   :  { %v475_v39 = vadd.f32 1.0, %v1136_v1 }
 0x11d   :  { %v137_v3 = vpop.xlane.xlu0 %136 }
 0x11e   :  { %v183_v14 = vmul.f32 0.03125, %v137_v3  ;;  %v1138_v3 = vpop.eup %1137 }
 0x120   :  { %v199_v27 = vadd.f32 1e-05, %v183_v14 }
 0x121   :  { %v161_v12 = vpop.xlane.xlu1 %160  ;;  %v140_v33 = vpop.xlane.xlu0 %139 }
 0x122   :  { %1147 = vrsqrt.f32 %v199_v27  ;;  %v191_v40 = vmul.f32 0.03125, %v161_v12  ;;  %v184_v29 = vmul.f32 0.03125, %v140_v33  ;;  %v1140_v27 = vpop.eup %1139 }
 0x123   :  { %1149 = vrcp.f32 %v479_v24  ;;  %v517_v24 = vmul.f32 %v1126_v42, %v1675_v32  ;;  %v1142_v12 = vpop.eup %1141 }
 0x124   :  { %v207_v34 = vadd.f32 1e-05, %v191_v40  ;;  %v200_v43 = vadd.f32 1e-05, %v184_v29  ;;  %1151 = vrcp.f32 %v473_v15  ;;  %v518_v15 = vmul.f32 %v1132_v57, %v1678_v41  ;;  %v1144_v40 = vpop.eup %1143 }
 0x125   :  { %v164_v51 = vpop.xlane.xlu1 %163  ;;  %v143_v4 = vpop.xlane.xlu0 %142  ;;  %1153 = vpow2.f32 %v886_v35  ;;  %v526_v57 = vmul.f32 %v1142_v12, %v1690_v25 }
 0x126   :  { %1155 = vrsqrt.f32 %v207_v34  ;;  %v192_v55 = vmul.f32 0.03125, %v164_v51  ;;  %v185_v8 = vmul.f32 0.03125, %v143_v4  ;;  %v1146_v50 = vpop.eup %1145  ;;  %v533_v4 = vadd.f32 %v517_v24, %v1675_v32 }
 0x127   :  { %1157 = vrsqrt.f32 %v200_v43  ;;  %v525_v43 = vmul.f32 %v1134_v44, %v1682_v20  ;;  %v1767_v12 = vadd.f32 %v526_v57, %v1690_v25 }
 0x128   :  { %v208_v61 = vadd.f32 1e-05, %v192_v55  ;;  %v201_v21 = vadd.f32 1e-05, %v185_v8  ;;  %1159 = vpow2.f32 %v887_v17  ;;  %v482_v17 = vadd.f32 1.0, %v1138_v3 }
 0x129   :  { %v167_v28 = vpop.xlane.xlu1 %166  ;;  %v146_v2 = vpop.xlane.xlu0 %145  ;;  %1161 = vrcp.f32 %v480_v52  ;;  %v1748_v55 = vadd.f32 %v518_v15, %v1678_v41  ;;  %v519_v8 = vmul.f32 %v1140_v27, %v1686_v56  ;;  %v541_v41 = vadd.f32 %v525_v43, %v1682_v20 }
 0x12a   :  { %1163 = vrsqrt.f32 %v208_v61  ;;  %v193_v5 = vmul.f32 0.03125, %v167_v28  ;;  %v186_v14 = vmul.f32 0.03125, %v146_v2  ;;  %v1758_v2 = vld [vmem:[%s1865_s3] ss:$0 sm:$0xff]  ;;  %v476_v3 = vadd.f32 1.0, %v1146_v50  ;;  %s1225_s3 = smov [#allocation2]  }
 0x12b   :  { %1165 = vrsqrt.f32 %v201_v21  ;;  %v1764_v15 = vadd.f32 %v519_v8, %v1686_v56  ;;  %s843_s11 = sshll.u32 %s1225_s3, 4  ;;  %s844_s11 = int_to_ptr.vmem [resolvable:$true] %s843_s11 }
 0x12c   :  { %v209_v33 = vadd.f32 1e-05, %v193_v5  ;;  %v202_v35 = vadd.f32 1e-05, %v186_v14  ;;  %1167 = vrcp.f32 %v474_v62  ;;  %s1203_s12 = scalar_lea.vmem %s844_s11, 2048  ;;  %p1208_p1 = scmp.lt.s32.totalorder %s844_s11, %s844_s11 }
 0x12d   :  { %v170_v29 = vpop.xlane.xlu1 %169  ;;  %v149_v34 = vpop.xlane.xlu0 %148  ;;  %1169 = vrcp.f32 %v481_v22  ;;  %v520_v22 = vmul.f32 %v1144_v40, %v1693_v60  ;;  %p1204_p0 = scmp.ne.s32.totalorder %s844_s11, %s1203_s12  ;;  %p1209_p2 = scmp.lt.s32.totalorder %s1203_s12, %s1203_s12 }
 0x12e   :  { %1171 = vrsqrt.f32 %v209_v33  ;;  %v194_v51 = vmul.f32 0.03125, %v170_v29  ;;  %v187_v42 = vmul.f32 0.03125, %v149_v34 }
 0x12f   :  { %v1148_v52 = vpop.eup %1147  ;;  %1173 = vrsqrt.f32 %v202_v35  ;;  %v1774_v56 = vadd.f32 %v520_v22, %v1693_v60  ;;  %p1210_p3 = por %p1209_p2, %p1208_p1 }
 0x130   :  { %v1150_v44 = vpop.eup %1149  ;;  %v210_v61 = vadd.f32 1e-05, %v194_v51  ;;  %v203_v21 = vadd.f32 1e-05, %v187_v42  ;;  %v231_v62 = vmul.f32 %v1148_v52, %v1434_v45  ;;  %1175 = vrcp.f32 %v475_v39 }
 0x131   :  { %v1753_v32 = vpop.eup %1151  ;;  %v173_v1 = vpop.xlane.xlu1 %172  ;;  %1177 = vrcp.f32 %v482_v17  ;;  %v527_v20 = vmul.f32 %v1150_v44, %v1697_v18  ;;  %p1211_p4 = pnand %p1210_p3, %p1204_p0 }
 0x132   :  { %v152_v28 = vpop.xlane.xlu0 %151  ;;  %v1154_v5 = vpop.eup %1153  ;;  %1179 = vrsqrt.f32 %v210_v61  ;;  %v195_v14 = vmul.f32 0.03125, %v173_v1  ;;  %v254_v24 = vmul.f32 %v1745_v38, %v231_v62 }
 0x133   :  { %v188_v45 = vmul.f32 0.03125, %v152_v28  ;;  %v1156_v27 = vpop.eup %1155  ;;  %1181 = vrsqrt.f32 %v203_v21  ;;  %v483_v25 = vadd.f32 1.0, %v1154_v5  ;;  %v543_v61 = vadd.f32 %v527_v20, %v1697_v18 }
 0x134   :  { %v1158_v33 = vpop.eup %1157  ;;  %v211_v35 = vadd.f32 1e-05, %v195_v14  ;;  %v277_v40 = vadd.f32 %v1758_v2, %v254_v24  ;;  %v239_v29 = vmul.f32 %v1156_v27, %v1444_v53  ;;  %1183 = vrcp.f32 %v476_v3 }
 0x135   :  { %v204_v39 = vadd.f32 1e-05, %v188_v45  ;;  %v1160_v34 = vpop.eup %1159  ;;  %v176_v43 = vpop.xlane.xlu1 %175  ;;  %v232_v50 = vmul.f32 %v1158_v33, %v1437_v46 }
 0x136   :  { %v155_v17 = vpop.xlane.xlu0 %154  ;;  %v1162_v51 = vpop.eup %1161  ;;  %1185 = vrsqrt.f32 %v211_v35  ;;  %v196_v42 = vmul.f32 0.03125, %v176_v43  ;;  %v549_v8 = vmul.f32 %v533_v4, %v277_v40  ;;  %v262_v53 = vmul.f32 %v1745_v38, %v239_v29 }
 0x137   :  { %v189_v52 = vmul.f32 0.03125, %v155_v17  ;;  %v1164_v57 = vpop.eup %1163  ;;  %1187 = vrsqrt.f32 %v204_v39  ;;  %v255_v44 = vmul.f32 %v1745_v38, %v232_v50  ;;  %v484_v1 = vadd.f32 1.0, %v1160_v34 }
 0x138   :  { %v1166_v21 = vpop.eup %1165  ;;  %v212_v46 = vadd.f32 1e-05, %v196_v42  ;;  %984 = vmatprep.mubr.msk.f32.mxu0 %vm37_vm0, %v549_v8  ;;  %v240_v60 = vmul.f32 %v1164_v57, %v1447_v54  ;;  %v285_v5 = vadd.f32 %v1758_v2, %v262_v53  ;;  %1189 = vrcp.f32 %v483_v25 }
 0x139   :  { %v205_v62 = vadd.f32 1e-05, %v189_v52  ;;  %v1168_v28 = vpop.eup %1167  ;;  %v179_v22 = vpop.xlane.xlu1 %178  ;;  %v278_v4 = vadd.f32 %v1758_v2, %v255_v44  ;;  %v233_v14 = vmul.f32 %v1166_v21, %v1456_v63  ;;  %v521_v53 = vmul.f32 %v1753_v32, %v1701_v19 }
 0x13a   :  { %v158_v3 = vpop.xlane.xlu0 %157  ;;  %v1170_v45 = vpop.eup %1169  ;;  %1191 = vrsqrt.f32 %v212_v46  ;;  %v197_v18 = vmul.f32 0.03125, %v179_v22  ;;  %v263_v27 = vmul.f32 %v1745_v38, %v240_v60  ;;  %v557_v33 = vmul.f32 %v541_v41, %v285_v5 }
 0x13b   :  { %v190_v24 = vmul.f32 0.03125, %v158_v3  ;;  %v1172_v20 = vpop.eup %1171  ;;  %1193 = vrsqrt.f32 %v205_v62  ;;  %v550_v54 = vmul.f32 %v1748_v55, %v278_v4  ;;  %v256_v35 = vmul.f32 %v1745_v38, %v233_v14 }
 0x13c   :  { %v1174_v39 = vpop.eup %1173  ;;  %v213_v40 = vadd.f32 1e-05, %v197_v18  ;;  %v286_v34 = vadd.f32 %v1758_v2, %v263_v27  ;;  %v241_v63 = vmul.f32 %v1172_v20, %v1459_v0  ;;  %996 = vmatprep.mubr.msk.f32.mxu1 %vm37_vm0, %v557_v33  ;;  %v528_v41 = vmul.f32 %v1162_v51, %v1707_v23 }
 0x13d   :  { %v206_v29 = vadd.f32 1e-05, %v190_v24  ;;  %v1176_v43 = vpop.eup %1175  ;;  %985 = vmatmul.mubr.msk.f32.vlgmr.msra.gmra.mxu0 %vm37_vm0, %v550_v54  ;;  %v182_v17 = vpop.xlane.xlu1 %181  ;;  %v279_v50 = vadd.f32 %v1758_v2, %v256_v35  ;;  %v234_v55 = vmul.f32 %v1174_v39, %v1468_v10  ;;  %1195 = vrcp.f32 %v484_v1 }
 0x13e   :  { %v1178_v25 = vpop.eup %1177  ;;  %1197 = vrsqrt.f32 %v213_v40  ;;  %v198_v42 = vmul.f32 0.03125, %v182_v17  ;;  %v558_v52 = vmul.f32 %v1767_v12, %v286_v34  ;;  %v264_v0 = vmul.f32 %v1745_v38, %v241_v63 }
 0x13f   :  { %v1180_v8 = vpop.eup %1179  ;;  %1199 = vrsqrt.f32 %v206_v29  ;;  %v551_v57 = vmul.f32 %v1764_v15, %v279_v50  ;;  %v257_v44 = vmul.f32 %v1745_v38, %v234_v55  ;;  %v544_v15 = vadd.f32 %v528_v41, %v1707_v23 }
 0x140   :  { %v1182_v10 = vpop.eup %1181  ;;  %v214_v21 = vadd.f32 1e-05, %v198_v42  ;;  %997 = vmatmul.mubr.msk.f32.vlgmr.msra.gmra.mxu1 %vm37_vm0, %v558_v52  ;;  %v287_v51 = vadd.f32 %v1758_v2, %v264_v0  ;;  %v242_v46 = vmul.f32 %v1180_v8, %v1471_v9  ;;  %v529_v22 = vmul.f32 %v1170_v45, %v1714_v16 }
 0x141   :  { %987 = vmatprep.mubr.msk.f32.mxu0 %vm37_vm0, %v551_v57  ;;  %v280_v12 = vadd.f32 %v1758_v2, %v257_v44  ;;  %v235_v62 = vmul.f32 %v1182_v10, %v1480_v26  ;;  %v1184_v60 = vpop.eup %1183  ;;  %v537_v5 = vadd.f32 %v521_v53, %v1701_v19  ;;  %v522_v14 = vmul.f32 %v1168_v28, %v1710_v30 }
 0x142   :  { %1201 = vrsqrt.f32 %v214_v21  ;;  %v559_v1 = vmul.f32 %v543_v61, %v287_v51  ;;  %v265_v32 = vmul.f32 %v1745_v38, %v242_v46  ;;  %v545_v19 = vadd.f32 %v529_v22, %v1714_v16 }
 0x143   :  { %v1186_v3 = vpop.eup %1185  ;;  %v552_v4 = vmul.f32 %v1774_v56, %v280_v12  ;;  %v258_v9 = vmul.f32 %v1745_v38, %v235_v62  ;;  %v530_v28 = vmul.f32 %v1178_v25, %v1722_v6  ;;  %v523_v35 = vmul.f32 %v1176_v43, %v1718_v49 }
 0x144   :  { %v1188_v18 = vpop.eup %1187  ;;  %999 = vmatprep.mubr.msk.f32.mxu1 %vm37_vm0, %v559_v1  ;;  %v288_v26 = vadd.f32 %v1758_v2, %v265_v32  ;;  %v243_v23 = vmul.f32 %v1186_v3, %v1483_v13  ;;  %v538_v13 = vadd.f32 %v522_v14, %v1710_v30  ;;  %v524_v25 = vmul.f32 %v1184_v60, %v1727_v11 }
 0x145   :  { %988 = vmatmul.mubr.msk.f32.gmra.mxu0 %vm37_vm0, %v552_v4  ;;  %v281_v61 = vadd.f32 %v1758_v2, %v258_v9  ;;  %v236_v45 = vmul.f32 %v1188_v18, %v1499_v36  ;;  %v1190_v56 = vpop.eup %1189  ;;  %v546_v30 = vadd.f32 %v530_v28, %v1722_v6 }
 0x146   :  { %v560_v24 = vmul.f32 %v544_v15, %v288_v26  ;;  %v266_v27 = vmul.f32 %v1745_v38, %v243_v23  ;;  %v531_v43 = vmul.f32 %v1190_v56, %v1731_v7  ;;  %v540_v51 = vadd.f32 %v524_v25, %v1727_v11 }
 0x147   :  { %v1192_v20 = vpop.eup %1191  ;;  %v553_v54 = vmul.f32 %v537_v5, %v281_v61  ;;  %v259_v33 = vmul.f32 %v1745_v38, %v236_v45 }
 0x148   :  { %v1194_v39 = vpop.eup %1193  ;;  %1000 = vmatmul.mubr.msk.f32.gmra.mxu1 %vm37_vm0, %v560_v24  ;;  %v289_v36 = vadd.f32 %v1758_v2, %v266_v27  ;;  %v244_v40 = vmul.f32 %v1192_v20, %v1502_v37  ;;  %v539_v37 = vadd.f32 %v523_v35, %v1718_v49  ;;  %v547_v49 = vadd.f32 %v531_v43, %v1731_v7 }
 0x149   :  { %990 = vmatprep.mubr.msk.f32.mxu0 %vm37_vm0, %v553_v54  ;;  %v282_v16 = vadd.f32 %v1758_v2, %v259_v33  ;;  %v237_v29 = vmul.f32 %v1194_v39, %v1518_v47 }
 0x14a   :  { %v1196_v34 = vpop.eup %1195  ;;  %v561_v63 = vmul.f32 %v545_v19, %v289_v36  ;;  %v267_v17 = vmul.f32 %v1745_v38, %v244_v40 }
 0x14b   :  { %v1198_v50 = vpop.eup %1197  ;;  %v554_v55 = vmul.f32 %v538_v13, %v282_v16  ;;  %v260_v41 = vmul.f32 %v1745_v38, %v237_v29  ;;  %v532_v44 = vmul.f32 %v1196_v34, %v1734_v31 }
 0x14c   :  { %v1200_v42 = vpop.eup %1199  ;;  %1002 = vmatprep.mubr.msk.f32.mxu1 %vm37_vm0, %v561_v63  ;;  %v290_v47 = vadd.f32 %v1758_v2, %v267_v17  ;;  %v245_v52 = vmul.f32 %v1198_v50, %v1521_v48 }
 0x14d   :  { %991 = vmatmul.mubr.msk.f32.gmra.mxu0 %vm37_vm0, %v554_v55  ;;  %v283_v6 = vadd.f32 %v1758_v2, %v260_v41  ;;  %v238_v0 = vmul.f32 %v1200_v42, %v1537_v58  ;;  %v548_v62 = vadd.f32 %v532_v44, %v1734_v31 }
 0x14e   :  { %v562_v8 = vmul.f32 %v546_v30, %v290_v47  ;;  %v268_v57 = vmul.f32 %v1745_v38, %v245_v52 }
 0x14f   :  { %v1202_v53 = vpop.eup %1201  ;;  %v555_v10 = vmul.f32 %v539_v37, %v283_v6  ;;  %v261_v21 = vmul.f32 %v1745_v38, %v238_v0 }
 0x150   :  { %1003 = vmatmul.mubr.msk.f32.gmra.mxu1 %vm37_vm0, %v562_v8  ;;  %v291_v48 = vadd.f32 %v1758_v2, %v268_v57  ;;  %v246_v46 = vmul.f32 %v1202_v53, %v1540_v59 }
 0x151   :  { %993 = vmatprep.mubr.msk.f32.mxu0 %vm37_vm0, %v555_v10  ;;  %v284_v58 = vadd.f32 %v1758_v2, %v261_v21 }
 0x152   :  { %v563_v12 = vmul.f32 %v547_v49, %v291_v48  ;;  %v269_v7 = vmul.f32 %v1745_v38, %v246_v46 }
 0x153   :  { %v556_v15 = vmul.f32 %v540_v51, %v284_v58 }
 0x154   :  { %1005 = vmatprep.mubr.msk.f32.mxu1 %vm37_vm0, %v563_v12  ;;  %v292_v11 = vadd.f32 %v1758_v2, %v269_v7 }
 0x155   :  { %994 = vmatmul.mubr.msk.f32.gmra.mxu0 %vm37_vm0, %v556_v15 }
 0x156   :  { %v564_v60 = vmul.f32 %v548_v62, %v292_v11 }
 0x158   :  { %1006 = vmatmul.mubr.msk.f32.gmra.mxu1 %vm37_vm0, %v564_v60 }
 0x1fd   :  { %v986_v59 = vpop.f32.mrf.mxu0 }
 0x1fe   :  { %823 = vst [vmem:[#allocation2 + $0x8] sm:$0xff] %v986_v59 }
 0x1ff   :  { %v743_v1 = vpop.f32.mrf.mxu0 }
 0x200   :  { %822 = vst [vmem:[#allocation2] sm:$0xff] %v743_v1  ;;  %v998_v32 = vpop.f32.mrf.mxu1 }
 0x201   :  { %831 = vst [vmem:[#allocation2 + $0x48] sm:$0xff] %v998_v32 }
 0x202   :  { %v783_v22 = vpop.f32.mrf.mxu1 }
 0x203   :  { %830 = vst [vmem:[#allocation2 + $0x40] sm:$0xff] %v783_v22 }
 0x205   :  { %v989_v38 = vpop.f32.mrf.mxu0 }
 0x206   :  { %825 = vst [vmem:[#allocation2 + $0x18] sm:$0xff] %v989_v38 }
 0x207   :  { %v753_v31 = vpop.f32.mrf.mxu0 }
 0x208   :  { %824 = vst [vmem:[#allocation2 + $0x10] sm:$0xff] %v753_v31  ;;  %v1001_v3 = vpop.f32.mrf.mxu1 }
 0x209   :  { %833 = vst [vmem:[#allocation2 + $0x58] sm:$0xff] %v1001_v3 }
 0x20a   :  { %v793_v2 = vpop.f32.mrf.mxu1 }
 0x20b   :  { %832 = vst [vmem:[#allocation2 + $0x50] sm:$0xff] %v793_v2 }
 0x20d   :  { %v992_v4 = vpop.f32.mrf.mxu0 }
 0x20e   :  { %827 = vst [vmem:[#allocation2 + $0x28] sm:$0xff] %v992_v4 }
 0x20f   :  { %v763_v9 = vpop.f32.mrf.mxu0 }
 0x210   :  { %826 = vst [vmem:[#allocation2 + $0x20] sm:$0xff] %v763_v9  ;;  %v1004_v5 = vpop.f32.mrf.mxu1 }
 0x211   :  { %835 = vst [vmem:[#allocation2 + $0x68] sm:$0xff] %v1004_v5 }
 0x212   :  { %v803_v14 = vpop.f32.mrf.mxu1 }
 0x213   :  { %834 = vst [vmem:[#allocation2 + $0x60] sm:$0xff] %v803_v14 }
 0x215   :  { %v995_v18 = vpop.f32.mrf.mxu0 }
 0x216   :  { %829 = vst [vmem:[#allocation2 + $0x38] sm:$0xff] %v995_v18 }
 0x217   :  { %v773_v26 = vpop.f32.mrf.mxu0 }
 0x218   :  { %828 = vst [vmem:[#allocation2 + $0x30] sm:$0xff] %v773_v26  ;;  %v1007_v23 = vpop.f32.mrf.mxu1 }
 0x219   :  { %837 = vst [vmem:[#allocation2 + $0x78] sm:$0xff] %v1007_v23 }
 0x21a   :  { %v813_v61 = vpop.f32.mrf.mxu1 }
 0x21b   :  { %836 = vst [vmem:[#allocation2 + $0x70] sm:$0xff] %v813_v61 }
 0x21c   :  { %1214 = shalt.err (!%p1211_p4)
}
 0x21d   :  { %s1226_s13 = smov 128   ;;  %s1227_s14 = smov 8  }
 0x21e   :  { %849 = dma.vmem_to_hbm [thread:$0]  %s844_s11, 2048, %s1867_s5, [#allocation3], %s1226_s13, %s1226_s13, %s1227_s14  }
 0x21f   :  { %1223 = dma.done.wait [#allocation3], 2048  }
 0x220   :  { %1224 = vsyncadd [#allocation3], 4294965248 }
 0x221   :  { %853 = vsyncpa [#allocation3], 1 }

</bundles_post_ra>
